<compile_context>
chip_gen: v5e
topology: v5e:2x2
jax: 0.10.0
libtpu: 0.0.40
codegen_flags: <defaults>
</compile_context>

<pallas_src>
import jax
import jax.numpy as jnp
from jax.experimental import pallas as pl
from jax.experimental.pallas import tpu as pltpu


# ----------------------------------------------------------------------------
# Fused forward kernel (everything resident in VMEM)
# ----------------------------------------------------------------------------

def _fused_forward_kernel(
        xcc_ref, xf_ref,
        a_cf, a_fp, a_pp0, a_pool1, a_pp1, a_pool2, a_pp2, a_pool3, a_pp3,
        m_cc, m_f, m_p0, m_p1, m_p2, m_p3, sel_std,
        w_cf, b_cf, w_fp_h, w_fp_f, b_fp, w_pp0, b_pp0,
        w21, b21, w22, b22,
        w31, b31, w32, b32,
        w41, b41, w42, b42, w43, b43, w44, b44,
        wf1, bf1, wf3, bf3,
        out_ref):
    f32 = jnp.float32

    def mm(a, b):
        return jnp.dot(a, b, preferred_element_type=f32)

    def gconv(a, x, w, b):
        # relu((A @ x) @ W + b)  -- TODO(synk): activation assumed ReLU
        return jnp.maximum(mm(mm(a, x), w) + b, 0.0)

    def inorm(x, m):
        # InstanceNorm1d(C), affine=False, eps=1e-5; normalization over nodes
        # per channel, per batch segment.  `m` is the block-diagonal segment
        # averaging matrix, so the per-segment mean/var reductions are matmuls.
        mu = mm(m, x)
        xc = x - mu
        var = mm(m, xc * xc)            # biased variance (torch InstanceNorm)
        return xc * jax.lax.rsqrt(var + 1e-5)

    # ---- input instance norms ---------------------------------------------
    xcc = inorm(xcc_ref[...], m_cc[...])                 # (B*Ncc, 2)
    xf = inorm(xf_ref[...], m_f[...])                    # (B*Nf, 3)

    # ---- convN_1 ------------------------------------------------------------
    h = gconv(a_cf[...], xcc, w_cf[...], b_cf[...])      # (B*Nf, 3)
    # layerFacePoint on cat([h, xFace], -1): split the (6,6) weight into two
    # (3,6) halves so no lane-axis concatenation is needed.
    afp = a_fp[...]
    y = mm(mm(afp, h), w_fp_h[...]) + mm(mm(afp, xf), w_fp_f[...]) + b_fp[...]
    x = jnp.maximum(y, 0.0)                              # (B*Np0, 6)
    x = gconv(a_pp0[...], x, w_pp0[...], b_pp0[...])     # (B*Np0, 6)
    x = inorm(x, m_p0[...])                              # in1

    # ---- convN_2 ------------------------------------------------------------
    x = mm(a_pool1[...], x)                              # pooling -> (B*Np1, 6)
    app1 = a_pp1[...]
    x = gconv(app1, x, w21[...], b21[...])
    x = gconv(app1, x, w22[...], b22[...])
    x = inorm(x, m_p1[...])                              # in2

    # ---- convN_3 ------------------------------------------------------------
    x = mm(a_pool2[...], x)                              # (B*Np2, 6)
    app2 = a_pp2[...]
    x = gconv(app2, x, w31[...], b31[...])
    x = gconv(app2, x, w32[...], b32[...])
    x = inorm(x, m_p2[...])                              # in3

    # ---- convN_4 (less layers) ----------------------------------------------
    x = mm(a_pool3[...], x)                              # (B*Np3, 6)
    app3 = a_pp3[...]
    mp3 = m_p3[...]
    x = gconv(app3, x, w41[...], b41[...])               # -> 12
    x = gconv(app3, x, w42[...], b42[...])
    x = inorm(x, mp3)                                    # in4 (block level)
    x = gconv(app3, x, w43[...], b43[...])
    x = gconv(app3, x, w44[...], b44[...])
    x = inorm(x, mp3)                                    # in42
    # (model-level self.in4 is defined but unused in the torch forward)

    # ---- torch.std(x, dim=1): unbiased std over nodes, per batch ------------
    xc = x - mm(mp3, x)
    var = mm(sel_std[...], xc * xc)      # (B, 12); 1/(n-1) folded into sel_std
    s = jnp.sqrt(var)

    # ---- final MLP (_ConvBlock10: 12 -> 36 -> 1) -----------------------------
    hdn = jnp.maximum(mm(s, wf1[...]) + bf1[...], 0.0)   # TODO(synk): hidden ReLU assumed
    out_ref[...] = mm(hdn, wf3[...]) + bf3[...]          # (B, 1)


# ----------------------------------------------------------------------------
# Wrapper: pack batch onto rows, build segment matrices, one pallas_call
# ----------------------------------------------------------------------------

def very_very_very_small_forward(params, graphs, x_cell_centers, x_face):
    B, n_cc, _ = x_cell_centers.shape
    n_f = x_face.shape[1]
    n_p0 = graphs["A_pp0"].shape[0]
    n_p1 = graphs["A_pp1"].shape[0]
    n_p2 = graphs["A_pp2"].shape[0]
    n_p3 = graphs["A_pp3"].shape[0]

    eye_b = jnp.eye(B, dtype=jnp.float32)

    def blk(a):                            # batch-shared adjacency -> block-diag
        return jnp.kron(eye_b, a)

    def seg_mean(n):                       # per-batch-segment averaging matrix
        return jnp.kron(eye_b, jnp.full((n, n), 1.0 / n, jnp.float32))

    # unbiased-variance selector for torch.std(dim=1); 1/(n-1) folded in
    sel_std = jnp.kron(eye_b, jnp.full((1, n_p3), 1.0 / (n_p3 - 1), jnp.float32))

    def wb(name):
        w, b = params[name]
        return w, b.reshape(1, -1)

    w_cf, b_cf = wb("cf")
    w_fp, b_fp = wb("fp")
    c_cf_out = w_cf.shape[1]
    w_fp_h, w_fp_f = w_fp[:c_cf_out], w_fp[c_cf_out:]   # split cat([h, xFace]) weight
    w_pp0, b_pp0 = wb("pp0")
    w21, b21 = wb("b2_1")
    w22, b22 = wb("b2_2")
    w31, b31 = wb("b3_1")
    w32, b32 = wb("b3_2")
    w41, b41 = wb("b4_1")
    w42, b42 = wb("b4_2")
    w43, b43 = wb("b4_3")
    w44, b44 = wb("b4_4")
    wf1, bf1 = wb("f1")
    wf3, bf3 = wb("f3")

    operands = (
        x_cell_centers.reshape(B * n_cc, -1).astype(jnp.float32),
        x_face.reshape(B * n_f, -1).astype(jnp.float32),
        blk(graphs["A_cf"]), blk(graphs["A_fp"]), blk(graphs["A_pp0"]),
        blk(graphs["A_pool1"]), blk(graphs["A_pp1"]),
        blk(graphs["A_pool2"]), blk(graphs["A_pp2"]),
        blk(graphs["A_pool3"]), blk(graphs["A_pp3"]),
        seg_mean(n_cc), seg_mean(n_f), seg_mean(n_p0),
        seg_mean(n_p1), seg_mean(n_p2), seg_mean(n_p3), sel_std,
        w_cf, b_cf, w_fp_h, w_fp_f, b_fp, w_pp0, b_pp0,
        w21, b21, w22, b22, w31, b31, w32, b32,
        w41, b41, w42, b42, w43, b43, w44, b44,
        wf1, bf1, wf3, bf3,
    )

    return pl.pallas_call(
        _fused_forward_kernel,
        out_shape=jax.ShapeDtypeStruct((B, 1), jnp.float32),
        in_specs=[pl.BlockSpec(memory_space=pltpu.MemorySpace.VMEM)
                  for _ in operands],
        out_specs=pl.BlockSpec(memory_space=pltpu.MemorySpace.VMEM),
    )(*operands)


# ----------------------------------------------------------------------------
# Parameter / graph construction (deterministic, synthetic)
# ----------------------------------------------------------------------------

def _init_linear(key, cin, cout):
    kw, kb = jax.random.split(key)
    s = 1.0 / (cin ** 0.5)
    w = jax.random.uniform(kw, (cin, cout), jnp.float32, -s, s)
    b = jax.random.uniform(kb, (cout,), jnp.float32, -s, s)
    return w, b


def _init_adj(key, n_tgt, n_src, self_loops=False):
    km, kw = jax.random.split(key)
    mask = (jax.random.uniform(km, (n_tgt, n_src)) < 0.3).astype(jnp.float32)
    wts = jax.random.uniform(kw, (n_tgt, n_src), jnp.float32, 0.1, 1.0)
    a = mask * wts / float(n_src)
    if self_loops:
        a = a + jnp.eye(n_tgt, n_src, dtype=jnp.float32)
    return a


def build_model(key, sizes):
    n_cc, n_f, n_p0, n_p1, n_p2, n_p3 = sizes
    keys = jax.random.split(key, 32)
    params = {
        # _ConvBlock1(2, 3, 3, 6)
        "cf": _init_linear(keys[0], 2, 3),
        "fp": _init_linear(keys[1], 3 + 3, 6),
        "pp0": _init_linear(keys[2], 6, 6),
        # _ConvBlock2(6, 6)
        "b2_1": _init_linear(keys[3], 6, 6),
        "b2_2": _init_linear(keys[4], 6, 6),
        # _ConvBlock3(6, 6)
        "b3_1": _init_linear(keys[5], 6, 6),
        "b3_2": _init_linear(keys[6], 6, 6),
        # _ConvBlock4LessLayers(6, 12)
        "b4_1": _init_linear(keys[7], 6, 12),
        "b4_2": _init_linear(keys[8], 12, 12),
        "b4_3": _init_linear(keys[9], 12, 12),
        "b4_4": _init_linear(keys[10], 12, 12),
        # _ConvBlock10(12, 1): SelfLoopLayer(12, 36) -> SelfLoopLayer(36, 1)
        "f1": _init_linear(keys[11], 12, 36),
        "f3": _init_linear(keys[12], 36, 1),
    }
    graphs = {
        "A_cf": _init_adj(keys[20], n_f, n_cc),            # centerFace (bipartite)
        "A_fp": _init_adj(keys[21], n_p0, n_f),            # facePoint (bipartite)
        "A_pp0": _init_adj(keys[22], n_p0, n_p0, True),    # pointPoint level 0
        "A_pool1": _init_adj(keys[23], n_p1, n_p0),        # pooling 0 -> 1
        "A_pp1": _init_adj(keys[24], n_p1, n_p1, True),
        "A_pool2": _init_adj(keys[25], n_p2, n_p1),        # pooling 1 -> 2
        "A_pp2": _init_adj(keys[26], n_p2, n_p2, True),
        "A_pool3": _init_adj(keys[27], n_p3, n_p2),        # pooling 2 -> 3
        "A_pp3": _init_adj(keys[28], n_p3, n_p3, True),
    }
    return params, graphs


# ----------------------------------------------------------------------------
# Main
# ----------------------------------------------------------------------------

if __name__ == "__main__":
    key = jax.random.PRNGKey(0)
    k_in_cc, k_in_f, k_model = jax.random.split(key, 3)

    B = 2
    # node counts per hierarchy level (multiples of 8 for clean sublane tiling)
    Ncc, Nf, Np0, Np1, Np2, Np3 = 24, 32, 40, 24, 16, 8

    x_cell_centers = jax.random.normal(k_in_cc, (B, Ncc, 2), jnp.float32)
    x_face = jax.random.normal(k_in_f, (B, Nf, 3), jnp.float32)

    params, graphs = build_model(k_model, (Ncc, Nf, Np0, Np1, Np2, Np3))

    fwd = jax.jit(very_very_very_small_forward)
    out = jax.block_until_ready(fwd(params, graphs, x_cell_centers, x_face))

    assert out.shape == (B, 1) and out.dtype == jnp.float32
    assert bool(jnp.all(jnp.isfinite(out)))
    print("KERNEL_OK")
</pallas_src>

<mosaic_0001>
module attributes {stable_mosaic.version = 11 : i64} {
  func.func @_fused_forward_kernel(%arg0: memref<48x2xf32, #tpu.memory_space<vmem>>, %arg1: memref<64x3xf32, #tpu.memory_space<vmem>>, %arg2: memref<64x48xf32, #tpu.memory_space<vmem>>, %arg3: memref<80x64xf32, #tpu.memory_space<vmem>>, %arg4: memref<80x80xf32, #tpu.memory_space<vmem>>, %arg5: memref<48x80xf32, #tpu.memory_space<vmem>>, %arg6: memref<48x48xf32, #tpu.memory_space<vmem>>, %arg7: memref<32x48xf32, #tpu.memory_space<vmem>>, %arg8: memref<32x32xf32, #tpu.memory_space<vmem>>, %arg9: memref<16x32xf32, #tpu.memory_space<vmem>>, %arg10: memref<16x16xf32, #tpu.memory_space<vmem>>, %arg11: memref<48x48xf32, #tpu.memory_space<vmem>>, %arg12: memref<64x64xf32, #tpu.memory_space<vmem>>, %arg13: memref<80x80xf32, #tpu.memory_space<vmem>>, %arg14: memref<48x48xf32, #tpu.memory_space<vmem>>, %arg15: memref<32x32xf32, #tpu.memory_space<vmem>>, %arg16: memref<16x16xf32, #tpu.memory_space<vmem>>, %arg17: memref<2x16xf32, #tpu.memory_space<vmem>>, %arg18: memref<2x3xf32, #tpu.memory_space<vmem>>, %arg19: memref<1x3xf32, #tpu.memory_space<vmem>>, %arg20: memref<3x6xf32, #tpu.memory_space<vmem>>, %arg21: memref<3x6xf32, #tpu.memory_space<vmem>>, %arg22: memref<1x6xf32, #tpu.memory_space<vmem>>, %arg23: memref<6x6xf32, #tpu.memory_space<vmem>>, %arg24: memref<1x6xf32, #tpu.memory_space<vmem>>, %arg25: memref<6x6xf32, #tpu.memory_space<vmem>>, %arg26: memref<1x6xf32, #tpu.memory_space<vmem>>, %arg27: memref<6x6xf32, #tpu.memory_space<vmem>>, %arg28: memref<1x6xf32, #tpu.memory_space<vmem>>, %arg29: memref<6x6xf32, #tpu.memory_space<vmem>>, %arg30: memref<1x6xf32, #tpu.memory_space<vmem>>, %arg31: memref<6x6xf32, #tpu.memory_space<vmem>>, %arg32: memref<1x6xf32, #tpu.memory_space<vmem>>, %arg33: memref<6x12xf32, #tpu.memory_space<vmem>>, %arg34: memref<1x12xf32, #tpu.memory_space<vmem>>, %arg35: memref<12x12xf32, #tpu.memory_space<vmem>>, %arg36: memref<1x12xf32, #tpu.memory_space<vmem>>, %arg37: memref<12x12xf32, #tpu.memory_space<vmem>>, %arg38: memref<1x12xf32, #tpu.memory_space<vmem>>, %arg39: memref<12x12xf32, #tpu.memory_space<vmem>>, %arg40: memref<1x12xf32, #tpu.memory_space<vmem>>, %arg41: memref<12x36xf32, #tpu.memory_space<vmem>>, %arg42: memref<1x36xf32, #tpu.memory_space<vmem>>, %arg43: memref<36x1xf32, #tpu.memory_space<vmem>>, %arg44: memref<1x1xf32, #tpu.memory_space<vmem>>, %arg45: memref<2x1xf32, #tpu.memory_space<vmem>>) attributes {dimension_semantics = [], scalar_prefetch = 0 : i64, scratch_operands = 0 : i64, tpu.core_type = #tpu.core_type<tc>} {
    %c0 = arith.constant 0 : index
    %c0_0 = arith.constant 0 : index
    %0 = vector.load %arg0[%c0, %c0_0] : memref<48x2xf32, #tpu.memory_space<vmem>>, vector<48x2xf32>
    %c0_1 = arith.constant 0 : index
    %c0_2 = arith.constant 0 : index
    %1 = vector.load %arg11[%c0_1, %c0_2] : memref<48x48xf32, #tpu.memory_space<vmem>>, vector<48x48xf32>
    %cst = arith.constant dense<0.000000e+00> : vector<48x2xf32>
    %2 = tpu.matmul %1, %0, %cst {dimension_numbers = #tpu.dot_dimension_numbers<[1], [0], [0], [1], [0, 0, 1, 1], [], []>} : vector<48x48xf32>, vector<48x2xf32>, vector<48x2xf32> -> vector<48x2xf32>
    %3 = arith.subf %0, %2 : vector<48x2xf32>
    %4 = arith.mulf %3, %3 : vector<48x2xf32>
    %cst_3 = arith.constant dense<0.000000e+00> : vector<48x2xf32>
    %5 = tpu.matmul %1, %4, %cst_3 {dimension_numbers = #tpu.dot_dimension_numbers<[1], [0], [0], [1], [0, 0, 1, 1], [], []>} : vector<48x48xf32>, vector<48x2xf32>, vector<48x2xf32> -> vector<48x2xf32>
    %cst_4 = arith.constant 9.99999974E-6 : f32
    %6 = vector.broadcast %cst_4 : f32 to vector<48x2xf32>
    %7 = arith.addf %5, %6 : vector<48x2xf32>
    %8 = math.rsqrt %7 : vector<48x2xf32>
    %9 = arith.mulf %3, %8 : vector<48x2xf32>
    %c0_5 = arith.constant 0 : index
    %c0_6 = arith.constant 0 : index
    %10 = vector.load %arg1[%c0_5, %c0_6] : memref<64x3xf32, #tpu.memory_space<vmem>>, vector<64x3xf32>
    %c0_7 = arith.constant 0 : index
    %c0_8 = arith.constant 0 : index
    %11 = vector.load %arg12[%c0_7, %c0_8] : memref<64x64xf32, #tpu.memory_space<vmem>>, vector<64x64xf32>
    %cst_9 = arith.constant dense<0.000000e+00> : vector<64x3xf32>
    %12 = tpu.matmul %11, %10, %cst_9 {dimension_numbers = #tpu.dot_dimension_numbers<[1], [0], [0], [1], [0, 0, 1, 1], [], []>} : vector<64x64xf32>, vector<64x3xf32>, vector<64x3xf32> -> vector<64x3xf32>
    %13 = arith.subf %10, %12 : vector<64x3xf32>
    %14 = arith.mulf %13, %13 : vector<64x3xf32>
    %cst_10 = arith.constant dense<0.000000e+00> : vector<64x3xf32>
    %15 = tpu.matmul %11, %14, %cst_10 {dimension_numbers = #tpu.dot_dimension_numbers<[1], [0], [0], [1], [0, 0, 1, 1], [], []>} : vector<64x64xf32>, vector<64x3xf32>, vector<64x3xf32> -> vector<64x3xf32>
    %cst_11 = arith.constant 9.99999974E-6 : f32
    %16 = vector.broadcast %cst_11 : f32 to vector<64x3xf32>
    %17 = arith.addf %15, %16 : vector<64x3xf32>
    %18 = math.rsqrt %17 : vector<64x3xf32>
    %19 = arith.mulf %13, %18 : vector<64x3xf32>
    %c0_12 = arith.constant 0 : index
    %c0_13 = arith.constant 0 : index
    %20 = vector.load %arg2[%c0_12, %c0_13] : memref<64x48xf32, #tpu.memory_space<vmem>>, vector<64x48xf32>
    %c0_14 = arith.constant 0 : index
    %c0_15 = arith.constant 0 : index
    %21 = vector.load %arg18[%c0_14, %c0_15] : memref<2x3xf32, #tpu.memory_space<vmem>>, vector<2x3xf32>
    %c0_16 = arith.constant 0 : index
    %c0_17 = arith.constant 0 : index
    %22 = vector.load %arg19[%c0_16, %c0_17] : memref<1x3xf32, #tpu.memory_space<vmem>>, vector<1x3xf32>
    %cst_18 = arith.constant dense<0.000000e+00> : vector<64x2xf32>
    %23 = tpu.matmul %20, %9, %cst_18 {dimension_numbers = #tpu.dot_dimension_numbers<[1], [0], [0], [1], [0, 0, 1, 1], [], []>} : vector<64x48xf32>, vector<48x2xf32>, vector<64x2xf32> -> vector<64x2xf32>
    %cst_19 = arith.constant dense<0.000000e+00> : vector<64x3xf32>
    %24 = tpu.matmul %23, %21, %cst_19 {dimension_numbers = #tpu.dot_dimension_numbers<[1], [0], [0], [1], [0, 0, 1, 1], [], []>} : vector<64x2xf32>, vector<2x3xf32>, vector<64x3xf32> -> vector<64x3xf32>
    %25 = vector.broadcast %22 : vector<1x3xf32> to vector<64x3xf32>
    %26 = arith.addf %24, %25 : vector<64x3xf32>
    %cst_20 = arith.constant 0.000000e+00 : f32
    %27 = vector.broadcast %cst_20 : f32 to vector<64x3xf32>
    %28 = arith.maximumf %26, %27 : vector<64x3xf32>
    %c0_21 = arith.constant 0 : index
    %c0_22 = arith.constant 0 : index
    %29 = vector.load %arg3[%c0_21, %c0_22] : memref<80x64xf32, #tpu.memory_space<vmem>>, vector<80x64xf32>
    %cst_23 = arith.constant dense<0.000000e+00> : vector<80x3xf32>
    %30 = tpu.matmul %29, %28, %cst_23 {dimension_numbers = #tpu.dot_dimension_numbers<[1], [0], [0], [1], [0, 0, 1, 1], [], []>} : vector<80x64xf32>, vector<64x3xf32>, vector<80x3xf32> -> vector<80x3xf32>
    %c0_24 = arith.constant 0 : index
    %c0_25 = arith.constant 0 : index
    %31 = vector.load %arg20[%c0_24, %c0_25] : memref<3x6xf32, #tpu.memory_space<vmem>>, vector<3x6xf32>
    %cst_26 = arith.constant dense<0.000000e+00> : vector<80x6xf32>
    %32 = tpu.matmul %30, %31, %cst_26 {dimension_numbers = #tpu.dot_dimension_numbers<[1], [0], [0], [1], [0, 0, 1, 1], [], []>} : vector<80x3xf32>, vector<3x6xf32>, vector<80x6xf32> -> vector<80x6xf32>
    %cst_27 = arith.constant dense<0.000000e+00> : vector<80x3xf32>
    %33 = tpu.matmul %29, %19, %cst_27 {dimension_numbers = #tpu.dot_dimension_numbers<[1], [0], [0], [1], [0, 0, 1, 1], [], []>} : vector<80x64xf32>, vector<64x3xf32>, vector<80x3xf32> -> vector<80x3xf32>
    %c0_28 = arith.constant 0 : index
    %c0_29 = arith.constant 0 : index
    %34 = vector.load %arg21[%c0_28, %c0_29] : memref<3x6xf32, #tpu.memory_space<vmem>>, vector<3x6xf32>
    %cst_30 = arith.constant dense<0.000000e+00> : vector<80x6xf32>
    %35 = tpu.matmul %33, %34, %cst_30 {dimension_numbers = #tpu.dot_dimension_numbers<[1], [0], [0], [1], [0, 0, 1, 1], [], []>} : vector<80x3xf32>, vector<3x6xf32>, vector<80x6xf32> -> vector<80x6xf32>
    %36 = arith.addf %32, %35 : vector<80x6xf32>
    %c0_31 = arith.constant 0 : index
    %c0_32 = arith.constant 0 : index
    %37 = vector.load %arg22[%c0_31, %c0_32] : memref<1x6xf32, #tpu.memory_space<vmem>>, vector<1x6xf32>
    %38 = vector.broadcast %37 : vector<1x6xf32> to vector<80x6xf32>
    %39 = arith.addf %36, %38 : vector<80x6xf32>
    %cst_33 = arith.constant 0.000000e+00 : f32
    %40 = vector.broadcast %cst_33 : f32 to vector<80x6xf32>
    %41 = arith.maximumf %39, %40 : vector<80x6xf32>
    %c0_34 = arith.constant 0 : index
    %c0_35 = arith.constant 0 : index
    %42 = vector.load %arg4[%c0_34, %c0_35] : memref<80x80xf32, #tpu.memory_space<vmem>>, vector<80x80xf32>
    %c0_36 = arith.constant 0 : index
    %c0_37 = arith.constant 0 : index
    %43 = vector.load %arg23[%c0_36, %c0_37] : memref<6x6xf32, #tpu.memory_space<vmem>>, vector<6x6xf32>
    %c0_38 = arith.constant 0 : index
    %c0_39 = arith.constant 0 : index
    %44 = vector.load %arg24[%c0_38, %c0_39] : memref<1x6xf32, #tpu.memory_space<vmem>>, vector<1x6xf32>
    %cst_40 = arith.constant dense<0.000000e+00> : vector<80x6xf32>
    %45 = tpu.matmul %42, %41, %cst_40 {dimension_numbers = #tpu.dot_dimension_numbers<[1], [0], [0], [1], [0, 0, 1, 1], [], []>} : vector<80x80xf32>, vector<80x6xf32>, vector<80x6xf32> -> vector<80x6xf32>
    %cst_41 = arith.constant dense<0.000000e+00> : vector<80x6xf32>
    %46 = tpu.matmul %45, %43, %cst_41 {dimension_numbers = #tpu.dot_dimension_numbers<[1], [0], [0], [1], [0, 0, 1, 1], [], []>} : vector<80x6xf32>, vector<6x6xf32>, vector<80x6xf32> -> vector<80x6xf32>
    %47 = vector.broadcast %44 : vector<1x6xf32> to vector<80x6xf32>
    %48 = arith.addf %46, %47 : vector<80x6xf32>
    %cst_42 = arith.constant 0.000000e+00 : f32
    %49 = vector.broadcast %cst_42 : f32 to vector<80x6xf32>
    %50 = arith.maximumf %48, %49 : vector<80x6xf32>
    %c0_43 = arith.constant 0 : index
    %c0_44 = arith.constant 0 : index
    %51 = vector.load %arg13[%c0_43, %c0_44] : memref<80x80xf32, #tpu.memory_space<vmem>>, vector<80x80xf32>
    %cst_45 = arith.constant dense<0.000000e+00> : vector<80x6xf32>
    %52 = tpu.matmul %51, %50, %cst_45 {dimension_numbers = #tpu.dot_dimension_numbers<[1], [0], [0], [1], [0, 0, 1, 1], [], []>} : vector<80x80xf32>, vector<80x6xf32>, vector<80x6xf32> -> vector<80x6xf32>
    %53 = arith.subf %50, %52 : vector<80x6xf32>
    %54 = arith.mulf %53, %53 : vector<80x6xf32>
    %cst_46 = arith.constant dense<0.000000e+00> : vector<80x6xf32>
    %55 = tpu.matmul %51, %54, %cst_46 {dimension_numbers = #tpu.dot_dimension_numbers<[1], [0], [0], [1], [0, 0, 1, 1], [], []>} : vector<80x80xf32>, vector<80x6xf32>, vector<80x6xf32> -> vector<80x6xf32>
    %cst_47 = arith.constant 9.99999974E-6 : f32
    %56 = vector.broadcast %cst_47 : f32 to vector<80x6xf32>
    %57 = arith.addf %55, %56 : vector<80x6xf32>
    %58 = math.rsqrt %57 : vector<80x6xf32>
    %59 = arith.mulf %53, %58 : vector<80x6xf32>
    %c0_48 = arith.constant 0 : index
    %c0_49 = arith.constant 0 : index
    %60 = vector.load %arg5[%c0_48, %c0_49] : memref<48x80xf32, #tpu.memory_space<vmem>>, vector<48x80xf32>
    %cst_50 = arith.constant dense<0.000000e+00> : vector<48x6xf32>
    %61 = tpu.matmul %60, %59, %cst_50 {dimension_numbers = #tpu.dot_dimension_numbers<[1], [0], [0], [1], [0, 0, 1, 1], [], []>} : vector<48x80xf32>, vector<80x6xf32>, vector<48x6xf32> -> vector<48x6xf32>
    %c0_51 = arith.constant 0 : index
    %c0_52 = arith.constant 0 : index
    %62 = vector.load %arg6[%c0_51, %c0_52] : memref<48x48xf32, #tpu.memory_space<vmem>>, vector<48x48xf32>
    %c0_53 = arith.constant 0 : index
    %c0_54 = arith.constant 0 : index
    %63 = vector.load %arg25[%c0_53, %c0_54] : memref<6x6xf32, #tpu.memory_space<vmem>>, vector<6x6xf32>
    %c0_55 = arith.constant 0 : index
    %c0_56 = arith.constant 0 : index
    %64 = vector.load %arg26[%c0_55, %c0_56] : memref<1x6xf32, #tpu.memory_space<vmem>>, vector<1x6xf32>
    %cst_57 = arith.constant dense<0.000000e+00> : vector<48x6xf32>
    %65 = tpu.matmul %62, %61, %cst_57 {dimension_numbers = #tpu.dot_dimension_numbers<[1], [0], [0], [1], [0, 0, 1, 1], [], []>} : vector<48x48xf32>, vector<48x6xf32>, vector<48x6xf32> -> vector<48x6xf32>
    %cst_58 = arith.constant dense<0.000000e+00> : vector<48x6xf32>
    %66 = tpu.matmul %65, %63, %cst_58 {dimension_numbers = #tpu.dot_dimension_numbers<[1], [0], [0], [1], [0, 0, 1, 1], [], []>} : vector<48x6xf32>, vector<6x6xf32>, vector<48x6xf32> -> vector<48x6xf32>
    %67 = vector.broadcast %64 : vector<1x6xf32> to vector<48x6xf32>
    %68 = arith.addf %66, %67 : vector<48x6xf32>
    %cst_59 = arith.constant 0.000000e+00 : f32
    %69 = vector.broadcast %cst_59 : f32 to vector<48x6xf32>
    %70 = arith.maximumf %68, %69 : vector<48x6xf32>
    %c0_60 = arith.constant 0 : index
    %c0_61 = arith.constant 0 : index
    %71 = vector.load %arg27[%c0_60, %c0_61] : memref<6x6xf32, #tpu.memory_space<vmem>>, vector<6x6xf32>
    %c0_62 = arith.constant 0 : index
    %c0_63 = arith.constant 0 : index
    %72 = vector.load %arg28[%c0_62, %c0_63] : memref<1x6xf32, #tpu.memory_space<vmem>>, vector<1x6xf32>
    %cst_64 = arith.constant dense<0.000000e+00> : vector<48x6xf32>
    %73 = tpu.matmul %62, %70, %cst_64 {dimension_numbers = #tpu.dot_dimension_numbers<[1], [0], [0], [1], [0, 0, 1, 1], [], []>} : vector<48x48xf32>, vector<48x6xf32>, vector<48x6xf32> -> vector<48x6xf32>
    %cst_65 = arith.constant dense<0.000000e+00> : vector<48x6xf32>
    %74 = tpu.matmul %73, %71, %cst_65 {dimension_numbers = #tpu.dot_dimension_numbers<[1], [0], [0], [1], [0, 0, 1, 1], [], []>} : vector<48x6xf32>, vector<6x6xf32>, vector<48x6xf32> -> vector<48x6xf32>
    %75 = vector.broadcast %72 : vector<1x6xf32> to vector<48x6xf32>
    %76 = arith.addf %74, %75 : vector<48x6xf32>
    %cst_66 = arith.constant 0.000000e+00 : f32
    %77 = vector.broadcast %cst_66 : f32 to vector<48x6xf32>
    %78 = arith.maximumf %76, %77 : vector<48x6xf32>
    %c0_67 = arith.constant 0 : index
    %c0_68 = arith.constant 0 : index
    %79 = vector.load %arg14[%c0_67, %c0_68] : memref<48x48xf32, #tpu.memory_space<vmem>>, vector<48x48xf32>
    %cst_69 = arith.constant dense<0.000000e+00> : vector<48x6xf32>
    %80 = tpu.matmul %79, %78, %cst_69 {dimension_numbers = #tpu.dot_dimension_numbers<[1], [0], [0], [1], [0, 0, 1, 1], [], []>} : vector<48x48xf32>, vector<48x6xf32>, vector<48x6xf32> -> vector<48x6xf32>
    %81 = arith.subf %78, %80 : vector<48x6xf32>
    %82 = arith.mulf %81, %81 : vector<48x6xf32>
    %cst_70 = arith.constant dense<0.000000e+00> : vector<48x6xf32>
    %83 = tpu.matmul %79, %82, %cst_70 {dimension_numbers = #tpu.dot_dimension_numbers<[1], [0], [0], [1], [0, 0, 1, 1], [], []>} : vector<48x48xf32>, vector<48x6xf32>, vector<48x6xf32> -> vector<48x6xf32>
    %cst_71 = arith.constant 9.99999974E-6 : f32
    %84 = vector.broadcast %cst_71 : f32 to vector<48x6xf32>
    %85 = arith.addf %83, %84 : vector<48x6xf32>
    %86 = math.rsqrt %85 : vector<48x6xf32>
    %87 = arith.mulf %81, %86 : vector<48x6xf32>
    %c0_72 = arith.constant 0 : index
    %c0_73 = arith.constant 0 : index
    %88 = vector.load %arg7[%c0_72, %c0_73] : memref<32x48xf32, #tpu.memory_space<vmem>>, vector<32x48xf32>
    %cst_74 = arith.constant dense<0.000000e+00> : vector<32x6xf32>
    %89 = tpu.matmul %88, %87, %cst_74 {dimension_numbers = #tpu.dot_dimension_numbers<[1], [0], [0], [1], [0, 0, 1, 1], [], []>} : vector<32x48xf32>, vector<48x6xf32>, vector<32x6xf32> -> vector<32x6xf32>
    %c0_75 = arith.constant 0 : index
    %c0_76 = arith.constant 0 : index
    %90 = vector.load %arg8[%c0_75, %c0_76] : memref<32x32xf32, #tpu.memory_space<vmem>>, vector<32x32xf32>
    %c0_77 = arith.constant 0 : index
    %c0_78 = arith.constant 0 : index
    %91 = vector.load %arg29[%c0_77, %c0_78] : memref<6x6xf32, #tpu.memory_space<vmem>>, vector<6x6xf32>
    %c0_79 = arith.constant 0 : index
    %c0_80 = arith.constant 0 : index
    %92 = vector.load %arg30[%c0_79, %c0_80] : memref<1x6xf32, #tpu.memory_space<vmem>>, vector<1x6xf32>
    %cst_81 = arith.constant dense<0.000000e+00> : vector<32x6xf32>
    %93 = tpu.matmul %90, %89, %cst_81 {dimension_numbers = #tpu.dot_dimension_numbers<[1], [0], [0], [1], [0, 0, 1, 1], [], []>} : vector<32x32xf32>, vector<32x6xf32>, vector<32x6xf32> -> vector<32x6xf32>
    %cst_82 = arith.constant dense<0.000000e+00> : vector<32x6xf32>
    %94 = tpu.matmul %93, %91, %cst_82 {dimension_numbers = #tpu.dot_dimension_numbers<[1], [0], [0], [1], [0, 0, 1, 1], [], []>} : vector<32x6xf32>, vector<6x6xf32>, vector<32x6xf32> -> vector<32x6xf32>
    %95 = vector.broadcast %92 : vector<1x6xf32> to vector<32x6xf32>
    %96 = arith.addf %94, %95 : vector<32x6xf32>
    %cst_83 = arith.constant 0.000000e+00 : f32
    %97 = vector.broadcast %cst_83 : f32 to vector<32x6xf32>
    %98 = arith.maximumf %96, %97 : vector<32x6xf32>
    %c0_84 = arith.constant 0 : index
    %c0_85 = arith.constant 0 : index
    %99 = vector.load %arg31[%c0_84, %c0_85] : memref<6x6xf32, #tpu.memory_space<vmem>>, vector<6x6xf32>
    %c0_86 = arith.constant 0 : index
    %c0_87 = arith.constant 0 : index
    %100 = vector.load %arg32[%c0_86, %c0_87] : memref<1x6xf32, #tpu.memory_space<vmem>>, vector<1x6xf32>
    %cst_88 = arith.constant dense<0.000000e+00> : vector<32x6xf32>
    %101 = tpu.matmul %90, %98, %cst_88 {dimension_numbers = #tpu.dot_dimension_numbers<[1], [0], [0], [1], [0, 0, 1, 1], [], []>} : vector<32x32xf32>, vector<32x6xf32>, vector<32x6xf32> -> vector<32x6xf32>
    %cst_89 = arith.constant dense<0.000000e+00> : vector<32x6xf32>
    %102 = tpu.matmul %101, %99, %cst_89 {dimension_numbers = #tpu.dot_dimension_numbers<[1], [0], [0], [1], [0, 0, 1, 1], [], []>} : vector<32x6xf32>, vector<6x6xf32>, vector<32x6xf32> -> vector<32x6xf32>
    %103 = vector.broadcast %100 : vector<1x6xf32> to vector<32x6xf32>
    %104 = arith.addf %102, %103 : vector<32x6xf32>
    %cst_90 = arith.constant 0.000000e+00 : f32
    %105 = vector.broadcast %cst_90 : f32 to vector<32x6xf32>
    %106 = arith.maximumf %104, %105 : vector<32x6xf32>
    %c0_91 = arith.constant 0 : index
    %c0_92 = arith.constant 0 : index
    %107 = vector.load %arg15[%c0_91, %c0_92] : memref<32x32xf32, #tpu.memory_space<vmem>>, vector<32x32xf32>
    %cst_93 = arith.constant dense<0.000000e+00> : vector<32x6xf32>
    %108 = tpu.matmul %107, %106, %cst_93 {dimension_numbers = #tpu.dot_dimension_numbers<[1], [0], [0], [1], [0, 0, 1, 1], [], []>} : vector<32x32xf32>, vector<32x6xf32>, vector<32x6xf32> -> vector<32x6xf32>
    %109 = arith.subf %106, %108 : vector<32x6xf32>
    %110 = arith.mulf %109, %109 : vector<32x6xf32>
    %cst_94 = arith.constant dense<0.000000e+00> : vector<32x6xf32>
    %111 = tpu.matmul %107, %110, %cst_94 {dimension_numbers = #tpu.dot_dimension_numbers<[1], [0], [0], [1], [0, 0, 1, 1], [], []>} : vector<32x32xf32>, vector<32x6xf32>, vector<32x6xf32> -> vector<32x6xf32>
    %cst_95 = arith.constant 9.99999974E-6 : f32
    %112 = vector.broadcast %cst_95 : f32 to vector<32x6xf32>
    %113 = arith.addf %111, %112 : vector<32x6xf32>
    %114 = math.rsqrt %113 : vector<32x6xf32>
    %115 = arith.mulf %109, %114 : vector<32x6xf32>
    %c0_96 = arith.constant 0 : index
    %c0_97 = arith.constant 0 : index
    %116 = vector.load %arg9[%c0_96, %c0_97] : memref<16x32xf32, #tpu.memory_space<vmem>>, vector<16x32xf32>
    %cst_98 = arith.constant dense<0.000000e+00> : vector<16x6xf32>
    %117 = tpu.matmul %116, %115, %cst_98 {dimension_numbers = #tpu.dot_dimension_numbers<[1], [0], [0], [1], [0, 0, 1, 1], [], []>} : vector<16x32xf32>, vector<32x6xf32>, vector<16x6xf32> -> vector<16x6xf32>
    %c0_99 = arith.constant 0 : index
    %c0_100 = arith.constant 0 : index
    %118 = vector.load %arg10[%c0_99, %c0_100] : memref<16x16xf32, #tpu.memory_space<vmem>>, vector<16x16xf32>
    %c0_101 = arith.constant 0 : index
    %c0_102 = arith.constant 0 : index
    %119 = vector.load %arg16[%c0_101, %c0_102] : memref<16x16xf32, #tpu.memory_space<vmem>>, vector<16x16xf32>
    %c0_103 = arith.constant 0 : index
    %c0_104 = arith.constant 0 : index
    %120 = vector.load %arg33[%c0_103, %c0_104] : memref<6x12xf32, #tpu.memory_space<vmem>>, vector<6x12xf32>
    %c0_105 = arith.constant 0 : index
    %c0_106 = arith.constant 0 : index
    %121 = vector.load %arg34[%c0_105, %c0_106] : memref<1x12xf32, #tpu.memory_space<vmem>>, vector<1x12xf32>
    %cst_107 = arith.constant dense<0.000000e+00> : vector<16x6xf32>
    %122 = tpu.matmul %118, %117, %cst_107 {dimension_numbers = #tpu.dot_dimension_numbers<[1], [0], [0], [1], [0, 0, 1, 1], [], []>} : vector<16x16xf32>, vector<16x6xf32>, vector<16x6xf32> -> vector<16x6xf32>
    %cst_108 = arith.constant dense<0.000000e+00> : vector<16x12xf32>
    %123 = tpu.matmul %122, %120, %cst_108 {dimension_numbers = #tpu.dot_dimension_numbers<[1], [0], [0], [1], [0, 0, 1, 1], [], []>} : vector<16x6xf32>, vector<6x12xf32>, vector<16x12xf32> -> vector<16x12xf32>
    %124 = vector.broadcast %121 : vector<1x12xf32> to vector<16x12xf32>
    %125 = arith.addf %123, %124 : vector<16x12xf32>
    %cst_109 = arith.constant 0.000000e+00 : f32
    %126 = vector.broadcast %cst_109 : f32 to vector<16x12xf32>
    %127 = arith.maximumf %125, %126 : vector<16x12xf32>
    %c0_110 = arith.constant 0 : index
    %c0_111 = arith.constant 0 : index
    %128 = vector.load %arg35[%c0_110, %c0_111] : memref<12x12xf32, #tpu.memory_space<vmem>>, vector<12x12xf32>
    %c0_112 = arith.constant 0 : index
    %c0_113 = arith.constant 0 : index
    %129 = vector.load %arg36[%c0_112, %c0_113] : memref<1x12xf32, #tpu.memory_space<vmem>>, vector<1x12xf32>
    %cst_114 = arith.constant dense<0.000000e+00> : vector<16x12xf32>
    %130 = tpu.matmul %118, %127, %cst_114 {dimension_numbers = #tpu.dot_dimension_numbers<[1], [0], [0], [1], [0, 0, 1, 1], [], []>} : vector<16x16xf32>, vector<16x12xf32>, vector<16x12xf32> -> vector<16x12xf32>
    %cst_115 = arith.constant dense<0.000000e+00> : vector<16x12xf32>
    %131 = tpu.matmul %130, %128, %cst_115 {dimension_numbers = #tpu.dot_dimension_numbers<[1], [0], [0], [1], [0, 0, 1, 1], [], []>} : vector<16x12xf32>, vector<12x12xf32>, vector<16x12xf32> -> vector<16x12xf32>
    %132 = vector.broadcast %129 : vector<1x12xf32> to vector<16x12xf32>
    %133 = arith.addf %131, %132 : vector<16x12xf32>
    %cst_116 = arith.constant 0.000000e+00 : f32
    %134 = vector.broadcast %cst_116 : f32 to vector<16x12xf32>
    %135 = arith.maximumf %133, %134 : vector<16x12xf32>
    %cst_117 = arith.constant dense<0.000000e+00> : vector<16x12xf32>
    %136 = tpu.matmul %119, %135, %cst_117 {dimension_numbers = #tpu.dot_dimension_numbers<[1], [0], [0], [1], [0, 0, 1, 1], [], []>} : vector<16x16xf32>, vector<16x12xf32>, vector<16x12xf32> -> vector<16x12xf32>
    %137 = arith.subf %135, %136 : vector<16x12xf32>
    %138 = arith.mulf %137, %137 : vector<16x12xf32>
    %cst_118 = arith.constant dense<0.000000e+00> : vector<16x12xf32>
    %139 = tpu.matmul %119, %138, %cst_118 {dimension_numbers = #tpu.dot_dimension_numbers<[1], [0], [0], [1], [0, 0, 1, 1], [], []>} : vector<16x16xf32>, vector<16x12xf32>, vector<16x12xf32> -> vector<16x12xf32>
    %cst_119 = arith.constant 9.99999974E-6 : f32
    %140 = vector.broadcast %cst_119 : f32 to vector<16x12xf32>
    %141 = arith.addf %139, %140 : vector<16x12xf32>
    %142 = math.rsqrt %141 : vector<16x12xf32>
    %143 = arith.mulf %137, %142 : vector<16x12xf32>
    %c0_120 = arith.constant 0 : index
    %c0_121 = arith.constant 0 : index
    %144 = vector.load %arg37[%c0_120, %c0_121] : memref<12x12xf32, #tpu.memory_space<vmem>>, vector<12x12xf32>
    %c0_122 = arith.constant 0 : index
    %c0_123 = arith.constant 0 : index
    %145 = vector.load %arg38[%c0_122, %c0_123] : memref<1x12xf32, #tpu.memory_space<vmem>>, vector<1x12xf32>
    %cst_124 = arith.constant dense<0.000000e+00> : vector<16x12xf32>
    %146 = tpu.matmul %118, %143, %cst_124 {dimension_numbers = #tpu.dot_dimension_numbers<[1], [0], [0], [1], [0, 0, 1, 1], [], []>} : vector<16x16xf32>, vector<16x12xf32>, vector<16x12xf32> -> vector<16x12xf32>
    %cst_125 = arith.constant dense<0.000000e+00> : vector<16x12xf32>
    %147 = tpu.matmul %146, %144, %cst_125 {dimension_numbers = #tpu.dot_dimension_numbers<[1], [0], [0], [1], [0, 0, 1, 1], [], []>} : vector<16x12xf32>, vector<12x12xf32>, vector<16x12xf32> -> vector<16x12xf32>
    %148 = vector.broadcast %145 : vector<1x12xf32> to vector<16x12xf32>
    %149 = arith.addf %147, %148 : vector<16x12xf32>
    %cst_126 = arith.constant 0.000000e+00 : f32
    %150 = vector.broadcast %cst_126 : f32 to vector<16x12xf32>
    %151 = arith.maximumf %149, %150 : vector<16x12xf32>
    %c0_127 = arith.constant 0 : index
    %c0_128 = arith.constant 0 : index
    %152 = vector.load %arg39[%c0_127, %c0_128] : memref<12x12xf32, #tpu.memory_space<vmem>>, vector<12x12xf32>
    %c0_129 = arith.constant 0 : index
    %c0_130 = arith.constant 0 : index
    %153 = vector.load %arg40[%c0_129, %c0_130] : memref<1x12xf32, #tpu.memory_space<vmem>>, vector<1x12xf32>
    %cst_131 = arith.constant dense<0.000000e+00> : vector<16x12xf32>
    %154 = tpu.matmul %118, %151, %cst_131 {dimension_numbers = #tpu.dot_dimension_numbers<[1], [0], [0], [1], [0, 0, 1, 1], [], []>} : vector<16x16xf32>, vector<16x12xf32>, vector<16x12xf32> -> vector<16x12xf32>
    %cst_132 = arith.constant dense<0.000000e+00> : vector<16x12xf32>
    %155 = tpu.matmul %154, %152, %cst_132 {dimension_numbers = #tpu.dot_dimension_numbers<[1], [0], [0], [1], [0, 0, 1, 1], [], []>} : vector<16x12xf32>, vector<12x12xf32>, vector<16x12xf32> -> vector<16x12xf32>
    %156 = vector.broadcast %153 : vector<1x12xf32> to vector<16x12xf32>
    %157 = arith.addf %155, %156 : vector<16x12xf32>
    %cst_133 = arith.constant 0.000000e+00 : f32
    %158 = vector.broadcast %cst_133 : f32 to vector<16x12xf32>
    %159 = arith.maximumf %157, %158 : vector<16x12xf32>
    %cst_134 = arith.constant dense<0.000000e+00> : vector<16x12xf32>
    %160 = tpu.matmul %119, %159, %cst_134 {dimension_numbers = #tpu.dot_dimension_numbers<[1], [0], [0], [1], [0, 0, 1, 1], [], []>} : vector<16x16xf32>, vector<16x12xf32>, vector<16x12xf32> -> vector<16x12xf32>
    %161 = arith.subf %159, %160 : vector<16x12xf32>
    %162 = arith.mulf %161, %161 : vector<16x12xf32>
    %cst_135 = arith.constant dense<0.000000e+00> : vector<16x12xf32>
    %163 = tpu.matmul %119, %162, %cst_135 {dimension_numbers = #tpu.dot_dimension_numbers<[1], [0], [0], [1], [0, 0, 1, 1], [], []>} : vector<16x16xf32>, vector<16x12xf32>, vector<16x12xf32> -> vector<16x12xf32>
    %cst_136 = arith.constant 9.99999974E-6 : f32
    %164 = vector.broadcast %cst_136 : f32 to vector<16x12xf32>
    %165 = arith.addf %163, %164 : vector<16x12xf32>
    %166 = math.rsqrt %165 : vector<16x12xf32>
    %167 = arith.mulf %161, %166 : vector<16x12xf32>
    %cst_137 = arith.constant dense<0.000000e+00> : vector<16x12xf32>
    %168 = tpu.matmul %119, %167, %cst_137 {dimension_numbers = #tpu.dot_dimension_numbers<[1], [0], [0], [1], [0, 0, 1, 1], [], []>} : vector<16x16xf32>, vector<16x12xf32>, vector<16x12xf32> -> vector<16x12xf32>
    %169 = arith.subf %167, %168 : vector<16x12xf32>
    %c0_138 = arith.constant 0 : index
    %c0_139 = arith.constant 0 : index
    %170 = vector.load %arg17[%c0_138, %c0_139] : memref<2x16xf32, #tpu.memory_space<vmem>>, vector<2x16xf32>
    %171 = arith.mulf %169, %169 : vector<16x12xf32>
    %cst_140 = arith.constant dense<0.000000e+00> : vector<2x12xf32>
    %172 = tpu.matmul %170, %171, %cst_140 {dimension_numbers = #tpu.dot_dimension_numbers<[1], [0], [0], [1], [0, 0, 1, 1], [], []>} : vector<2x16xf32>, vector<16x12xf32>, vector<2x12xf32> -> vector<2x12xf32>
    %173 = math.sqrt %172 : vector<2x12xf32>
    %c0_141 = arith.constant 0 : index
    %c0_142 = arith.constant 0 : index
    %174 = vector.load %arg41[%c0_141, %c0_142] : memref<12x36xf32, #tpu.memory_space<vmem>>, vector<12x36xf32>
    %cst_143 = arith.constant dense<0.000000e+00> : vector<2x36xf32>
    %175 = tpu.matmul %173, %174, %cst_143 {dimension_numbers = #tpu.dot_dimension_numbers<[1], [0], [0], [1], [0, 0, 1, 1], [], []>} : vector<2x12xf32>, vector<12x36xf32>, vector<2x36xf32> -> vector<2x36xf32>
    %c0_144 = arith.constant 0 : index
    %c0_145 = arith.constant 0 : index
    %176 = vector.load %arg42[%c0_144, %c0_145] : memref<1x36xf32, #tpu.memory_space<vmem>>, vector<1x36xf32>
    %177 = vector.broadcast %176 : vector<1x36xf32> to vector<2x36xf32>
    %178 = arith.addf %175, %177 : vector<2x36xf32>
    %cst_146 = arith.constant 0.000000e+00 : f32
    %179 = vector.broadcast %cst_146 : f32 to vector<2x36xf32>
    %180 = arith.maximumf %178, %179 : vector<2x36xf32>
    %c0_147 = arith.constant 0 : index
    %c0_148 = arith.constant 0 : index
    %181 = vector.load %arg43[%c0_147, %c0_148] : memref<36x1xf32, #tpu.memory_space<vmem>>, vector<36x1xf32>
    %cst_149 = arith.constant dense<0.000000e+00> : vector<2x1xf32>
    %182 = tpu.matmul %180, %181, %cst_149 {dimension_numbers = #tpu.dot_dimension_numbers<[1], [0], [0], [1], [0, 0, 1, 1], [], []>} : vector<2x36xf32>, vector<36x1xf32>, vector<2x1xf32> -> vector<2x1xf32>
    %c0_150 = arith.constant 0 : index
    %c0_151 = arith.constant 0 : index
    %183 = vector.load %arg44[%c0_150, %c0_151] : memref<1x1xf32, #tpu.memory_space<vmem>>, vector<1x1xf32>
    %184 = vector.broadcast %183 : vector<1x1xf32> to vector<2x1xf32>
    %185 = arith.addf %182, %184 : vector<2x1xf32>
    %c0_152 = arith.constant 0 : index
    %c0_153 = arith.constant 0 : index
    %186 = vector.load %arg45[%c0_152, %c0_153] : memref<2x1xf32, #tpu.memory_space<vmem>>, vector<2x1xf32>
    tpu.vector_store %arg45[%c0_152, %c0_153], %185 {strides = array<i32>} : memref<2x1xf32, #tpu.memory_space<vmem>>, vector<2x1xf32>,
    return
  }
}

</mosaic_0001>

<bundles_post_ra>
// kernel: very_very_very_small_forward.1
= control target key start
LH: loop header
LB: loop body
LE: loop exit
PB: predicated region body
PF: predicated region fallthrough
CT: control target
= control target key end

     0   :  { %s3335_s6 = smov 1   ;;  %s3336_s10 = smov 11   ;;  %vm200_vm0 = vcmask 392192   ;;  %vm383_vm1 = vcmask 523264   ;;  %s4510_s0 = inlined_call_operand.smem [shape: u32[46], index: -1, kind: input, shape index: {}] }
   0x1   :  { %s1_s5 = sld [smem:[%s4510_s0]]   ;;  %s3337_s14 = smov 12  }
   0x2   :  { %s3391_s9 = sld [smem:[%s4510_s0 + %s3335_s6]]   ;;  %s3338_s18 = smov 2  }
   0x3   :  { %s3407_s13 = sld [smem:[%s4510_s0 + %s3336_s10]]   ;;  %s3339_s22 = smov 19  }
   0x4   :  { %s3429_s17 = sld [smem:[%s4510_s0 + %s3337_s14]]   ;;  %s3340_s26 = smov 18  }
   0x5   :  { %s3669_s21 = sld [smem:[%s4510_s0 + %s3338_s18]]   ;;  %s3341_s30 = smov 3  }
   0x6   :  { %s3816_s25 = sld [smem:[%s4510_s0 + %s3339_s22]]   ;;  %s3342_s4 = smov 21  }
   0x7   :  { %v3393_v0 = vld [vmem:[%s1_s5 + $0x28] sm:$0xff]  ;;  %v3395_v1 = vld [vmem:[%s1_s5 + $0x20] sm:$0xff]  ;;  %v3410_v4 = vld [vmem:[%s1_s5 + $0x18] sm:$0xff]  ;;  %s2932_s29 = sld [smem:[%s4510_s0 + %s3340_s26]]   ;;  %s3343_s8 = smov 20  }
   0x8   :  { %229 = vmatpush.msra.mxu0 %v3393_v0  ;;  %v3399_v2 = vld [vmem:[%s3391_s9 + $0x38] sm:$0xff]  ;;  %v3402_v3 = vld [vmem:[%s3391_s9 + $0x30] sm:$0xff]  ;;  %v3414_v5 = vld [vmem:[%s3391_s9 + $0x28] sm:$0xff]  ;;  %s3833_s3 = sld [smem:[%s4510_s0 + %s3341_s30]]   ;;  %s3344_s12 = smov 22  }
   0x9   :  { %416 = vmatpush.msra.mxu2 %v3399_v2  ;;  %v3417_v6 = vld [vmem:[%s1_s5 + $0x10] sm:$0xff]  ;;  %v3421_v7 = vld [vmem:[%s3391_s9 + $0x20] sm:$0xff]  ;;  %v3424_v8 = vld [vmem:[%s1_s5 + $0x8] sm:$0xff]  ;;  %s2935_s7 = sld [smem:[%s4510_s0 + %s3342_s4]]   ;;  %s3345_s16 = smov 4  }
   0xa   :  { %230 = vmatpush.msra.mxu0 %v3395_v1  ;;  %v3433_v9 = vld [vmem:[%s3391_s9 + $0x18] sm:$0xff]  ;;  %v188_v10 = vld [vmem:[%s1_s5] sm:$0xff]  ;;  %v3438_v11 = vld [vmem:[%s3391_s9 + $0x10] sm:$0xff]  ;;  %s2934_s11 = sld [smem:[%s4510_s0 + %s3343_s8]]   ;;  %s3346_s20 = smov 23  }
   0xb   :  { %417 = vmatpush.msra.mxu2 %v3402_v3  ;;  %v3441_v12 = vld [vmem:[%s3407_s13] sm:$0xff]  ;;  %v3445_v13 = vld [vmem:[%s3391_s9 + $0x8] sm:$0xff]  ;;  %v196_v18 = vld [vmem:[%s3407_s13 + $0x10] sm:$0xff]  ;;  %s3875_s15 = sld [smem:[%s4510_s0 + %s3344_s12]]   ;;  %s3347_s24 = smov 24  }
   0xc   :  { %231 = vmatpush.msra.mxu0 %v3410_v4  ;;  %v3451_v14 = vld [vmem:[%s3391_s9] sm:$0xff]  ;;  %v195_v16 = vld [vmem:[%s3407_s13 + $0x8] sm:$0xff]  ;;  %v3470_v19 = vld [vmem:[%s3429_s17 + $0x10] sm:$0xff]  ;;  %s3901_s19 = sld [smem:[%s4510_s0 + %s3345_s16]]   ;;  %s3348_s28 = smov 13  }
   0xd   :  { %418 = vmatpush.msra.mxu2 %v3414_v5  ;;  %v3455_v15 = vld [vmem:[%s3429_s17] sm:$0xff]  ;;  %v3463_v17 = vld [vmem:[%s3429_s17 + $0x8] sm:$0xff]  ;;  %v3475_v20 = vld [vmem:[%s3407_s13 + $0x18] sm:$0xff]  ;;  %s2937_s23 = sld [smem:[%s4510_s0 + %s3346_s20]]   ;;  %s3349_s2 = smov 5  }
   0xe   :  { %232 = vmatpush.msra.mxu0 %v3417_v6  ;;  %v3480_v21 = vld [vmem:[%s3429_s17 + $0x18] sm:$0xff]  ;;  %v3485_v22 = vld [vmem:[%s3407_s13 + $0x20] sm:$0xff]  ;;  %v3495_v24 = vld [vmem:[%s3407_s13 + $0x28] sm:$0xff]  ;;  %s3930_s27 = sld [smem:[%s4510_s0 + %s3347_s24]]   ;;  %s3350_s6 = smov 6  }
   0xf   :  { %419 = vmatpush.msra.mxu2 %v3421_v7  ;;  %v3490_v23 = vld [vmem:[%s3429_s17 + $0x20] sm:$0xff]  ;;  %v3500_v25 = vld [vmem:[%s3429_s17 + $0x28] sm:$0xff]  ;;  %v3505_v26 = vld [vmem:[%s3429_s17 + $0x30] sm:$0xff]  ;;  %s2927_s1 = sld [smem:[%s4510_s0 + %s3348_s28]]   ;;  %s3351_s10 = smov 25  }
  0x10   :  { %233 = vmatpush.msra.mxu0 %v3424_v8  ;;  %v3510_v27 = vld [vmem:[%s3429_s17 + $0x38] sm:$0xff]  ;;  %s2919_s5 = sld [smem:[%s4510_s0 + %s3349_s2]]   ;;  %s3352_s14 = smov 26  }
  0x11   :  { %420 = vmatpush.msra.mxu2 %v3433_v9  ;;  %s2920_s9 = sld [smem:[%s4510_s0 + %s3350_s6]]   ;;  %s3353_s18 = smov 28  }
  0x12   :  { %234 = vmatpush.msra.mxu0 %v188_v10  ;;  %s2939_s13 = sld [smem:[%s4510_s0 + %s3351_s10]]   ;;  %s3354_s22 = smov 27  }
  0x13   :  { %421 = vmatpush.msra.mxu2 %v3438_v11  ;;  %2960 = vmatmul.msk.f32.vlgmr.msra.gmra.mxu0 %vm200_vm0, %v3441_v12  ;;  %s2940_s17 = sld [smem:[%s4510_s0 + %s3352_s14]]   ;;  %s3355_s26 = smov 14  }
  0x14   :  { %s3356_s30 = smov 7   ;;  %s3357_s4 = smov 8  }
  0x15   :  { %422 = vmatpush.msra.mxu2 %v3445_v13  ;;  %s3358_s8 = smov 30   ;;  %s3359_s12 = smov 29  }
  0x16   :  { %s3360_s16 = smov 32   ;;  %s3361_s20 = smov 31  }
  0x17   :  { %423 = vmatpush.msra.mxu2 %v3451_v14  ;;  %s3362_s24 = smov 15   ;;  %s3363_s28 = smov 9  }
  0x18   :  { %2972 = vmatmul.msk.f32.vlgmr.msra.gmra.mxu2 %vm383_vm1, %v3455_v15  ;;  %s3364_s2 = smov 10   ;;  %s3365_s6 = smov 34  }
  0x19   :  { %s3366_s10 = smov 33   ;;  %s3367_s14 = smov 35  }
  0x1b   :  { %2961 = vmatmul.msk.f32.gmra.mxu0 %vm200_vm0, %v195_v16 }
  0x20   :  { %2973 = vmatmul.msk.f32.gmra.mxu2 %vm383_vm1, %v3463_v17 }
  0x23   :  { %2962 = vmatmul.msk.f32.gmra.mxu0 %vm200_vm0, %v196_v18 }
  0x28   :  { %2974 = vmatmul.msk.f32.gmra.mxu2 %vm383_vm1, %v3470_v19 }
  0x2b   :  { %2963 = vmatmul.msk.f32.gmra.mxu0 %vm200_vm0, %v3475_v20 }
  0x30   :  { %2975 = vmatmul.msk.f32.gmra.mxu2 %vm383_vm1, %v3480_v21 }
  0x33   :  { %2964 = vmatmul.msk.f32.gmra.mxu0 %vm200_vm0, %v3485_v22 }
  0x38   :  { %2976 = vmatmul.msk.f32.gmra.mxu2 %vm383_vm1, %v3490_v23 }
  0x3b   :  { %2965 = vmatmul.msk.f32.gmra.mxu0 %vm200_vm0, %v3495_v24 }
  0x40   :  { %2977 = vmatmul.msk.f32.gmra.mxu2 %vm383_vm1, %v3500_v25 }
  0x48   :  { %2978 = vmatmul.msk.f32.gmra.mxu2 %vm383_vm1, %v3505_v26 }
  0x50   :  { %2979 = vmatmul.msk.f32.gmra.mxu2 %vm383_vm1, %v3510_v27 }
  0x90   :  { %v236_v28 = vpop.f32.mrf.mxu0 }
  0x91   :  { %v3535_v47 = vsub.f32 %v188_v10, %v236_v28 }
  0x93   :  { %v260_v51 = vmul.f32 %v3535_v47, %v3535_v47 }
  0x98   :  { %v239_v29 = vpop.f32.mrf.mxu0 }
  0x99   :  { %v3531_v45 = vsub.f32 %v3424_v8, %v239_v29 }
  0x9b   :  { %v425_v30 = vpop.f32.mrf.mxu2  ;;  %v261_v50 = vmul.f32 %v3531_v45, %v3531_v45 }
  0xa0   :  { %v242_v31 = vpop.f32.mrf.mxu0 }
  0xa1   :  { %v3526_v43 = vsub.f32 %v3417_v6, %v242_v31 }
  0xa3   :  { %v428_v32 = vpop.f32.mrf.mxu2  ;;  %v262_v48 = vmul.f32 %v3526_v43, %v3526_v43 }
  0xa8   :  { %v245_v33 = vpop.f32.mrf.mxu0 }
  0xa9   :  { %v3521_v40 = vsub.f32 %v3410_v4, %v245_v33 }
  0xab   :  { %v431_v34 = vpop.f32.mrf.mxu2  ;;  %v263_v46 = vmul.f32 %v3521_v40, %v3521_v40 }
  0xac   :  { %v3569_v62 = vsub.f32 %v3438_v11, %v431_v34 }
  0xb0   :  { %v248_v35 = vpop.f32.mrf.mxu0 }
  0xb1   :  { %v3515_v38 = vsub.f32 %v3395_v1, %v248_v35 }
  0xb3   :  { %v434_v36 = vpop.f32.mrf.mxu2  ;;  %v264_v44 = vmul.f32 %v3515_v38, %v3515_v38 }
  0xb4   :  { %v3563_v60 = vsub.f32 %v3433_v9, %v434_v36 }
  0xb6   :  { %v460_v1 = vmul.f32 %v3563_v60, %v3563_v60 }
  0xb8   :  { %v251_v37 = vpop.f32.mrf.mxu0 }
  0xb9   :  { %v3518_v39 = vsub.f32 %v3393_v0, %v251_v37  ;;  %v3574_v0 = vsub.f32 %v3445_v13, %v428_v32 }
  0xbb   :  { %v437_v41 = vpop.f32.mrf.mxu2  ;;  %v265_v42 = vmul.f32 %v3518_v39, %v3518_v39  ;;  %v458_v4 = vmul.f32 %v3574_v0, %v3574_v0 }
  0xbc   :  { %v3556_v57 = vsub.f32 %v3421_v7, %v437_v41 }
  0xbd   :  { %276 = vmatpush.msra.mxu1 %v265_v42 }
  0xbe   :  { %v461_v63 = vmul.f32 %v3556_v57, %v3556_v57 }
  0xbf   :  { %277 = vmatpush.msra.mxu1 %v264_v44 }
  0xc1   :  { %278 = vmatpush.msra.mxu1 %v263_v46 }
  0xc3   :  { %v440_v49 = vpop.f32.mrf.mxu2  ;;  %279 = vmatpush.msra.mxu1 %v262_v48 }
  0xc4   :  { %v3550_v55 = vsub.f32 %v3414_v5, %v440_v49 }
  0xc5   :  { %280 = vmatpush.msra.mxu1 %v261_v50 }
  0xc6   :  { %v462_v61 = vmul.f32 %v3550_v55, %v3550_v55 }
  0xc7   :  { %281 = vmatpush.msra.mxu1 %v260_v51 }
  0xc8   :  { %2966 = vmatmul.msk.f32.vlgmr.msra.gmra.mxu1 %vm200_vm0, %v3441_v12 }
  0xcb   :  { %v443_v52 = vpop.f32.mrf.mxu2 }
  0xcc   :  { %v3547_v53 = vsub.f32 %v3402_v3, %v443_v52  ;;  %v459_v3 = vmul.f32 %v3569_v62, %v3569_v62 }
  0xce   :  { %v463_v59 = vmul.f32 %v3547_v53, %v3547_v53 }
  0xd0   :  { %2967 = vmatmul.msk.f32.gmra.mxu1 %vm200_vm0, %v195_v16 }
  0xd3   :  { %v446_v54 = vpop.f32.mrf.mxu2 }
  0xd4   :  { %v3553_v56 = vsub.f32 %v3399_v2, %v446_v54  ;;  %v3579_v2 = vsub.f32 %v3451_v14, %v425_v30 }
  0xd6   :  { %v464_v58 = vmul.f32 %v3553_v56, %v3553_v56  ;;  %v457_v5 = vmul.f32 %v3579_v2, %v3579_v2 }
  0xd8   :  { %473 = vmatpush.msra.mxu3 %v464_v58  ;;  %2968 = vmatmul.msk.f32.gmra.mxu1 %vm200_vm0, %v196_v18 }
  0xda   :  { %474 = vmatpush.msra.mxu3 %v463_v59 }
  0xdc   :  { %475 = vmatpush.msra.mxu3 %v462_v61 }
  0xde   :  { %476 = vmatpush.msra.mxu3 %v461_v63 }
  0xe0   :  { %477 = vmatpush.msra.mxu3 %v460_v1  ;;  %2969 = vmatmul.msk.f32.gmra.mxu1 %vm200_vm0, %v3475_v20 }
  0xe2   :  { %478 = vmatpush.msra.mxu3 %v459_v3 }
  0xe4   :  { %479 = vmatpush.msra.mxu3 %v458_v4 }
  0xe6   :  { %480 = vmatpush.msra.mxu3 %v457_v5 }
  0xe7   :  { %2980 = vmatmul.msk.f32.vlgmr.msra.gmra.mxu3 %vm383_vm1, %v3455_v15 }
  0xe8   :  { %2970 = vmatmul.msk.f32.gmra.mxu1 %vm200_vm0, %v3485_v22 }
  0xef   :  { %2981 = vmatmul.msk.f32.gmra.mxu3 %vm383_vm1, %v3463_v17 }
  0xf0   :  { %2971 = vmatmul.msk.f32.gmra.mxu1 %vm200_vm0, %v3495_v24 }
  0xf7   :  { %2982 = vmatmul.msk.f32.gmra.mxu3 %vm383_vm1, %v3470_v19 }
  0xff   :  { %2983 = vmatmul.msk.f32.gmra.mxu3 %vm383_vm1, %v3480_v21 }
 0x107   :  { %2984 = vmatmul.msk.f32.gmra.mxu3 %vm383_vm1, %v3490_v23 }
 0x10f   :  { %2985 = vmatmul.msk.f32.gmra.mxu3 %vm383_vm1, %v3500_v25 }
 0x117   :  { %2986 = vmatmul.msk.f32.gmra.mxu3 %vm383_vm1, %v3505_v26 }
 0x11f   :  { %2987 = vmatmul.msk.f32.gmra.mxu3 %vm383_vm1, %v3510_v27 }
 0x145   :  { %v283_v6 = vpop.f32.mrf.mxu1 }
 0x146   :  { %v3616_v15 = vadd.f32 1e-05, %v283_v6 }
 0x14d   :  { %v286_v7 = vpop.f32.mrf.mxu1 }
 0x14e   :  { %v3613_v12 = vadd.f32 1e-05, %v286_v7 }
 0x150   :  { %vm317_vm15 = vweird.f32 %v3613_v12 }
 0x155   :  { %v289_v8 = vpop.f32.mrf.mxu1 }
 0x156   :  { %v3611_v11 = vadd.f32 1e-05, %v289_v8 }
 0x158   :  { %vm327_vm12 = vweird.f32 %v3611_v11 }
 0x15d   :  { %v292_v9 = vpop.f32.mrf.mxu1 }
 0x15e   :  { %v3609_v10 = vadd.f32 1e-05, %v292_v9 }
 0x160   :  { %3257 = vrsqrt.f32 %v3609_v10  ;;  %vm337_vm10 = vweird.f32 %v3609_v10 }
 0x161   :  { %3259 = vrsqrt.f32 %v3611_v11 }
 0x165   :  { %v295_v13 = vpop.f32.mrf.mxu1 }
 0x166   :  { %v296_v14 = vadd.f32 1e-05, %v295_v13  ;;  %v3623_v17 = vpop.eup %3257 }
 0x167   :  { %v3625_v18 = vpop.eup %3259  ;;  %v332_v23 = vmul.f32 %v3623_v17, %v3609_v10  ;;  %vm338_vm7 = vweird.f32 %v3623_v17 }
 0x168   :  { %3261 = vrsqrt.f32 %v296_v14  ;;  %v322_v26 = vmul.f32 %v3625_v18, %v3611_v11  ;;  %vm347_vm4 = vweird.f32 %v296_v14  ;;  %vm328_vm9 = vweird.f32 %v3625_v18  ;;  %vm339_vm11 = vmor %vm337_vm10, %vm338_vm7 }
 0x169   :  { %3263 = vrsqrt.f32 %v3613_v12  ;;  %v333_v30 = vmul.f32 %v3623_v17, %v332_v23  ;;  %vm329_vm14 = vmor %vm327_vm12, %vm328_vm9 }
 0x16a   :  { %v3620_v16 = vpop.f32.mrf.mxu3  ;;  %3265 = vrsqrt.f32 %v3616_v15  ;;  %v323_v32 = vmul.f32 %v3625_v18, %v322_v26  ;;  %v596_v26 = vld [vmem:[%s3669_s21 + $0x10] sm:$0xff] }
 0x16b   :  { %v334_v36 = vmul.f32 0.5, %v333_v30 }
 0x16c   :  { %v324_v42 = vmul.f32 0.5, %v323_v32 }
 0x16d   :  { %v298_v19 = vpop.f32.mrf.mxu1  ;;  %v335_v51 = vsub.f32 1.5, %v334_v36 }
 0x16e   :  { %v3262_v20 = vpop.eup %3261  ;;  %v299_v21 = vadd.f32 1e-05, %v298_v19  ;;  %v325_v59 = vsub.f32 1.5, %v324_v42 }
 0x16f   :  { %v3627_v22 = vpop.eup %3263  ;;  %v342_v24 = vmul.f32 %v3262_v20, %v296_v14  ;;  %vm348_vm2 = vweird.f32 %v3262_v20  ;;  %v336_v3 = vmul.f32 %v3623_v17, %v335_v51 }
 0x170   :  { %3267 = vrsqrt.f32 %v299_v21  ;;  %v3631_v25 = vpop.eup %3265  ;;  %v312_v28 = vmul.f32 %v3627_v22, %v3613_v12  ;;  %vm357_vm5 = vweird.f32 %v299_v21  ;;  %vm3647_vm6 = vmor %vm347_vm4, %vm348_vm2  ;;  %v326_v7 = vmul.f32 %v3625_v18, %v325_v59 }
 0x171   :  { %v343_v27 = vmul.f32 %v3262_v20, %v342_v24  ;;  %v302_v31 = vmul.f32 %v3631_v25, %v3616_v15  ;;  %v340_v13 = vsel %vm339_vm11, %v3623_v17, %v336_v3  ;;  %vm318_vm13 = vweird.f32 %v3627_v22  ;;  %v598_v3 = vld [vmem:[%s3669_s21 + $0x20] sm:$0xff] }
 0x172   :  { %v3637_v29 = vpop.f32.mrf.mxu3  ;;  %v313_v35 = vmul.f32 %v3627_v22, %v312_v28  ;;  %vm308_vm2 = vweird.f32 %v3631_v25  ;;  %vm307_vm4 = vweird.f32 %v3616_v15  ;;  %v595_v15 = vld [vmem:[%s3669_s21 + $0x8] sm:$0xff] }
 0x173   :  { %v344_v33 = vmul.f32 0.5, %v343_v27  ;;  %v303_v41 = vmul.f32 %v3631_v25, %v302_v31  ;;  %v3700_v27 = vadd.f32 1e-05, %v3637_v29  ;;  %v3708_v31 = vadd.f32 1e-05, %v3620_v16 }
 0x174   :  { %v314_v48 = vmul.f32 0.5, %v313_v35 }
 0x175   :  { %v345_v46 = vsub.f32 1.5, %v344_v33  ;;  %v304_v52 = vmul.f32 0.5, %v303_v41 }
 0x176   :  { %v3268_v34 = vpop.eup %3267  ;;  %v315_v61 = vsub.f32 1.5, %v314_v48 }
 0x177   :  { %v352_v37 = vmul.f32 %v3268_v34, %v299_v21  ;;  %vm358_vm3 = vweird.f32 %v3268_v34  ;;  %v346_v58 = vmul.f32 %v3262_v20, %v345_v46  ;;  %v305_v4 = vsub.f32 1.5, %v304_v52 }
 0x178   :  { %vm359_vm8 = vmor %vm357_vm5, %vm358_vm3  ;;  %v316_v14 = vmul.f32 %v3627_v22, %v315_v61 }
 0x179   :  { %v353_v44 = vmul.f32 %v3268_v34, %v352_v37  ;;  %v350_v6 = vsel %vm3647_vm6, %v3262_v20, %v346_v58  ;;  %v306_v10 = vmul.f32 %v3631_v25, %v305_v4  ;;  %vm319_vm3 = vmor %vm317_vm15, %vm318_vm13  ;;  %v597_v37 = vld [vmem:[%s3669_s21 + $0x18] sm:$0xff] }
 0x17a   :  { %v3645_v49 = vpop.f32.mrf.mxu3  ;;  %v365_v19 = vmul.f32 %v350_v6, %v3515_v38  ;;  %v364_v38 = vmul.f32 %v340_v13, %v3521_v40  ;;  %v320_v11 = vsel %vm319_vm3, %v3627_v22, %v316_v14  ;;  %vm309_vm5 = vmor %vm307_vm4, %vm308_vm2  ;;  %v594_v40 = vld [vmem:[%s3669_s21] sm:$0xff] }
 0x17b   :  { %v354_v50 = vmul.f32 0.5, %v353_v44  ;;  %v310_v12 = vsel %vm309_vm5, %v3631_v25, %v306_v10  ;;  %v362_v20 = vmul.f32 %v320_v11, %v3531_v45  ;;  %v3695_v25 = vadd.f32 1e-05, %v3645_v49 }
 0x17c   :  { %v361_v21 = vmul.f32 %v310_v12, %v3535_v47 }
 0x17d   :  { %v355_v54 = vsub.f32 1.5, %v354_v50 }
 0x17f   :  { %v356_v63 = vmul.f32 %v3268_v34, %v355_v54 }
 0x181   :  { %v360_v5 = vsel %vm359_vm8, %v3268_v34, %v356_v63 }
 0x182   :  { %v491_v8 = vpop.f32.mrf.mxu3  ;;  %v366_v9 = vmul.f32 %v360_v5, %v3518_v39  ;;  %v330_v39 = vsel %vm329_vm14, %v3625_v18, %v326_v7 }
 0x183   :  { %v363_v17 = vmul.f32 %v330_v39, %v3526_v43  ;;  %v3690_v24 = vadd.f32 1e-05, %v491_v8 }
 0x184   :  { %638 = vmatpush.msrb.mxu0 %v366_v9 }
 0x185   :  { %vm542_vm3 = vweird.f32 %v3690_v24 }
 0x186   :  { %639 = vmatpush.msrb.mxu0 %v365_v19 }
 0x188   :  { %640 = vmatpush.msrb.mxu0 %v364_v38 }
 0x18a   :  { %v494_v18 = vpop.f32.mrf.mxu3  ;;  %641 = vmatpush.msrb.mxu0 %v363_v17 }
 0x18b   :  { %v3687_v43 = vadd.f32 1e-05, %v494_v18 }
 0x18c   :  { %642 = vmatpush.msrb.mxu0 %v362_v20 }
 0x18d   :  { %vm552_vm13 = vweird.f32 %v3687_v43 }
 0x18e   :  { %643 = vmatpush.msrb.mxu0 %v361_v21 }
 0x18f   :  { %2988 = vmatmul.msk.f32.vlgmr.msrb.gmra.mxu0 %vm200_vm0, %v594_v40 }
 0x192   :  { %v497_v22 = vpop.f32.mrf.mxu3 }
 0x193   :  { %v3685_v23 = vadd.f32 1e-05, %v497_v22  ;;  %v599_v22 = vld [vmem:[%s3669_s21 + $0x28] sm:$0xff] }
 0x195   :  { %3269 = vrsqrt.f32 %v3685_v23  ;;  %vm562_vm8 = vweird.f32 %v3685_v23 }
 0x196   :  { %3271 = vrsqrt.f32 %v3687_v43 }
 0x197   :  { %2989 = vmatmul.msk.f32.gmra.mxu0 %vm200_vm0, %v595_v15  ;;  %3273 = vrsqrt.f32 %v3690_v24 }
 0x19a   :  { %v500_v45 = vpop.f32.mrf.mxu3 }
 0x19b   :  { %v501_v47 = vadd.f32 1e-05, %v500_v45  ;;  %v3702_v28 = vpop.eup %3269 }
 0x19c   :  { %v3705_v30 = vpop.eup %3271  ;;  %v557_v33 = vmul.f32 %v3702_v28, %v3685_v23  ;;  %vm563_vm9 = vweird.f32 %v3702_v28 }
 0x19d   :  { %3275 = vrsqrt.f32 %v501_v47  ;;  %v3711_v32 = vpop.eup %3273  ;;  %v547_v35 = vmul.f32 %v3705_v30, %v3687_v43  ;;  %vm572_vm6 = vweird.f32 %v501_v47  ;;  %vm3757_vm14 = vmor %vm562_vm8, %vm563_vm9  ;;  %vm553_vm15 = vweird.f32 %v3705_v30  ;;  %v885_v43 = vld [vmem:[%s2935_s7] sm:$0x7]  ;;  %s2922_s7 = sld [smem:[%s4510_s0 + %s3357_s4]]   ;;  %s3372_s4 = smov 39  }
 0x19e   :  { %3277 = vrsqrt.f32 %v3695_v25  ;;  %v537_v41 = vmul.f32 %v3711_v32, %v3690_v24  ;;  %v558_v44 = vmul.f32 %v3702_v28, %v557_v33  ;;  %vm543_vm4 = vweird.f32 %v3711_v32  ;;  %vm3771_vm5 = vmor %vm552_vm13, %vm553_vm15 }
 0x19f   :  { %2990 = vmatmul.msk.f32.gmra.mxu0 %vm200_vm0, %v596_v26  ;;  %3279 = vrsqrt.f32 %v3700_v27  ;;  %v548_v48 = vmul.f32 %v3705_v30, %v547_v35  ;;  %vm522_vm9 = vweird.f32 %v3700_v27 }
 0x1a0   :  { %3281 = vrsqrt.f32 %v3708_v31  ;;  %v538_v52 = vmul.f32 %v3711_v32, %v537_v41  ;;  %v559_v58 = vmul.f32 0.5, %v558_v44 }
 0x1a1   :  { %v549_v63 = vmul.f32 0.5, %v548_v48 }
 0x1a2   :  { %v503_v29 = vpop.f32.mrf.mxu3  ;;  %v539_v7 = vmul.f32 0.5, %v538_v52  ;;  %v560_v9 = vsub.f32 1.5, %v559_v58 }
 0x1a3   :  { %v3716_v34 = vpop.eup %3275  ;;  %v504_v36 = vadd.f32 1e-05, %v503_v29  ;;  %v550_v14 = vsub.f32 1.5, %v549_v63 }
 0x1a4   :  { %v567_v16 = vmul.f32 %v3716_v34, %v501_v47  ;;  %v3725_v42 = vpop.eup %3277  ;;  %vm573_vm7 = vweird.f32 %v3716_v34  ;;  %v561_v12 = vmul.f32 %v3702_v28, %v560_v9  ;;  %v540_v20 = vsub.f32 1.5, %v539_v7  ;;  %v3244_v7 = vld [vmem:[%s3816_s25] ss:$0 sm:$0xff]  ;;  %s2941_s25 = sld [smem:[%s4510_s0 + %s3354_s22]]   ;;  %s3369_s22 = smov 16  }
 0x1a5   :  { %3283 = vrsqrt.f32 %v504_v36  ;;  %v3731_v49 = vpop.eup %3279  ;;  %v527_v51 = vmul.f32 %v3725_v42, %v3695_v25  ;;  %vm582_vm10 = vweird.f32 %v504_v36  ;;  %vm3751_vm12 = vmor %vm572_vm6, %vm573_vm7  ;;  %v551_v40 = vmul.f32 %v3705_v30, %v550_v14  ;;  %v752_v14 = vld [vmem:[%s3833_s3 + $0x10] sm:$0xff]  ;;  %v754_v47 = vld [vmem:[%s3833_s3 + $0x20] sm:$0xff] }
 0x1a6   :  { %v568_v46 = vmul.f32 %v3716_v34, %v567_v16  ;;  %v3736_v54 = vpop.eup %3281  ;;  %v517_v61 = vmul.f32 %v3731_v49, %v3700_v27  ;;  %v565_v33 = vsel %vm3757_vm14, %v3702_v28, %v561_v12  ;;  %v541_v29 = vmul.f32 %v3711_v32, %v540_v20  ;;  %vm3782_vm6 = vmor %vm542_vm3, %vm543_vm4  ;;  %v753_v20 = vld [vmem:[%s3833_s3 + $0x18] sm:$0xff] }
 0x1a7   :  { %2991 = vmatmul.msk.f32.gmra.mxu0 %vm200_vm0, %v597_v37  ;;  %v507_v5 = vmul.f32 %v3736_v54, %v3708_v31  ;;  %v528_v6 = vmul.f32 %v3725_v42, %v527_v51  ;;  %vm532_vm7 = vweird.f32 %v3695_v25  ;;  %vm533_vm8 = vweird.f32 %v3725_v42 }
 0x1a8   :  { %v569_v50 = vmul.f32 0.5, %v568_v46  ;;  %v518_v13 = vmul.f32 %v3731_v49, %v517_v61  ;;  %v591_v16 = vmul.f32 %v565_v33, %v3550_v55  ;;  %vm513_vm13 = vweird.f32 %v3736_v54  ;;  %v756_v33 = vld [vmem:[%s3833_s3 + $0x30] sm:$0xff] }
 0x1a9   :  { %v508_v10 = vmul.f32 %v3736_v54, %v507_v5  ;;  %v529_v38 = vmul.f32 0.5, %v528_v6  ;;  %vm672_vm3 = vcmask 15360   ;;  %v751_v6 = vld [vmem:[%s3833_s3 + $0x8] sm:$0xff]  ;;  %vm917_vm4 = vcmask 1042432  }
 0x1aa   :  { %v570_v4 = vsub.f32 1.5, %v569_v50  ;;  %v519_v21 = vmul.f32 0.5, %v518_v13  ;;  %3025 = vmatpush.msk.msra.mxu0 %vm917_vm4, %v885_v43 }
 0x1ab   :  { %v3284_v59 = vpop.eup %3283  ;;  %v509_v45 = vmul.f32 0.5, %v508_v10  ;;  %v530_v35 = vsub.f32 1.5, %v529_v38 }
 0x1ac   :  { %v577_v1 = vmul.f32 %v3284_v59, %v504_v36  ;;  %vm583_vm11 = vweird.f32 %v3284_v59  ;;  %v571_v39 = vmul.f32 %v3716_v34, %v570_v4  ;;  %v555_v36 = vsel %vm3771_vm5, %v3705_v30, %v551_v40  ;;  %v600_v30 = vld [vmem:[%s3669_s21 + $0x30] sm:$0xff]  ;;  %v750_v4 = vld [vmem:[%s3833_s3] sm:$0xff] }
 0x1ad   :  { %vm584_vm2 = vmor %vm582_vm10, %vm583_vm11  ;;  %v520_v28 = vsub.f32 1.5, %v519_v21  ;;  %v531_v37 = vmul.f32 %v3725_v42, %v530_v35  ;;  %vm523_vm10 = vweird.f32 %v3731_v49  ;;  %v590_v25 = vmul.f32 %v555_v36, %v3556_v57  ;;  %v758_v35 = vld [vmem:[%s3833_s3 + $0x40] sm:$0xff] }
 0x1ae   :  { %v578_v8 = vmul.f32 %v3284_v59, %v577_v1  ;;  %v575_v23 = vsel %vm3751_vm12, %v3716_v34, %v571_v39  ;;  %vm534_vm11 = vmor %vm532_vm7, %vm533_vm8  ;;  %vm512_vm12 = vweird.f32 %v3708_v31  ;;  %v837_v36 = vld [vmem:[%s2934_s11] sm:$0x7]  ;;  %vm886_vm5 = vcmask 23552   ;;  %s2944_s11 = sld [smem:[%s4510_s0 + %s3358_s8]]   ;;  %s3373_s8 = smov 40  }
 0x1af   :  { %2992 = vmatmul.msk.f32.gmra.mxu0 %vm200_vm0, %v598_v3  ;;  %v592_v34 = vmul.f32 %v575_v23, %v3547_v53  ;;  %v545_v53 = vsel %vm3782_vm6, %v3711_v32, %v541_v29  ;;  %v521_v41 = vmul.f32 %v3731_v49, %v520_v28  ;;  %vm524_vm14 = vmor %vm522_vm9, %vm523_vm10  ;;  %v535_v27 = vsel %vm534_vm11, %v3725_v42, %v531_v37  ;;  %v757_v29 = vld [vmem:[%s3833_s3 + $0x38] sm:$0xff] }
 0x1b0   :  { %v579_v19 = vmul.f32 0.5, %v578_v8  ;;  %v589_v55 = vmul.f32 %v545_v53, %v3563_v60  ;;  %vm514_vm15 = vmor %vm512_vm12, %vm513_vm13  ;;  %v588_v31 = vmul.f32 %v535_v27, %v3569_v62  ;;  %v601_v60 = vld [vmem:[%s3669_s21 + $0x38] sm:$0xff]  ;;  %v602_v62 = vld [vmem:[%s2932_s29] sm:$0x3]  ;;  %vm1196_vm6 = vcmask 1045504   ;;  %s2942_s21 = sld [smem:[%s4510_s0 + %s3353_s18]]   ;;  %s3368_s18 = smov 36  }
 0x1b1   :  { %v525_v57 = vsel %vm524_vm14, %v3731_v49, %v521_v41  ;;  %vm1165_vm7 = vcmask 48128   ;;  %s2928_s29 = sld [smem:[%s4510_s0 + %s3355_s26]]   ;;  %s3370_s26 = smov 37  }
 0x1b2   :  { %v580_v17 = vsub.f32 1.5, %v579_v19  ;;  %v587_v46 = vmul.f32 %v525_v57, %v3574_v0 }
 0x1b4   :  { %v581_v15 = vmul.f32 %v3284_v59, %v580_v17 }
 0x1b6   :  { %v585_v26 = vsel %vm584_vm2, %v3284_v59, %v581_v15  ;;  %vm697_vm2 = vcmask 1041408  }
 0x1b7   :  { %2993 = vmatmul.msk.f32.gmra.mxu0 %vm200_vm0, %v599_v22  ;;  %v593_v24 = vmul.f32 %v585_v26, %v3553_v56  ;;  %v510_v56 = vsub.f32 1.5, %v509_v45  ;;  %2996 = vmatpush.msk.msrb.mxu1 %vm697_vm2, %v602_v62  ;;  %v755_v26 = vld [vmem:[%s3833_s3 + $0x28] sm:$0xff] }
 0x1b9   :  { %846 = vmatpush.msrb.mxu3 %v593_v24  ;;  %v511_v32 = vmul.f32 %v3736_v54, %v510_v56  ;;  %v759_v24 = vld [vmem:[%s3833_s3 + $0x48] sm:$0xff]  ;;  %3036 = vmatpush.msk.msra.mxu1 %vm917_vm4, %v837_v36  ;;  %s2921_s3 = sld [smem:[%s4510_s0 + %s3356_s30]]   ;;  %s3371_s30 = smov 38  }
 0x1bb   :  { %847 = vmatpush.msrb.mxu3 %v592_v34  ;;  %v515_v44 = vsel %vm514_vm15, %v3736_v54, %v511_v32 }
 0x1bc   :  { %v586_v42 = vmul.f32 %v515_v44, %v3579_v2 }
 0x1bd   :  { %848 = vmatpush.msrb.mxu3 %v591_v16 }
 0x1bf   :  { %849 = vmatpush.msrb.mxu3 %v590_v25  ;;  %2994 = vmatmul.msk.f32.gmra.mxu0 %vm200_vm0, %v600_v30 }
 0x1c1   :  { %850 = vmatpush.msrb.mxu3 %v589_v55 }
 0x1c3   :  { %851 = vmatpush.msrb.mxu3 %v588_v31 }
 0x1c5   :  { %852 = vmatpush.msrb.mxu3 %v587_v46 }
 0x1c7   :  { %853 = vmatpush.msrb.mxu3 %v586_v42  ;;  %2995 = vmatmul.msk.f32.gmra.mxu0 %vm200_vm0, %v601_v60 }
 0x1c8   :  { %3015 = vmatmul.msk.f32.vlgmr.msrb.gmra.mxu3 %vm383_vm1, %v750_v4 }
 0x1d0   :  { %3016 = vmatmul.msk.f32.gmra.mxu3 %vm383_vm1, %v751_v6 }
 0x1d8   :  { %3017 = vmatmul.msk.f32.gmra.mxu3 %vm383_vm1, %v752_v14 }
 0x1e0   :  { %3018 = vmatmul.msk.f32.gmra.mxu3 %vm383_vm1, %v753_v20 }
 0x1e8   :  { %3019 = vmatmul.msk.f32.gmra.mxu3 %vm383_vm1, %v754_v47 }
 0x1f0   :  { %3020 = vmatmul.msk.f32.gmra.mxu3 %vm383_vm1, %v755_v26 }
 0x1f8   :  { %3021 = vmatmul.msk.f32.gmra.mxu3 %vm383_vm1, %v756_v33 }
 0x200   :  { %3022 = vmatmul.msk.f32.gmra.mxu3 %vm383_vm1, %v757_v29 }
 0x208   :  { %3023 = vmatmul.msk.f32.gmra.mxu3 %vm383_vm1, %v758_v35 }
 0x20c   :  { %v645_v0 = vpop.f32.mrf.mxu0 }
 0x20d   :  { %2997 = vmatmul.msk.f32.vlgmr.msrb.gmra.mxu1 %vm672_vm3, %v645_v0 }
 0x210   :  { %3024 = vmatmul.msk.f32.gmra.mxu3 %vm383_vm1, %v759_v24 }
 0x214   :  { %v648_v2 = vpop.f32.mrf.mxu0 }
 0x215   :  { %2998 = vmatmul.msk.f32.gmra.mxu1 %vm672_vm3, %v648_v2 }
 0x21c   :  { %v651_v48 = vpop.f32.mrf.mxu0 }
 0x21d   :  { %2999 = vmatmul.msk.f32.gmra.mxu1 %vm672_vm3, %v651_v48 }
 0x224   :  { %v654_v49 = vpop.f32.mrf.mxu0 }
 0x225   :  { %3000 = vmatmul.msk.f32.gmra.mxu1 %vm672_vm3, %v654_v49 }
 0x22c   :  { %v657_v50 = vpop.f32.mrf.mxu0 }
 0x22d   :  { %3001 = vmatmul.msk.f32.gmra.mxu1 %vm672_vm3, %v657_v50 }
 0x234   :  { %v660_v51 = vpop.f32.mrf.mxu0 }
 0x235   :  { %3002 = vmatmul.msk.f32.gmra.mxu1 %vm672_vm3, %v660_v51 }
 0x23c   :  { %v663_v52 = vpop.f32.mrf.mxu0 }
 0x23d   :  { %3003 = vmatmul.msk.f32.gmra.mxu1 %vm672_vm3, %v663_v52 }
 0x244   :  { %v666_v54 = vpop.f32.mrf.mxu0 }
 0x245   :  { %3004 = vmatmul.msk.f32.gmra.mxu1 %vm672_vm3, %v666_v54 }
 0x24b   :  { %v855_v34 = vpop.f32.mrf.mxu3 }
 0x24c   :  { %3026 = vmatmul.msk.f32.vlgmr.msra.gmra.mxu0 %vm886_vm5, %v855_v34 }
 0x253   :  { %v858_v28 = vpop.f32.mrf.mxu3 }
 0x254   :  { %3027 = vmatmul.msk.f32.gmra.mxu0 %vm886_vm5, %v858_v28 }
 0x25b   :  { %v861_v16 = vpop.f32.mrf.mxu3 }
 0x25c   :  { %3028 = vmatmul.msk.f32.gmra.mxu0 %vm886_vm5, %v861_v16 }
 0x263   :  { %v864_v56 = vpop.f32.mrf.mxu3 }
 0x264   :  { %3029 = vmatmul.msk.f32.gmra.mxu0 %vm886_vm5, %v864_v56 }
 0x26b   :  { %v867_v37 = vpop.f32.mrf.mxu3 }
 0x26c   :  { %3030 = vmatmul.msk.f32.gmra.mxu0 %vm886_vm5, %v867_v37 }
 0x273   :  { %v870_v30 = vpop.f32.mrf.mxu3 }
 0x274   :  { %3031 = vmatmul.msk.f32.gmra.mxu0 %vm886_vm5, %v870_v30  ;;  %v1072_v30 = vld [vmem:[%s3901_s19] sm:$0xff] }
 0x27b   :  { %v873_v55 = vpop.f32.mrf.mxu3 }
 0x27c   :  { %3032 = vmatmul.msk.f32.gmra.mxu0 %vm886_vm5, %v873_v55  ;;  %v1074_v55 = vld [vmem:[%s3901_s19 + $0x10] sm:$0xff] }
 0x283   :  { %v876_v32 = vpop.f32.mrf.mxu3 }
 0x284   :  { %3033 = vmatmul.msk.f32.gmra.mxu0 %vm886_vm5, %v876_v32  ;;  %v1076_v32 = vld [vmem:[%s3901_s19 + $0x20] sm:$0xff] }
 0x28a   :  { %v718_v58 = vpop.f32.mrf.mxu1 }
 0x28b   :  { %v719_v22 = vadd.f32 %v3244_v7, %v718_v58  ;;  %v879_v31 = vpop.f32.mrf.mxu3 }
 0x28c   :  { %3034 = vmatmul.msk.f32.gmra.mxu0 %vm886_vm5, %v879_v31  ;;  %v1082_v31 = vld [vmem:[%s2937_s23] sm:$0x3f]  ;;  %s2945_s23 = sld [smem:[%s4510_s0 + %s3361_s20]]   ;;  %s3376_s20 = smov 41  }
 0x28d   :  { %v742_v45 = vmax.f32 %v719_v22, 0.0  ;;  %3057 = vmatpush.msk.msra.mxu3 %vm1196_vm6, %v1082_v31 }
 0x292   :  { %v721_v59 = vpop.f32.mrf.mxu1 }
 0x293   :  { %v722_v21 = vadd.f32 %v3244_v7, %v721_v59  ;;  %v882_v46 = vpop.f32.mrf.mxu3 }
 0x294   :  { %3035 = vmatmul.msk.f32.gmra.mxu0 %vm886_vm5, %v882_v46  ;;  %v1079_v46 = vld [vmem:[%s3901_s19 + $0x38] sm:$0xff] }
 0x295   :  { %v743_v23 = vmax.f32 %v722_v21, 0.0 }
 0x29a   :  { %v724_v61 = vpop.f32.mrf.mxu1 }
 0x29b   :  { %v725_v12 = vadd.f32 %v3244_v7, %v724_v61 }
 0x29d   :  { %v744_v15 = vmax.f32 %v725_v12, 0.0 }
 0x2a2   :  { %v727_v63 = vpop.f32.mrf.mxu1 }
 0x2a3   :  { %v728_v11 = vadd.f32 %v3244_v7, %v727_v63 }
 0x2a5   :  { %v745_v40 = vmax.f32 %v728_v11, 0.0 }
 0x2aa   :  { %v730_v1 = vpop.f32.mrf.mxu1 }
 0x2ab   :  { %v731_v10 = vadd.f32 %v3244_v7, %v730_v1 }
 0x2ad   :  { %v746_v18 = vmax.f32 %v731_v10, 0.0 }
 0x2b2   :  { %v733_v3 = vpop.f32.mrf.mxu1 }
 0x2b3   :  { %v734_v19 = vadd.f32 %v3244_v7, %v733_v3 }
 0x2b5   :  { %v747_v17 = vmax.f32 %v734_v19, 0.0  ;;  %v3245_v19 = vld [vmem:[%s3875_s15] ss:$0 sm:$0xff]  ;;  %s2943_s15 = sld [smem:[%s4510_s0 + %s3359_s12]]   ;;  %s3374_s12 = smov 17  }
 0x2ba   :  { %v736_v5 = vpop.f32.mrf.mxu1 }
 0x2bb   :  { %v737_v9 = vadd.f32 %v3244_v7, %v736_v5 }
 0x2bd   :  { %v748_v38 = vmax.f32 %v737_v9, 0.0 }
 0x2c2   :  { %v739_v8 = vpop.f32.mrf.mxu1 }
 0x2c3   :  { %v740_v13 = vadd.f32 %v3244_v7, %v739_v8 }
 0x2c5   :  { %v749_v39 = vmax.f32 %v740_v13, 0.0 }
 0x2c7   :  { %798 = vmatpush.msrb.mxu2 %v749_v39 }
 0x2c9   :  { %799 = vmatpush.msrb.mxu2 %v748_v38  ;;  %v938_v2 = vpop.f32.mrf.mxu0 }
 0x2cb   :  { %800 = vmatpush.msrb.mxu2 %v747_v17 }
 0x2cd   :  { %801 = vmatpush.msrb.mxu2 %v746_v18 }
 0x2cf   :  { %802 = vmatpush.msrb.mxu2 %v745_v40 }
 0x2d1   :  { %803 = vmatpush.msrb.mxu2 %v744_v15  ;;  %v941_v48 = vpop.f32.mrf.mxu0 }
 0x2d3   :  { %804 = vmatpush.msrb.mxu2 %v743_v23 }
 0x2d5   :  { %805 = vmatpush.msrb.mxu2 %v742_v45 }
 0x2d6   :  { %3005 = vmatmul.msk.f32.vlgmr.msrb.gmra.mxu2 %vm383_vm1, %v750_v4 }
 0x2d9   :  { %v944_v50 = vpop.f32.mrf.mxu0 }
 0x2de   :  { %3006 = vmatmul.msk.f32.gmra.mxu2 %vm383_vm1, %v751_v6 }
 0x2e1   :  { %v947_v52 = vpop.f32.mrf.mxu0 }
 0x2e6   :  { %3007 = vmatmul.msk.f32.gmra.mxu2 %vm383_vm1, %v752_v14 }
 0x2e9   :  { %v950_v58 = vpop.f32.mrf.mxu0 }
 0x2ee   :  { %3008 = vmatmul.msk.f32.gmra.mxu2 %vm383_vm1, %v753_v20 }
 0x2f1   :  { %v953_v61 = vpop.f32.mrf.mxu0 }
 0x2f6   :  { %3009 = vmatmul.msk.f32.gmra.mxu2 %vm383_vm1, %v754_v47 }
 0x2f9   :  { %v956_v3 = vpop.f32.mrf.mxu0 }
 0x2fe   :  { %3010 = vmatmul.msk.f32.gmra.mxu2 %vm383_vm1, %v755_v26 }
 0x301   :  { %v959_v5 = vpop.f32.mrf.mxu0 }
 0x306   :  { %3011 = vmatmul.msk.f32.gmra.mxu2 %vm383_vm1, %v756_v33 }
 0x309   :  { %v962_v7 = vpop.f32.mrf.mxu0 }
 0x30e   :  { %3012 = vmatmul.msk.f32.gmra.mxu2 %vm383_vm1, %v757_v29 }
 0x311   :  { %v965_v9 = vpop.f32.mrf.mxu0 }
 0x316   :  { %3013 = vmatmul.msk.f32.gmra.mxu2 %vm383_vm1, %v758_v35 }
 0x31e   :  { %3014 = vmatmul.msk.f32.gmra.mxu2 %vm383_vm1, %v759_v24  ;;  %vm1084_vm1 = vcmask 654336  }
 0x359   :  { %v807_v53 = vpop.f32.mrf.mxu2 }
 0x35a   :  { %3037 = vmatmul.msk.f32.vlgmr.msra.gmra.mxu1 %vm886_vm5, %v807_v53 }
 0x361   :  { %v810_v25 = vpop.f32.mrf.mxu2 }
 0x362   :  { %3038 = vmatmul.msk.f32.gmra.mxu1 %vm886_vm5, %v810_v25 }
 0x369   :  { %v813_v41 = vpop.f32.mrf.mxu2 }
 0x36a   :  { %3039 = vmatmul.msk.f32.gmra.mxu1 %vm886_vm5, %v813_v41  ;;  %v1073_v41 = vld [vmem:[%s3901_s19 + $0x8] sm:$0xff] }
 0x371   :  { %v816_v27 = vpop.f32.mrf.mxu2 }
 0x372   :  { %3040 = vmatmul.msk.f32.gmra.mxu1 %vm886_vm5, %v816_v27  ;;  %v1075_v27 = vld [vmem:[%s3901_s19 + $0x18] sm:$0xff] }
 0x379   :  { %v819_v57 = vpop.f32.mrf.mxu2 }
 0x37a   :  { %3041 = vmatmul.msk.f32.gmra.mxu1 %vm886_vm5, %v819_v57  ;;  %v1077_v57 = vld [vmem:[%s3901_s19 + $0x28] sm:$0xff] }
 0x381   :  { %v822_v44 = vpop.f32.mrf.mxu2 }
 0x382   :  { %3042 = vmatmul.msk.f32.gmra.mxu1 %vm886_vm5, %v822_v44  ;;  %v1078_v44 = vld [vmem:[%s3901_s19 + $0x30] sm:$0xff] }
 0x389   :  { %v825_v60 = vpop.f32.mrf.mxu2 }
 0x38a   :  { %3043 = vmatmul.msk.f32.gmra.mxu1 %vm886_vm5, %v825_v60  ;;  %v1080_v60 = vld [vmem:[%s3901_s19 + $0x40] sm:$0xff] }
 0x391   :  { %v828_v42 = vpop.f32.mrf.mxu2 }
 0x392   :  { %3044 = vmatmul.msk.f32.gmra.mxu1 %vm886_vm5, %v828_v42  ;;  %v1081_v42 = vld [vmem:[%s3901_s19 + $0x48] sm:$0xff]  ;;  %s2946_s19 = sld [smem:[%s4510_s0 + %s3360_s16]]   ;;  %s3375_s16 = smov 42  }
 0x399   :  { %v831_v62 = vpop.f32.mrf.mxu2 }
 0x39a   :  { %3045 = vmatmul.msk.f32.gmra.mxu1 %vm886_vm5, %v831_v62 }
 0x3a1   :  { %v834_v0 = vpop.f32.mrf.mxu2 }
 0x3a2   :  { %3046 = vmatmul.msk.f32.gmra.mxu1 %vm886_vm5, %v834_v0 }
 0x3d7   :  { %v1018_v49 = vpop.f32.mrf.mxu1 }
 0x3d8   :  { %v1019_v34 = vadd.f32 %v1018_v49, %v938_v2 }
 0x3da   :  { %v1052_v56 = vadd.f32 %v3245_v19, %v1019_v34  ;;  %v1260_v34 = vld [vmem:[%s2927_s1 + $0x18] sm:$0xff] }
 0x3dc   :  { %v1062_v25 = vmax.f32 %v1052_v56, 0.0  ;;  %v1265_v56 = vld [vmem:[%s2927_s1 + $0x40] sm:$0xff] }
 0x3df   :  { %v1021_v51 = vpop.f32.mrf.mxu1 }
 0x3e0   :  { %v1022_v29 = vadd.f32 %v1021_v51, %v941_v48 }
 0x3e2   :  { %v1053_v28 = vadd.f32 %v3245_v19, %v1022_v29  ;;  %v1257_v29 = vld [vmem:[%s2927_s1] sm:$0xff] }
 0x3e4   :  { %v1063_v37 = vmax.f32 %v1053_v28, 0.0  ;;  %v1263_v28 = vld [vmem:[%s2927_s1 + $0x30] sm:$0xff] }
 0x3e7   :  { %v1024_v54 = vpop.f32.mrf.mxu1 }
 0x3e8   :  { %v1025_v47 = vadd.f32 %v1024_v54, %v944_v50 }
 0x3ea   :  { %v1054_v43 = vadd.f32 %v3245_v19, %v1025_v47 }
 0x3ec   :  { %v1064_v53 = vmax.f32 %v1054_v43, 0.0  ;;  %v1261_v43 = vld [vmem:[%s2927_s1 + $0x20] sm:$0xff] }
 0x3ef   :  { %v1027_v59 = vpop.f32.mrf.mxu1 }
 0x3f0   :  { %v1028_v15 = vadd.f32 %v1027_v59, %v947_v52 }
 0x3f2   :  { %v1055_v35 = vadd.f32 %v3245_v19, %v1028_v15 }
 0x3f4   :  { %v1065_v16 = vmax.f32 %v1055_v35, 0.0  ;;  %v1258_v35 = vld [vmem:[%s2927_s1 + $0x8] sm:$0xff] }
 0x3f7   :  { %v1030_v63 = vpop.f32.mrf.mxu1 }
 0x3f8   :  { %v1031_v21 = vadd.f32 %v1030_v63, %v950_v58 }
 0x3fa   :  { %v1056_v26 = vadd.f32 %v3245_v19, %v1031_v21 }
 0x3fc   :  { %v1066_v36 = vmax.f32 %v1056_v26, 0.0 }
 0x3ff   :  { %v1033_v1 = vpop.f32.mrf.mxu1 }
 0x400   :  { %v1034_v12 = vadd.f32 %v1033_v1, %v953_v61 }
 0x402   :  { %v1057_v23 = vadd.f32 %v3245_v19, %v1034_v12 }
 0x404   :  { %v1067_v24 = vmax.f32 %v1057_v23, 0.0 }
 0x407   :  { %v1036_v4 = vpop.f32.mrf.mxu1 }
 0x408   :  { %v1037_v38 = vadd.f32 %v1036_v4, %v956_v3 }
 0x40a   :  { %v1058_v40 = vadd.f32 %v3245_v19, %v1037_v38 }
 0x40c   :  { %v1068_v33 = vmax.f32 %v1058_v40, 0.0 }
 0x40f   :  { %v1039_v6 = vpop.f32.mrf.mxu1 }
 0x410   :  { %v1040_v39 = vadd.f32 %v1039_v6, %v959_v5 }
 0x412   :  { %v1059_v18 = vadd.f32 %v3245_v19, %v1040_v39 }
 0x414   :  { %v1069_v45 = vmax.f32 %v1059_v18, 0.0 }
 0x417   :  { %v1042_v8 = vpop.f32.mrf.mxu1 }
 0x418   :  { %v1043_v13 = vadd.f32 %v1042_v8, %v962_v7  ;;  %v3246_v8 = vld [vmem:[%s3930_s27] ss:$0 sm:$0xff]  ;;  %s2929_s27 = sld [smem:[%s4510_s0 + %s3362_s24]]   ;;  %s3377_s24 = smov 43  }
 0x41a   :  { %v1060_v11 = vadd.f32 %v3245_v19, %v1043_v13 }
 0x41c   :  { %v1070_v22 = vmax.f32 %v1060_v11, 0.0 }
 0x41f   :  { %v1045_v14 = vpop.f32.mrf.mxu1 }
 0x420   :  { %v1046_v10 = vadd.f32 %v1045_v14, %v965_v9 }
 0x422   :  { %v1061_v17 = vadd.f32 %v3245_v19, %v1046_v10 }
 0x424   :  { %v1071_v20 = vmax.f32 %v1061_v17, 0.0 }
 0x426   :  { %1121 = vmatpush.msra.mxu2 %v1071_v20 }
 0x428   :  { %1122 = vmatpush.msra.mxu2 %v1070_v22 }
 0x42a   :  { %1123 = vmatpush.msra.mxu2 %v1069_v45 }
 0x42c   :  { %1124 = vmatpush.msra.mxu2 %v1068_v33 }
 0x42e   :  { %1125 = vmatpush.msra.mxu2 %v1067_v24  ;;  %v1259_v24 = vld [vmem:[%s2927_s1 + $0x10] sm:$0xff] }
 0x430   :  { %1126 = vmatpush.msra.mxu2 %v1066_v36  ;;  %v1262_v36 = vld [vmem:[%s2927_s1 + $0x28] sm:$0xff] }
 0x432   :  { %1127 = vmatpush.msra.mxu2 %v1065_v16  ;;  %v1264_v16 = vld [vmem:[%s2927_s1 + $0x38] sm:$0xff] }
 0x434   :  { %1128 = vmatpush.msra.mxu2 %v1064_v53  ;;  %v1266_v53 = vld [vmem:[%s2927_s1 + $0x48] sm:$0xff]  ;;  %s2923_s1 = sld [smem:[%s4510_s0 + %s3363_s28]]   ;;  %s3378_s28 = smov 44  }
 0x436   :  { %1129 = vmatpush.msra.mxu2 %v1063_v37 }
 0x438   :  { %1130 = vmatpush.msra.mxu2 %v1062_v25 }
 0x439   :  { %3047 = vmatmul.msk.f32.vlgmr.msra.gmra.mxu2 %vm1084_vm1, %v1072_v30 }
 0x441   :  { %3048 = vmatmul.msk.f32.gmra.mxu2 %vm1084_vm1, %v1073_v41 }
 0x449   :  { %3049 = vmatmul.msk.f32.gmra.mxu2 %vm1084_vm1, %v1074_v55 }
 0x451   :  { %3050 = vmatmul.msk.f32.gmra.mxu2 %vm1084_vm1, %v1075_v27 }
 0x459   :  { %3051 = vmatmul.msk.f32.gmra.mxu2 %vm1084_vm1, %v1076_v32 }
 0x461   :  { %3052 = vmatmul.msk.f32.gmra.mxu2 %vm1084_vm1, %v1077_v57 }
 0x469   :  { %3053 = vmatmul.msk.f32.gmra.mxu2 %vm1084_vm1, %v1078_v44 }
 0x471   :  { %3054 = vmatmul.msk.f32.gmra.mxu2 %vm1084_vm1, %v1079_v46 }
 0x479   :  { %3055 = vmatmul.msk.f32.gmra.mxu2 %vm1084_vm1, %v1080_v60 }
 0x481   :  { %3056 = vmatmul.msk.f32.gmra.mxu2 %vm1084_vm1, %v1081_v42 }
 0x4bc   :  { %v1132_v62 = vpop.f32.mrf.mxu2 }
 0x4bd   :  { %3058 = vmatmul.msk.f32.vlgmr.msra.gmra.mxu3 %vm1165_vm7, %v1132_v62 }
 0x4c4   :  { %v1135_v0 = vpop.f32.mrf.mxu2 }
 0x4c5   :  { %3059 = vmatmul.msk.f32.gmra.mxu3 %vm1165_vm7, %v1135_v0 }
 0x4cc   :  { %v1138_v2 = vpop.f32.mrf.mxu2 }
 0x4cd   :  { %3060 = vmatmul.msk.f32.gmra.mxu3 %vm1165_vm7, %v1138_v2 }
 0x4d4   :  { %v1141_v48 = vpop.f32.mrf.mxu2 }
 0x4d5   :  { %3061 = vmatmul.msk.f32.gmra.mxu3 %vm1165_vm7, %v1141_v48 }
 0x4dc   :  { %v1144_v49 = vpop.f32.mrf.mxu2 }
 0x4dd   :  { %3062 = vmatmul.msk.f32.gmra.mxu3 %vm1165_vm7, %v1144_v49 }
 0x4e4   :  { %v1147_v50 = vpop.f32.mrf.mxu2 }
 0x4e5   :  { %3063 = vmatmul.msk.f32.gmra.mxu3 %vm1165_vm7, %v1147_v50 }
 0x4ec   :  { %v1150_v51 = vpop.f32.mrf.mxu2 }
 0x4ed   :  { %3064 = vmatmul.msk.f32.gmra.mxu3 %vm1165_vm7, %v1150_v51 }
 0x4f4   :  { %v1153_v52 = vpop.f32.mrf.mxu2 }
 0x4f5   :  { %3065 = vmatmul.msk.f32.gmra.mxu3 %vm1165_vm7, %v1153_v52 }
 0x4fc   :  { %v1156_v54 = vpop.f32.mrf.mxu2 }
 0x4fd   :  { %3066 = vmatmul.msk.f32.gmra.mxu3 %vm1165_vm7, %v1156_v54 }
 0x504   :  { %v1159_v58 = vpop.f32.mrf.mxu2 }
 0x505   :  { %3067 = vmatmul.msk.f32.gmra.mxu3 %vm1165_vm7, %v1159_v58 }
 0x540   :  { %v1217_v59 = vpop.f32.mrf.mxu3 }
 0x541   :  { %v1218_v45 = vadd.f32 %v3246_v8, %v1217_v59 }
 0x543   :  { %v1247_v33 = vmax.f32 %v1218_v45, 0.0 }
 0x548   :  { %v1220_v61 = vpop.f32.mrf.mxu3 }
 0x549   :  { %v1221_v15 = vadd.f32 %v3246_v8, %v1220_v61 }
 0x54b   :  { %v1248_v26 = vmax.f32 %v1221_v15, 0.0 }
 0x550   :  { %v1223_v63 = vpop.f32.mrf.mxu3 }
 0x551   :  { %v3962_v40 = vadd.f32 %v3246_v8, %v1223_v63 }
 0x553   :  { %v1249_v47 = vmax.f32 %v3962_v40, 0.0 }
 0x558   :  { %v1226_v1 = vpop.f32.mrf.mxu3 }
 0x559   :  { %v3959_v20 = vadd.f32 %v3246_v8, %v1226_v1 }
 0x55b   :  { %v1250_v23 = vmax.f32 %v3959_v20, 0.0 }
 0x560   :  { %v1229_v3 = vpop.f32.mrf.mxu3 }
 0x561   :  { %v3956_v12 = vadd.f32 %v3246_v8, %v1229_v3 }
 0x563   :  { %v1251_v22 = vmax.f32 %v3956_v12, 0.0 }
 0x568   :  { %v1232_v4 = vpop.f32.mrf.mxu3 }
 0x569   :  { %v3953_v11 = vadd.f32 %v3246_v8, %v1232_v4 }
 0x56b   :  { %v1252_v21 = vmax.f32 %v3953_v11, 0.0 }
 0x570   :  { %v1235_v5 = vpop.f32.mrf.mxu3 }
 0x571   :  { %v3950_v10 = vadd.f32 %v3246_v8, %v1235_v5 }
 0x573   :  { %v1253_v18 = vmax.f32 %v3950_v10, 0.0 }
 0x578   :  { %v1238_v6 = vpop.f32.mrf.mxu3 }
 0x579   :  { %v3947_v19 = vadd.f32 %v3246_v8, %v1238_v6 }
 0x57b   :  { %v1254_v17 = vmax.f32 %v3947_v19, 0.0 }
 0x580   :  { %v1241_v7 = vpop.f32.mrf.mxu3 }
 0x581   :  { %v3943_v13 = vadd.f32 %v3246_v8, %v1241_v7 }
 0x583   :  { %v1255_v38 = vmax.f32 %v3943_v13, 0.0 }
 0x588   :  { %v1244_v9 = vpop.f32.mrf.mxu3 }
 0x589   :  { %v3945_v14 = vadd.f32 %v3246_v8, %v1244_v9 }
 0x58b   :  { %v1256_v39 = vmax.f32 %v3945_v14, 0.0 }
 0x58d   :  { %1303 = vmatpush.msrb.mxu0 %v1256_v39 }
 0x58f   :  { %1304 = vmatpush.msrb.mxu0 %v1255_v38 }
 0x591   :  { %1305 = vmatpush.msrb.mxu0 %v1254_v17 }
 0x593   :  { %1306 = vmatpush.msrb.mxu0 %v1253_v18 }
 0x595   :  { %1307 = vmatpush.msrb.mxu0 %v1252_v21 }
 0x597   :  { %1308 = vmatpush.msrb.mxu0 %v1251_v22 }
 0x599   :  { %1309 = vmatpush.msrb.mxu0 %v1250_v23 }
 0x59b   :  { %1310 = vmatpush.msrb.mxu0 %v1249_v47 }
 0x59d   :  { %1311 = vmatpush.msrb.mxu0 %v1248_v26 }
 0x59f   :  { %1312 = vmatpush.msrb.mxu0 %v1247_v33 }
 0x5a0   :  { %3068 = vmatmul.msk.f32.vlgmr.msrb.gmra.mxu0 %vm1084_vm1, %v1257_v29 }
 0x5a8   :  { %3069 = vmatmul.msk.f32.gmra.mxu0 %vm1084_vm1, %v1258_v35 }
 0x5b0   :  { %3070 = vmatmul.msk.f32.gmra.mxu0 %vm1084_vm1, %v1259_v24 }
 0x5b8   :  { %3071 = vmatmul.msk.f32.gmra.mxu0 %vm1084_vm1, %v1260_v34 }
 0x5c0   :  { %3072 = vmatmul.msk.f32.gmra.mxu0 %vm1084_vm1, %v1261_v43 }
 0x5c8   :  { %3073 = vmatmul.msk.f32.gmra.mxu0 %vm1084_vm1, %v1262_v36 }
 0x5d0   :  { %3074 = vmatmul.msk.f32.gmra.mxu0 %vm1084_vm1, %v1263_v28 }
 0x5d8   :  { %3075 = vmatmul.msk.f32.gmra.mxu0 %vm1084_vm1, %v1264_v16 }
 0x5e0   :  { %3076 = vmatmul.msk.f32.gmra.mxu0 %vm1084_vm1, %v1265_v56 }
 0x5e8   :  { %3077 = vmatmul.msk.f32.gmra.mxu0 %vm1084_vm1, %v1266_v53 }
 0x61d   :  { %v1314_v37 = vpop.f32.mrf.mxu0 }
 0x61e   :  { %v4012_v1 = vsub.f32 %v1247_v33, %v1314_v37 }
 0x620   :  { %v1354_v5 = vmul.f32 %v4012_v1, %v4012_v1 }
 0x625   :  { %v1317_v25 = vpop.f32.mrf.mxu0 }
 0x626   :  { %v4008_v61 = vsub.f32 %v1248_v26, %v1317_v25 }
 0x628   :  { %v1355_v4 = vmul.f32 %v4008_v61, %v4008_v61 }
 0x62d   :  { %v1320_v30 = vpop.f32.mrf.mxu0 }
 0x62e   :  { %v4004_v58 = vsub.f32 %v1249_v47, %v1320_v30 }
 0x630   :  { %v1356_v3 = vmul.f32 %v4004_v58, %v4004_v58 }
 0x635   :  { %v1323_v41 = vpop.f32.mrf.mxu0 }
 0x636   :  { %v4000_v52 = vsub.f32 %v1250_v23, %v1323_v41 }
 0x638   :  { %v1357_v63 = vmul.f32 %v4000_v52, %v4000_v52 }
 0x63d   :  { %v1326_v55 = vpop.f32.mrf.mxu0 }
 0x63e   :  { %v3996_v50 = vsub.f32 %v1251_v22, %v1326_v55 }
 0x640   :  { %v1358_v59 = vmul.f32 %v3996_v50, %v3996_v50 }
 0x645   :  { %v1329_v27 = vpop.f32.mrf.mxu0 }
 0x646   :  { %v3992_v48 = vsub.f32 %v1252_v21, %v1329_v27 }
 0x648   :  { %v1359_v54 = vmul.f32 %v3992_v48, %v3992_v48 }
 0x64d   :  { %v1332_v32 = vpop.f32.mrf.mxu0 }
 0x64e   :  { %v3988_v0 = vsub.f32 %v1253_v18, %v1332_v32 }
 0x650   :  { %v1360_v51 = vmul.f32 %v3988_v0, %v3988_v0 }
 0x655   :  { %v1335_v57 = vpop.f32.mrf.mxu0 }
 0x656   :  { %v3984_v42 = vsub.f32 %v1254_v17, %v1335_v57 }
 0x658   :  { %v1361_v49 = vmul.f32 %v3984_v42, %v3984_v42 }
 0x65d   :  { %v1338_v31 = vpop.f32.mrf.mxu0 }
 0x65e   :  { %v3980_v46 = vsub.f32 %v1255_v38, %v1338_v31 }
 0x660   :  { %v1362_v2 = vmul.f32 %v3980_v46, %v3980_v46 }
 0x665   :  { %v1341_v44 = vpop.f32.mrf.mxu0 }
 0x666   :  { %v3982_v60 = vsub.f32 %v1256_v39, %v1341_v44 }
 0x668   :  { %v1363_v62 = vmul.f32 %v3982_v60, %v3982_v60 }
 0x66a   :  { %1370 = vmatpush.msrb.mxu1 %v1363_v62 }
 0x66c   :  { %1371 = vmatpush.msrb.mxu1 %v1362_v2 }
 0x66e   :  { %1372 = vmatpush.msrb.mxu1 %v1361_v49 }
 0x670   :  { %1373 = vmatpush.msrb.mxu1 %v1360_v51 }
 0x672   :  { %1374 = vmatpush.msrb.mxu1 %v1359_v54 }
 0x674   :  { %1375 = vmatpush.msrb.mxu1 %v1358_v59 }
 0x676   :  { %1376 = vmatpush.msrb.mxu1 %v1357_v63 }
 0x678   :  { %1377 = vmatpush.msrb.mxu1 %v1356_v3 }
 0x67a   :  { %1378 = vmatpush.msrb.mxu1 %v1355_v4 }
 0x67c   :  { %1379 = vmatpush.msrb.mxu1 %v1354_v5 }
 0x67d   :  { %3078 = vmatmul.msk.f32.vlgmr.msrb.gmra.mxu1 %vm1084_vm1, %v1257_v29 }
 0x685   :  { %3079 = vmatmul.msk.f32.gmra.mxu1 %vm1084_vm1, %v1258_v35 }
 0x68d   :  { %3080 = vmatmul.msk.f32.gmra.mxu1 %vm1084_vm1, %v1259_v24 }
 0x695   :  { %3081 = vmatmul.msk.f32.gmra.mxu1 %vm1084_vm1, %v1260_v34 }
 0x69d   :  { %3082 = vmatmul.msk.f32.gmra.mxu1 %vm1084_vm1, %v1261_v43 }
 0x6a5   :  { %3083 = vmatmul.msk.f32.gmra.mxu1 %vm1084_vm1, %v1262_v36 }
 0x6ad   :  { %3084 = vmatmul.msk.f32.gmra.mxu1 %vm1084_vm1, %v1263_v28 }
 0x6b5   :  { %3085 = vmatmul.msk.f32.gmra.mxu1 %vm1084_vm1, %v1264_v16 }
 0x6bd   :  { %3086 = vmatmul.msk.f32.gmra.mxu1 %vm1084_vm1, %v1265_v56 }
 0x6c5   :  { %3087 = vmatmul.msk.f32.gmra.mxu1 %vm1084_vm1, %v1266_v53 }
 0x6fa   :  { %v1381_v6 = vpop.f32.mrf.mxu1 }
 0x6fb   :  { %v4057_v33 = vadd.f32 1e-05, %v1381_v6 }
 0x702   :  { %v1384_v7 = vpop.f32.mrf.mxu1 }
 0x703   :  { %v4050_v15 = vadd.f32 1e-05, %v1384_v7 }
 0x70a   :  { %v1387_v8 = vpop.f32.mrf.mxu1 }
 0x70b   :  { %v4043_v21 = vadd.f32 1e-05, %v1387_v8 }
 0x712   :  { %v1390_v9 = vpop.f32.mrf.mxu1 }
 0x713   :  { %v4040_v20 = vadd.f32 1e-05, %v1390_v9 }
 0x71a   :  { %v1393_v13 = vpop.f32.mrf.mxu1 }
 0x71b   :  { %v4037_v18 = vadd.f32 1e-05, %v1393_v13 }
 0x722   :  { %v1396_v14 = vpop.f32.mrf.mxu1 }
 0x723   :  { %v4034_v11 = vadd.f32 1e-05, %v1396_v14 }
 0x72a   :  { %v1399_v19 = vpop.f32.mrf.mxu1 }
 0x72b   :  { %v4032_v38 = vadd.f32 1e-05, %v1399_v19 }
 0x72d   :  { %vm1477_vm4 = vweird.f32 %v4032_v38 }
 0x732   :  { %v1402_v39 = vpop.f32.mrf.mxu1 }
 0x733   :  { %v4030_v10 = vadd.f32 1e-05, %v1402_v39 }
 0x735   :  { %3285 = vrsqrt.f32 %v4030_v10  ;;  %vm1487_vm2 = vweird.f32 %v4030_v10 }
 0x736   :  { %3287 = vrsqrt.f32 %v4032_v38 }
 0x73a   :  { %v1405_v17 = vpop.f32.mrf.mxu1 }
 0x73b   :  { %v1406_v12 = vadd.f32 1e-05, %v1405_v17  ;;  %v4046_v40 = vpop.eup %3285 }
 0x73c   :  { %v4048_v22 = vpop.eup %3287  ;;  %v1482_v29 = vmul.f32 %v4046_v40, %v4030_v10  ;;  %vm1488_vm13 = vweird.f32 %v4046_v40 }
 0x73d   :  { %3289 = vrsqrt.f32 %v1406_v12  ;;  %v1472_v34 = vmul.f32 %v4048_v22, %v4032_v38  ;;  %vm1497_vm10 = vweird.f32 %v1406_v12  ;;  %vm1478_vm15 = vweird.f32 %v4048_v22  ;;  %vm4113_vm3 = vmor %vm1487_vm2, %vm1488_vm13 }
 0x73e   :  { %3291 = vrsqrt.f32 %v4034_v11  ;;  %v1483_v16 = vmul.f32 %v4046_v40, %v1482_v29 }
 0x73f   :  { %3293 = vrsqrt.f32 %v4037_v18  ;;  %v1473_v37 = vmul.f32 %v4048_v22, %v1472_v34 }
 0x740   :  { %3295 = vrsqrt.f32 %v4040_v20  ;;  %v1484_v32 = vmul.f32 0.5, %v1483_v16 }
 0x741   :  { %3297 = vrsqrt.f32 %v4043_v21  ;;  %v1474_v2 = vmul.f32 0.5, %v1473_v37 }
 0x742   :  { %v1408_v23 = vpop.f32.mrf.mxu1  ;;  %v1485_v3 = vsub.f32 1.5, %v1484_v32 }
 0x743   :  { %v4053_v45 = vpop.eup %3289  ;;  %v1409_v47 = vadd.f32 1e-05, %v1408_v23  ;;  %v1475_v8 = vsub.f32 1.5, %v1474_v2  ;;  %v1521_v2 = vld [vmem:[%s2919_s5] sm:$0xff] }
 0x744   :  { %v4055_v26 = vpop.eup %3291  ;;  %v1492_v35 = vmul.f32 %v4053_v45, %v1406_v12  ;;  %vm1498_vm8 = vweird.f32 %v4053_v45  ;;  %v1486_v29 = vmul.f32 %v4046_v40, %v1485_v3  ;;  %v1581_v3 = vld [vmem:[%s2920_s9 + $0x8] sm:$0xff] }
 0x745   :  { %3299 = vrsqrt.f32 %v1409_v47  ;;  %v4063_v24 = vpop.eup %3293  ;;  %v1462_v36 = vmul.f32 %v4055_v26, %v4034_v11  ;;  %vm4099_vm11 = vmor %vm1497_vm10, %vm1498_vm8  ;;  %vm1507_vm12 = vweird.f32 %v1409_v47  ;;  %vm1468_vm5 = vweird.f32 %v4055_v26 }
 0x746   :  { %3301 = vrsqrt.f32 %v4050_v15  ;;  %v1493_v43 = vmul.f32 %v4053_v45, %v1492_v35  ;;  %v4071_v28 = vpop.eup %3295  ;;  %v1452_v56 = vmul.f32 %v4063_v24, %v4037_v18  ;;  %v1490_v10 = vsel %vm4113_vm3, %v4046_v40, %v1486_v29  ;;  %vm1479_vm8 = vmor %vm1477_vm4, %vm1478_vm15 }
 0x747   :  { %3303 = vrsqrt.f32 %v4057_v33  ;;  %v4077_v53 = vpop.eup %3297  ;;  %v1442_v41 = vmul.f32 %v4071_v28, %v4040_v20  ;;  %v1463_v55 = vmul.f32 %v4055_v26, %v1462_v36  ;;  %vm1458_vm10 = vweird.f32 %v4063_v24 }
 0x748   :  { %v1494_v25 = vmul.f32 0.5, %v1493_v43  ;;  %v1432_v31 = vmul.f32 %v4077_v53, %v4043_v21  ;;  %v1453_v44 = vmul.f32 %v4063_v24, %v1452_v56  ;;  %v1518_v32 = vmul.f32 %v1490_v10, %v3984_v42 }
 0x749   :  { %v1443_v59 = vmul.f32 %v4071_v28, %v1442_v41  ;;  %v1464_v63 = vmul.f32 0.5, %v1463_v55  ;;  %vm1448_vm13 = vweird.f32 %v4071_v28  ;;  %vm1447_vm15 = vweird.f32 %v4040_v20 }
 0x74a   :  { %v1495_v49 = vsub.f32 1.5, %v1494_v25  ;;  %v1433_v6 = vmul.f32 %v4077_v53, %v1432_v31  ;;  %v1454_v7 = vmul.f32 0.5, %v1453_v44  ;;  %vm1438_vm2 = vweird.f32 %v4077_v53  ;;  %vm1449_vm3 = vmor %vm1447_vm15, %vm1448_vm13 }
 0x74b   :  { %v3300_v30 = vpop.eup %3299  ;;  %v1444_v19 = vmul.f32 0.5, %v1443_v59  ;;  %v1465_v39 = vsub.f32 1.5, %v1464_v63  ;;  %vm1437_vm4 = vweird.f32 %v4043_v21  ;;  %v1580_v63 = vld [vmem:[%s2920_s9] sm:$0xff] }
 0x74c   :  { %v4083_v27 = vpop.eup %3301  ;;  %v1502_v57 = vmul.f32 %v3300_v30, %v1409_v47  ;;  %vm1508_vm9 = vweird.f32 %v3300_v30  ;;  %v1496_v13 = vmul.f32 %v4053_v45, %v1495_v49  ;;  %v1434_v34 = vmul.f32 0.5, %v1433_v6  ;;  %v1583_v6 = vld [vmem:[%s2920_s9 + $0x18] sm:$0xff] }
 0x74d   :  { %v4088_v62 = vpop.eup %3303  ;;  %v1422_v54 = vmul.f32 %v4083_v27, %v4050_v15  ;;  %v1455_v43 = vsub.f32 1.5, %v1454_v7  ;;  %vm1509_vm14 = vmor %vm1507_vm12, %vm1508_vm9  ;;  %v1476_v47 = vmul.f32 %v4048_v22, %v1475_v8  ;;  %v1445_v56 = vsub.f32 1.5, %v1444_v19  ;;  %v1584_v7 = vld [vmem:[%s2920_s9 + $0x20] sm:$0xff]  ;;  %v1585_v8 = vld [vmem:[%s2920_s9 + $0x28] sm:$0xff] }
 0x74e   :  { %v1503_v51 = vmul.f32 %v3300_v30, %v1502_v57  ;;  %v1412_v5 = vmul.f32 %v4088_v62, %v4057_v33  ;;  %v1500_v36 = vsel %vm4099_vm11, %v4053_v45, %v1496_v13  ;;  %v1435_v41 = vsub.f32 1.5, %v1434_v34 }
 0x74f   :  { %v1423_v14 = vmul.f32 %v4083_v27, %v1422_v54  ;;  %v1519_v55 = vmul.f32 %v1500_v36, %v3980_v46  ;;  %vm1467_vm9 = vweird.f32 %v4034_v11  ;;  %v1456_v38 = vmul.f32 %v4063_v24, %v1455_v43 }
 0x750   :  { %v1504_v4 = vmul.f32 0.5, %v1503_v51  ;;  %v1413_v35 = vmul.f32 %v4088_v62, %v1412_v5  ;;  %vm1469_vm11 = vmor %vm1467_vm9, %vm1468_vm5  ;;  %vm1457_vm12 = vweird.f32 %v4037_v18  ;;  %v1446_v57 = vmul.f32 %v4071_v28, %v1445_v56  ;;  %v1582_v5 = vld [vmem:[%s2920_s9 + $0x10] sm:$0xff]  ;;  %s2948_s9 = sld [smem:[%s4510_s0 + %s3365_s6]]  }
 0x751   :  { %v1424_v16 = vmul.f32 0.5, %v1423_v14  ;;  %v1436_v42 = vmul.f32 %v4077_v53, %v1435_v41  ;;  %vm1428_vm5 = vweird.f32 %v4083_v27  ;;  %vm1427_vm9 = vweird.f32 %v4050_v15 }
 0x752   :  { %v1505_v9 = vsub.f32 1.5, %v1504_v4  ;;  %v1414_v45 = vmul.f32 0.5, %v1413_v35  ;;  %v1586_v4 = vld [vmem:[%s2939_s13] sm:$0x3f]  ;;  %s2947_s13 = sld [smem:[%s4510_s0 + %s3366_s10]]  }
 0x753   :  { %v1425_v40 = vsub.f32 1.5, %v1424_v16  ;;  %3100 = vmatpush.msk.msra.mxu0 %vm1196_vm6, %v1586_v4 }
 0x754   :  { %v1506_v23 = vmul.f32 %v3300_v30, %v1505_v9  ;;  %v1415_v11 = vsub.f32 1.5, %v1414_v45 }
 0x755   :  { %v1426_v44 = vmul.f32 %v4083_v27, %v1425_v40  ;;  %v1706_v40 = vld [vmem:[%s2941_s25] sm:$0x3f]  ;;  %s2930_s25 = sld [smem:[%s4510_s0 + %s3369_s22]]  }
 0x756   :  { %v1510_v12 = vsel %vm1509_vm14, %v3300_v30, %v1506_v23  ;;  %v1466_v30 = vmul.f32 %v4055_v26, %v1465_v39  ;;  %vm1459_vm14 = vmor %vm1457_vm12, %vm1458_vm10  ;;  %v1416_v20 = vmul.f32 %v4088_v62, %v1415_v11  ;;  %vm1418_vm10 = vweird.f32 %v4088_v62 }
 0x757   :  { %v1520_v37 = vmul.f32 %v1510_v12, %v3982_v60  ;;  %v1480_v60 = vsel %vm1479_vm8, %v4048_v22, %v1476_v47  ;;  %v1460_v31 = vsel %vm1459_vm14, %v4063_v24, %v1456_v38  ;;  %vm1439_vm8 = vmor %vm1437_vm4, %vm1438_vm2  ;;  %vm1417_vm12 = vweird.f32 %v4057_v33  ;;  %v1523_v33 = vld [vmem:[%s2919_s5 + $0x10] sm:$0xff]  ;;  %v3247_v12 = vld [vmem:[%s2940_s17] ss:$0 sm:$0xff]  ;;  %s2949_s17 = sld [smem:[%s4510_s0 + %s3367_s14]]  }
 0x758   :  { %v1470_v46 = vsel %vm1469_vm11, %v4055_v26, %v1466_v30  ;;  %v1517_v22 = vmul.f32 %v1480_v60, %v3988_v0  ;;  %v1450_v26 = vsel %vm1449_vm3, %v4071_v28, %v1446_v57  ;;  %v1515_v0 = vmul.f32 %v1460_v31, %v3996_v50  ;;  %vm1429_vm11 = vmor %vm1427_vm9, %vm1428_vm5 }
 0x759   :  { %1551 = vmatpush.msrb.mxu2 %v1520_v37  ;;  %v1516_v18 = vmul.f32 %v1470_v46, %v3992_v48  ;;  %v1440_v48 = vsel %vm1439_vm8, %v4077_v53, %v1436_v42  ;;  %v1514_v21 = vmul.f32 %v1450_v26, %v4000_v52  ;;  %v1430_v50 = vsel %vm1429_vm11, %v4083_v27, %v1426_v44  ;;  %vm1419_vm13 = vmor %vm1417_vm12, %vm1418_vm10  ;;  %v1522_v52 = vld [vmem:[%s2919_s5 + $0x8] sm:$0xff]  ;;  %v1525_v27 = vld [vmem:[%s2919_s5 + $0x20] sm:$0xff] }
 0x75a   :  { %v1513_v24 = vmul.f32 %v1440_v48, %v4004_v58  ;;  %v1420_v15 = vsel %vm1419_vm13, %v4088_v62, %v1416_v20  ;;  %v1512_v28 = vmul.f32 %v1430_v50, %v4008_v61  ;;  %v1524_v58 = vld [vmem:[%s2919_s5 + $0x18] sm:$0xff]  ;;  %v1526_v61 = vld [vmem:[%s2919_s5 + $0x28] sm:$0xff]  ;;  %v3248_v48 = vld [vmem:[%s2942_s21] ss:$0 sm:$0xff]  ;;  %s2924_s5 = sld [smem:[%s4510_s0 + %s3364_s2]]   ;;  %s3379_s2 = smov 45  }
 0x75b   :  { %1552 = vmatpush.msrb.mxu2 %v1519_v55  ;;  %v1511_v53 = vmul.f32 %v1420_v15, %v4012_v1  ;;  %s2950_s21 = sld [smem:[%s4510_s0 + %s3368_s18]]  }
 0x75d   :  { %1553 = vmatpush.msrb.mxu2 %v1518_v32 }
 0x75f   :  { %1554 = vmatpush.msrb.mxu2 %v1517_v22 }
 0x761   :  { %1555 = vmatpush.msrb.mxu2 %v1516_v18 }
 0x763   :  { %1556 = vmatpush.msrb.mxu2 %v1515_v0 }
 0x765   :  { %1557 = vmatpush.msrb.mxu2 %v1514_v21 }
 0x767   :  { %1558 = vmatpush.msrb.mxu2 %v1513_v24 }
 0x769   :  { %1559 = vmatpush.msrb.mxu2 %v1512_v28 }
 0x76b   :  { %1560 = vmatpush.msrb.mxu2 %v1511_v53 }
 0x76c   :  { %3088 = vmatmul.msk.f32.vlgmr.msrb.gmra.mxu2 %vm1084_vm1, %v1521_v2 }
 0x76d   :  { %3113 = vmatpush.msk.msra.mxu2 %vm1196_vm6, %v1706_v40 }
 0x774   :  { %3089 = vmatmul.msk.f32.gmra.mxu2 %vm1084_vm1, %v1522_v52 }
 0x77c   :  { %3090 = vmatmul.msk.f32.gmra.mxu2 %vm1084_vm1, %v1523_v33 }
 0x784   :  { %3091 = vmatmul.msk.f32.gmra.mxu2 %vm1084_vm1, %v1524_v58 }
 0x78c   :  { %3092 = vmatmul.msk.f32.gmra.mxu2 %vm1084_vm1, %v1525_v27 }
 0x794   :  { %3093 = vmatmul.msk.f32.gmra.mxu2 %vm1084_vm1, %v1526_v61 }
 0x7ef   :  { %v1562_v1 = vpop.f32.mrf.mxu2 }
 0x7f7   :  { %v1565_v62 = vpop.f32.mrf.mxu2 }
 0x7ff   :  { %v1568_v49 = vpop.f32.mrf.mxu2 }
 0x807   :  { %v1571_v51 = vpop.f32.mrf.mxu2 }
 0x80f   :  { %v1574_v54 = vpop.f32.mrf.mxu2 }
 0x817   :  { %v1577_v59 = vpop.f32.mrf.mxu2 }
 0x818   :  { %1616 = vmatpush.msrb.mxu3 %v1577_v59  ;;  %v1813_v59 = vld [vmem:[%s2928_s29 + $0x28] sm:$0xff] }
 0x81a   :  { %1617 = vmatpush.msrb.mxu3 %v1574_v54  ;;  %v1812_v54 = vld [vmem:[%s2928_s29 + $0x20] sm:$0xff] }
 0x81c   :  { %1618 = vmatpush.msrb.mxu3 %v1571_v51  ;;  %v1811_v51 = vld [vmem:[%s2928_s29 + $0x18] sm:$0xff] }
 0x81e   :  { %1619 = vmatpush.msrb.mxu3 %v1568_v49  ;;  %v1810_v49 = vld [vmem:[%s2928_s29 + $0x10] sm:$0xff] }
 0x820   :  { %1620 = vmatpush.msrb.mxu3 %v1565_v62  ;;  %v1809_v62 = vld [vmem:[%s2928_s29 + $0x8] sm:$0xff] }
 0x822   :  { %1621 = vmatpush.msrb.mxu3 %v1562_v1  ;;  %v1808_v1 = vld [vmem:[%s2928_s29] sm:$0xff]  ;;  %s4446_s29 = sld [smem:[%s4510_s0 + %s3370_s26]]  }
 0x823   :  { %3094 = vmatmul.msk.f32.vlgmr.msrb.gmra.mxu3 %vm200_vm0, %v1580_v63 }
 0x82b   :  { %3095 = vmatmul.msk.f32.gmra.mxu3 %vm200_vm0, %v1581_v3 }
 0x833   :  { %3096 = vmatmul.msk.f32.gmra.mxu3 %vm200_vm0, %v1582_v5 }
 0x83b   :  { %3097 = vmatmul.msk.f32.gmra.mxu3 %vm200_vm0, %v1583_v6 }
 0x843   :  { %3098 = vmatmul.msk.f32.gmra.mxu3 %vm200_vm0, %v1584_v7 }
 0x84b   :  { %3099 = vmatmul.msk.f32.gmra.mxu3 %vm200_vm0, %v1585_v8 }
 0x8a6   :  { %v1623_v9 = vpop.f32.mrf.mxu3 }
 0x8a7   :  { %3101 = vmatmul.msk.f32.vlgmr.msra.gmra.mxu0 %vm1165_vm7, %v1623_v9 }
 0x8ae   :  { %v1626_v13 = vpop.f32.mrf.mxu3 }
 0x8af   :  { %3102 = vmatmul.msk.f32.gmra.mxu0 %vm1165_vm7, %v1626_v13 }
 0x8b6   :  { %v1629_v14 = vpop.f32.mrf.mxu3 }
 0x8b7   :  { %3103 = vmatmul.msk.f32.gmra.mxu0 %vm1165_vm7, %v1629_v14 }
 0x8be   :  { %v1632_v19 = vpop.f32.mrf.mxu3 }
 0x8bf   :  { %3104 = vmatmul.msk.f32.gmra.mxu0 %vm1165_vm7, %v1632_v19 }
 0x8c6   :  { %v1635_v39 = vpop.f32.mrf.mxu3 }
 0x8c7   :  { %3105 = vmatmul.msk.f32.gmra.mxu0 %vm1165_vm7, %v1635_v39 }
 0x8ce   :  { %v1638_v17 = vpop.f32.mrf.mxu3 }
 0x8cf   :  { %3106 = vmatmul.msk.f32.gmra.mxu0 %vm1165_vm7, %v1638_v17 }
 0x924   :  { %v1682_v23 = vpop.f32.mrf.mxu0 }
 0x925   :  { %v1683_v41 = vadd.f32 %v3247_v12, %v1682_v23 }
 0x927   :  { %v1700_v38 = vmax.f32 %v1683_v41, 0.0 }
 0x92c   :  { %v1685_v29 = vpop.f32.mrf.mxu0 }
 0x92d   :  { %v1686_v30 = vadd.f32 %v3247_v12, %v1685_v29 }
 0x92f   :  { %v1701_v60 = vmax.f32 %v1686_v30, 0.0 }
 0x934   :  { %v1688_v35 = vpop.f32.mrf.mxu0 }
 0x935   :  { %v1689_v25 = vadd.f32 %v3247_v12, %v1688_v35 }
 0x937   :  { %v1702_v55 = vmax.f32 %v1689_v25, 0.0 }
 0x93c   :  { %v1691_v34 = vpop.f32.mrf.mxu0 }
 0x93d   :  { %v1692_v56 = vadd.f32 %v3247_v12, %v1691_v34 }
 0x93f   :  { %v1703_v45 = vmax.f32 %v1692_v56, 0.0 }
 0x944   :  { %v1694_v43 = vpop.f32.mrf.mxu0 }
 0x945   :  { %v1695_v47 = vadd.f32 %v3247_v12, %v1694_v43 }
 0x947   :  { %v1704_v10 = vmax.f32 %v1695_v47, 0.0 }
 0x94c   :  { %v1697_v36 = vpop.f32.mrf.mxu0 }
 0x94d   :  { %v1698_v16 = vadd.f32 %v3247_v12, %v1697_v36 }
 0x94f   :  { %v1705_v37 = vmax.f32 %v1698_v16, 0.0 }
 0x951   :  { %1718 = vmatpush.msra.mxu1 %v1705_v37 }
 0x953   :  { %1719 = vmatpush.msra.mxu1 %v1704_v10 }
 0x955   :  { %1720 = vmatpush.msra.mxu1 %v1703_v45 }
 0x957   :  { %1721 = vmatpush.msra.mxu1 %v1702_v55 }
 0x959   :  { %1722 = vmatpush.msra.mxu1 %v1701_v60 }
 0x95b   :  { %1723 = vmatpush.msra.mxu1 %v1700_v38 }
 0x95c   :  { %3107 = vmatmul.msk.f32.vlgmr.msra.gmra.mxu1 %vm200_vm0, %v1580_v63 }
 0x964   :  { %3108 = vmatmul.msk.f32.gmra.mxu1 %vm200_vm0, %v1581_v3 }
 0x96c   :  { %3109 = vmatmul.msk.f32.gmra.mxu1 %vm200_vm0, %v1582_v5 }
 0x974   :  { %3110 = vmatmul.msk.f32.gmra.mxu1 %vm200_vm0, %v1583_v6 }
 0x97c   :  { %3111 = vmatmul.msk.f32.gmra.mxu1 %vm200_vm0, %v1584_v7 }
 0x984   :  { %3112 = vmatmul.msk.f32.gmra.mxu1 %vm200_vm0, %v1585_v8 }
 0x9d9   :  { %v1725_v32 = vpop.f32.mrf.mxu1 }
 0x9da   :  { %3114 = vmatmul.msk.f32.vlgmr.msra.gmra.mxu2 %vm1165_vm7, %v1725_v32 }
 0x9e1   :  { %v1728_v46 = vpop.f32.mrf.mxu1 }
 0x9e2   :  { %3115 = vmatmul.msk.f32.gmra.mxu2 %vm1165_vm7, %v1728_v46 }
 0x9e9   :  { %v1731_v57 = vpop.f32.mrf.mxu1 }
 0x9ea   :  { %3116 = vmatmul.msk.f32.gmra.mxu2 %vm1165_vm7, %v1731_v57 }
 0x9f1   :  { %v1734_v11 = vpop.f32.mrf.mxu1 }
 0x9f2   :  { %3117 = vmatmul.msk.f32.gmra.mxu2 %vm1165_vm7, %v1734_v11 }
 0x9f9   :  { %v1737_v22 = vpop.f32.mrf.mxu1 }
 0x9fa   :  { %3118 = vmatmul.msk.f32.gmra.mxu2 %vm1165_vm7, %v1737_v22 }
 0xa01   :  { %v1740_v31 = vpop.f32.mrf.mxu1 }
 0xa02   :  { %3119 = vmatmul.msk.f32.gmra.mxu2 %vm1165_vm7, %v1740_v31 }
 0xa5d   :  { %v1784_v42 = vpop.f32.mrf.mxu2 }
 0xa5e   :  { %v1785_v33 = vadd.f32 %v3248_v48, %v1784_v42 }
 0xa60   :  { %v1802_v61 = vmax.f32 %v1785_v33, 0.0 }
 0xa65   :  { %v1787_v18 = vpop.f32.mrf.mxu2 }
 0xa66   :  { %v1788_v2 = vadd.f32 %v3248_v48, %v1787_v18 }
 0xa68   :  { %v1803_v27 = vmax.f32 %v1788_v2, 0.0 }
 0xa6d   :  { %v1790_v26 = vpop.f32.mrf.mxu2 }
 0xa6e   :  { %v1791_v28 = vadd.f32 %v3248_v48, %v1790_v26 }
 0xa70   :  { %v1804_v58 = vmax.f32 %v1791_v28, 0.0 }
 0xa75   :  { %v1793_v44 = vpop.f32.mrf.mxu2 }
 0xa76   :  { %v1794_v24 = vadd.f32 %v3248_v48, %v1793_v44 }
 0xa78   :  { %v1805_v52 = vmax.f32 %v1794_v24, 0.0 }
 0xa7d   :  { %v1796_v0 = vpop.f32.mrf.mxu2 }
 0xa7e   :  { %v1797_v21 = vadd.f32 %v3248_v48, %v1796_v0 }
 0xa80   :  { %v1806_v53 = vmax.f32 %v1797_v21, 0.0 }
 0xa85   :  { %v1799_v20 = vpop.f32.mrf.mxu2 }
 0xa86   :  { %v1800_v50 = vadd.f32 %v3248_v48, %v1799_v20 }
 0xa88   :  { %v1807_v15 = vmax.f32 %v1800_v50, 0.0 }
 0xa8a   :  { %1842 = vmatpush.msra.mxu3 %v1807_v15 }
 0xa8c   :  { %1843 = vmatpush.msra.mxu3 %v1806_v53 }
 0xa8e   :  { %1844 = vmatpush.msra.mxu3 %v1805_v52 }
 0xa90   :  { %1845 = vmatpush.msra.mxu3 %v1804_v58 }
 0xa92   :  { %1846 = vmatpush.msra.mxu3 %v1803_v27 }
 0xa94   :  { %1847 = vmatpush.msra.mxu3 %v1802_v61 }
 0xa95   :  { %3120 = vmatmul.msk.f32.vlgmr.msra.gmra.mxu3 %vm200_vm0, %v1808_v1 }
 0xa9d   :  { %3121 = vmatmul.msk.f32.gmra.mxu3 %vm200_vm0, %v1809_v62 }
 0xaa5   :  { %3122 = vmatmul.msk.f32.gmra.mxu3 %vm200_vm0, %v1810_v49 }
 0xaad   :  { %3123 = vmatmul.msk.f32.gmra.mxu3 %vm200_vm0, %v1811_v51 }
 0xab5   :  { %3124 = vmatmul.msk.f32.gmra.mxu3 %vm200_vm0, %v1812_v54 }
 0xabd   :  { %3125 = vmatmul.msk.f32.gmra.mxu3 %vm200_vm0, %v1813_v59 }
 0xb18   :  { %v1849_v63 = vpop.f32.mrf.mxu3 }
 0xb19   :  { %v4232_v29 = vsub.f32 %v1802_v61, %v1849_v63 }
 0xb1b   :  { %v1873_v43 = vmul.f32 %v4232_v29, %v4232_v29 }
 0xb20   :  { %v1852_v3 = vpop.f32.mrf.mxu3 }
 0xb21   :  { %v4228_v17 = vsub.f32 %v1803_v27, %v1852_v3 }
 0xb23   :  { %v1874_v34 = vmul.f32 %v4228_v17, %v4228_v17 }
 0xb28   :  { %v1855_v4 = vpop.f32.mrf.mxu3 }
 0xb29   :  { %v4224_v19 = vsub.f32 %v1804_v58, %v1855_v4 }
 0xb2b   :  { %v1875_v35 = vmul.f32 %v4224_v19, %v4224_v19 }
 0xb30   :  { %v1858_v5 = vpop.f32.mrf.mxu3 }
 0xb31   :  { %v4220_v13 = vsub.f32 %v1805_v52, %v1858_v5  ;;  %v2208_v5 = vld [vmem:[%s2929_s27 + $0x10] sm:$0xff] }
 0xb33   :  { %v1876_v23 = vmul.f32 %v4220_v13, %v4220_v13 }
 0xb38   :  { %v1861_v6 = vpop.f32.mrf.mxu3 }
 0xb39   :  { %v4216_v8 = vsub.f32 %v1806_v53, %v1861_v6 }
 0xb3b   :  { %v1877_v39 = vmul.f32 %v4216_v8, %v4216_v8 }
 0xb40   :  { %v1864_v7 = vpop.f32.mrf.mxu3 }
 0xb41   :  { %v4218_v9 = vsub.f32 %v1807_v15, %v1864_v7 }
 0xb43   :  { %v1878_v14 = vmul.f32 %v4218_v9, %v4218_v9 }
 0xb45   :  { %1889 = vmatpush.msrb.mxu0 %v1878_v14 }
 0xb47   :  { %1890 = vmatpush.msrb.mxu0 %v1877_v39 }
 0xb49   :  { %1891 = vmatpush.msrb.mxu0 %v1876_v23 }
 0xb4b   :  { %1892 = vmatpush.msrb.mxu0 %v1875_v35 }
 0xb4d   :  { %1893 = vmatpush.msrb.mxu0 %v1874_v34 }
 0xb4f   :  { %1894 = vmatpush.msrb.mxu0 %v1873_v43 }
 0xb50   :  { %3126 = vmatmul.msk.f32.vlgmr.msrb.gmra.mxu0 %vm200_vm0, %v1808_v1 }
 0xb58   :  { %3127 = vmatmul.msk.f32.gmra.mxu0 %vm200_vm0, %v1809_v62 }
 0xb60   :  { %3128 = vmatmul.msk.f32.gmra.mxu0 %vm200_vm0, %v1810_v49 }
 0xb68   :  { %3129 = vmatmul.msk.f32.gmra.mxu0 %vm200_vm0, %v1811_v51 }
 0xb70   :  { %3130 = vmatmul.msk.f32.gmra.mxu0 %vm200_vm0, %v1812_v54 }
 0xb78   :  { %3131 = vmatmul.msk.f32.gmra.mxu0 %vm200_vm0, %v1813_v59 }
 0xbcd   :  { %v1896_v12 = vpop.f32.mrf.mxu0 }
 0xbce   :  { %v4250_v45 = vadd.f32 1e-05, %v1896_v12 }
 0xbd5   :  { %v1899_v36 = vpop.f32.mrf.mxu0 }
 0xbd6   :  { %v4248_v25 = vadd.f32 1e-05, %v1899_v36 }
 0xbdd   :  { %v1902_v47 = vpop.f32.mrf.mxu0 }
 0xbde   :  { %v4246_v37 = vadd.f32 1e-05, %v1902_v47 }
 0xbe0   :  { %vm1940_vm12 = vweird.f32 %v4246_v37 }
 0xbe5   :  { %v1905_v16 = vpop.f32.mrf.mxu0 }
 0xbe6   :  { %v1906_v56 = vadd.f32 1e-05, %v1905_v16  ;;  %v1980_v16 = vld [vmem:[%s2921_s3] sm:$0xff] }
 0xbe8   :  { %3305 = vrsqrt.f32 %v1906_v56  ;;  %vm1950_vm9 = vweird.f32 %v1906_v56 }
 0xbe9   :  { %3307 = vrsqrt.f32 %v4246_v37 }
 0xbed   :  { %v1908_v10 = vpop.f32.mrf.mxu0 }
 0xbee   :  { %v1909_v30 = vadd.f32 1e-05, %v1908_v10  ;;  %v4255_v41 = vpop.eup %3305 }
 0xbef   :  { %v4257_v55 = vpop.eup %3307  ;;  %v1945_v46 = vmul.f32 %v4255_v41, %v1906_v56  ;;  %vm1951_vm2 = vweird.f32 %v4255_v41  ;;  %v1982_v56 = vld [vmem:[%s2921_s3 + $0x10] sm:$0xff] }
 0xbf0   :  { %3309 = vrsqrt.f32 %v1909_v30  ;;  %v1935_v22 = vmul.f32 %v4257_v55, %v4246_v37  ;;  %vm1960_vm15 = vweird.f32 %v1909_v30  ;;  %vm1941_vm5 = vweird.f32 %v4257_v55  ;;  %vm4284_vm10 = vmor %vm1950_vm9, %vm1951_vm2  ;;  %v1983_v37 = vld [vmem:[%s2921_s3 + $0x18] sm:$0xff] }
 0xbf1   :  { %3311 = vrsqrt.f32 %v4248_v25  ;;  %v1946_v18 = vmul.f32 %v4255_v41, %v1945_v46  ;;  %vm4295_vm13 = vmor %vm1940_vm12, %vm1941_vm5  ;;  %vm1920_vm2 = vweird.f32 %v4250_v45 }
 0xbf2   :  { %3313 = vrsqrt.f32 %v4250_v45  ;;  %v1936_v44 = vmul.f32 %v4257_v55, %v1935_v22  ;;  %v3249_v22 = vld [vmem:[%s2944_s11] ss:$0 sm:$0xff]  ;;  %s2954_s11 = sld [smem:[%s4510_s0 + %s3373_s8]]  }
 0xbf3   :  { %v1947_v21 = vmul.f32 0.5, %v1946_v18 }
 0xbf4   :  { %v1937_v15 = vmul.f32 0.5, %v1936_v44 }
 0xbf5   :  { %v1911_v60 = vpop.f32.mrf.mxu0  ;;  %v1948_v52 = vsub.f32 1.5, %v1947_v21 }
 0xbf6   :  { %v3310_v38 = vpop.eup %3309  ;;  %v1912_v40 = vadd.f32 1e-05, %v1911_v60  ;;  %v1938_v27 = vsub.f32 1.5, %v1937_v15 }
 0xbf7   :  { %v4259_v32 = vpop.eup %3311  ;;  %v1955_v57 = vmul.f32 %v3310_v38, %v1909_v30  ;;  %vm1961_vm1 = vweird.f32 %v3310_v38  ;;  %v1949_v54 = vmul.f32 %v4255_v41, %v1948_v52  ;;  %v2026_v30 = vld [vmem:[%s2922_s7 + $0x8] sm:$0xff] }
 0xbf8   :  { %3315 = vrsqrt.f32 %v1912_v40  ;;  %v4262_v11 = vpop.eup %3313  ;;  %v1925_v42 = vmul.f32 %v4259_v32, %v4248_v25  ;;  %vm4275_vm3 = vmor %vm1960_vm15, %vm1961_vm1  ;;  %vm1970_vm4 = vweird.f32 %v1912_v40  ;;  %v1939_v4 = vmul.f32 %v4257_v55, %v1938_v27 }
 0xbf9   :  { %v1956_v31 = vmul.f32 %v3310_v38, %v1955_v57  ;;  %v1915_v26 = vmul.f32 %v4262_v11, %v4250_v45  ;;  %vm1931_vm11 = vweird.f32 %v4259_v32  ;;  %v1953_v7 = vsel %vm4284_vm10, %v4255_v41, %v1949_v54  ;;  %v2027_v45 = vld [vmem:[%s2922_s7 + $0x10] sm:$0xff]  ;;  %v2028_v41 = vld [vmem:[%s2922_s7 + $0x18] sm:$0xff] }
 0xbfa   :  { %v1926_v20 = vmul.f32 %v4259_v32, %v1925_v42  ;;  %vm1921_vm1 = vweird.f32 %v4262_v11  ;;  %v1977_v34 = vmul.f32 %v1953_v7, %v4220_v13  ;;  %v1981_v13 = vld [vmem:[%s2921_s3 + $0x8] sm:$0xff]  ;;  %s2952_s3 = sld [smem:[%s4510_s0 + %s3371_s30]]  }
 0xbfb   :  { %v1957_v0 = vmul.f32 0.5, %v1956_v31  ;;  %v1916_v24 = vmul.f32 %v4262_v11, %v1915_v26 }
 0xbfc   :  { %v1927_v2 = vmul.f32 0.5, %v1926_v20 }
 0xbfd   :  { %v1958_v28 = vsub.f32 1.5, %v1957_v0  ;;  %v1917_v58 = vmul.f32 0.5, %v1916_v24 }
 0xbfe   :  { %v3316_v48 = vpop.eup %3315  ;;  %v1928_v62 = vsub.f32 1.5, %v1927_v2 }
 0xbff   :  { %v1965_v50 = vmul.f32 %v3316_v48, %v1912_v40  ;;  %vm1971_vm14 = vweird.f32 %v3316_v48  ;;  %v1959_v1 = vmul.f32 %v3310_v38, %v1958_v28  ;;  %v1918_v59 = vsub.f32 1.5, %v1917_v58  ;;  %v3250_v58 = vld [vmem:[%s2946_s19] ss:$0 sm:$0xff]  ;;  %s4492_s19 = sld [smem:[%s4510_s0 + %s3375_s16]]  }
 0xc00   :  { %vm1972_vm8 = vmor %vm1970_vm4, %vm1971_vm14  ;;  %v1929_v14 = vmul.f32 %v4259_v32, %v1928_v62  ;;  %vm1930_vm14 = vweird.f32 %v4248_v25  ;;  %vm2031_vm4 = vcmask 261120  }
 0xc01   :  { %v1966_v53 = vmul.f32 %v3316_v48, %v1965_v50  ;;  %v1963_v3 = vsel %vm4275_vm3, %v3310_v38, %v1959_v1  ;;  %v1919_v35 = vmul.f32 %v4262_v11, %v1918_v59  ;;  %vm1932_vm15 = vmor %vm1930_vm14, %vm1931_vm11  ;;  %v2124_v50 = vld [vmem:[%s2945_s23] sm:$0x3f]  ;;  %s2955_s23 = sld [smem:[%s4510_s0 + %s3376_s20]]  }
 0xc02   :  { %v1978_v23 = vmul.f32 %v1963_v3, %v4216_v8  ;;  %v1933_v8 = vsel %vm1932_vm15, %v4259_v32, %v1929_v14  ;;  %vm1922_vm3 = vmor %vm1920_vm2, %vm1921_vm1  ;;  %v2206_v3 = vld [vmem:[%s2929_s27] sm:$0xff] }
 0xc03   :  { %v1967_v33 = vmul.f32 0.5, %v1966_v53  ;;  %v1923_v12 = vsel %vm1922_vm3, %v4262_v11, %v1919_v35  ;;  %v1975_v36 = vmul.f32 %v1933_v8, %v4228_v17  ;;  %vm2369_vm3 = vcmask 130048  }
 0xc04   :  { %v1974_v47 = vmul.f32 %v1923_v12, %v4232_v29  ;;  %v2025_v29 = vld [vmem:[%s2922_s7] sm:$0xff]  ;;  %s2953_s7 = sld [smem:[%s4510_s0 + %s3372_s4]]  }
 0xc05   :  { %v1968_v61 = vsub.f32 1.5, %v1967_v33 }
 0xc07   :  { %v1969_v51 = vmul.f32 %v3316_v48, %v1968_v61 }
 0xc09   :  { %v1973_v63 = vsel %vm1972_vm8, %v3316_v48, %v1969_v51 }
 0xc0a   :  { %v1979_v6 = vmul.f32 %v1973_v63, %v4218_v9  ;;  %v1943_v9 = vsel %vm4295_vm13, %v4257_v55, %v1939_v4  ;;  %v2029_v55 = vld [vmem:[%s2943_s15] sm:$0x3f]  ;;  %v2207_v4 = vld [vmem:[%s2929_s27 + $0x8] sm:$0xff]  ;;  %s2931_s15 = sld [smem:[%s4510_s0 + %s3374_s12]]  }
 0xc0b   :  { %v1976_v43 = vmul.f32 %v1943_v9, %v4224_v19  ;;  %3140 = vmatpush.msk.msrb.mxu3 %vm1196_vm6, %v2029_v55 }
 0xc0c   :  { %2006 = vmatpush.msrb.mxu1 %v1979_v6  ;;  %v2209_v6 = vld [vmem:[%s2929_s27 + $0x18] sm:$0xff]  ;;  %s2957_s27 = sld [smem:[%s4510_s0 + %s3377_s24]]  }
 0xc0e   :  { %2007 = vmatpush.msrb.mxu1 %v1978_v23 }
 0xc10   :  { %2008 = vmatpush.msrb.mxu1 %v1977_v34 }
 0xc12   :  { %2009 = vmatpush.msrb.mxu1 %v1976_v43 }
 0xc14   :  { %2010 = vmatpush.msrb.mxu1 %v1975_v36 }
 0xc16   :  { %2011 = vmatpush.msrb.mxu1 %v1974_v47 }
 0xc17   :  { %3132 = vmatmul.msk.f32.vlgmr.msrb.gmra.mxu1 %vm200_vm0, %v1980_v16 }
 0xc1f   :  { %3133 = vmatmul.msk.f32.gmra.mxu1 %vm200_vm0, %v1981_v13 }
 0xc27   :  { %3134 = vmatmul.msk.f32.gmra.mxu1 %vm200_vm0, %v1982_v56 }
 0xc2f   :  { %3135 = vmatmul.msk.f32.gmra.mxu1 %vm200_vm0, %v1983_v37 }
 0xc94   :  { %v2013_v19 = vpop.f32.mrf.mxu1 }
 0xc9c   :  { %v2016_v25 = vpop.f32.mrf.mxu1 }
 0xca4   :  { %v2019_v10 = vpop.f32.mrf.mxu1 }
 0xcac   :  { %v2022_v17 = vpop.f32.mrf.mxu1 }
 0xcad   :  { %2056 = vmatpush.msrb.mxu2 %v2022_v17 }
 0xcaf   :  { %2057 = vmatpush.msrb.mxu2 %v2019_v10 }
 0xcb1   :  { %2058 = vmatpush.msrb.mxu2 %v2016_v25 }
 0xcb3   :  { %2059 = vmatpush.msrb.mxu2 %v2013_v19 }
 0xcb4   :  { %3136 = vmatmul.msk.f32.vlgmr.msrb.gmra.mxu2 %vm2031_vm4, %v2025_v29 }
 0xcb5   :  { %3149 = vmatpush.msk.msra.mxu2 %vm1196_vm6, %v2124_v50 }
 0xcbc   :  { %3137 = vmatmul.msk.f32.gmra.mxu2 %vm2031_vm4, %v2026_v30 }
 0xcc4   :  { %3138 = vmatmul.msk.f32.gmra.mxu2 %vm2031_vm4, %v2027_v45 }
 0xccc   :  { %3139 = vmatmul.msk.f32.gmra.mxu2 %vm2031_vm4, %v2028_v41 }
 0xd37   :  { %v2061_v60 = vpop.f32.mrf.mxu2 }
 0xd38   :  { %3141 = vmatmul.msk.f32.vlgmr.msrb.gmra.mxu3 %vm1165_vm7, %v2061_v60 }
 0xd3f   :  { %v2064_v38 = vpop.f32.mrf.mxu2 }
 0xd40   :  { %3142 = vmatmul.msk.f32.gmra.mxu3 %vm1165_vm7, %v2064_v38 }
 0xd47   :  { %v2067_v40 = vpop.f32.mrf.mxu2 }
 0xd48   :  { %3143 = vmatmul.msk.f32.gmra.mxu3 %vm1165_vm7, %v2067_v40 }
 0xd4f   :  { %v2070_v32 = vpop.f32.mrf.mxu2 }
 0xd50   :  { %3144 = vmatmul.msk.f32.gmra.mxu3 %vm1165_vm7, %v2070_v32 }
 0xdbb   :  { %v2108_v46 = vpop.f32.mrf.mxu3 }
 0xdbc   :  { %v2109_v0 = vadd.f32 %v3249_v22, %v2108_v46 }
 0xdbe   :  { %v2120_v21 = vmax.f32 %v2109_v0, 0.0 }
 0xdc3   :  { %v2111_v57 = vpop.f32.mrf.mxu3 }
 0xdc4   :  { %v2112_v26 = vadd.f32 %v3249_v22, %v2111_v57 }
 0xdc6   :  { %v2121_v20 = vmax.f32 %v2112_v26, 0.0 }
 0xdcb   :  { %v2114_v11 = vpop.f32.mrf.mxu3 }
 0xdcc   :  { %v2115_v42 = vadd.f32 %v3249_v22, %v2114_v11 }
 0xdce   :  { %v2122_v48 = vmax.f32 %v2115_v42, 0.0 }
 0xdd3   :  { %v2117_v31 = vpop.f32.mrf.mxu3 }
 0xdd4   :  { %v2118_v18 = vadd.f32 %v3249_v22, %v2117_v31 }
 0xdd6   :  { %v2123_v44 = vmax.f32 %v2118_v18, 0.0 }
 0xdd8   :  { %2138 = vmatpush.msra.mxu1 %v2123_v44 }
 0xdda   :  { %2139 = vmatpush.msra.mxu1 %v2122_v48 }
 0xddc   :  { %2140 = vmatpush.msra.mxu1 %v2121_v20 }
 0xdde   :  { %2141 = vmatpush.msra.mxu1 %v2120_v21 }
 0xddf   :  { %3145 = vmatmul.msk.f32.vlgmr.msra.gmra.mxu1 %vm2031_vm4, %v2025_v29 }
 0xde7   :  { %3146 = vmatmul.msk.f32.gmra.mxu1 %vm2031_vm4, %v2026_v30 }
 0xdef   :  { %3147 = vmatmul.msk.f32.gmra.mxu1 %vm2031_vm4, %v2027_v45 }
 0xdf7   :  { %3148 = vmatmul.msk.f32.gmra.mxu1 %vm2031_vm4, %v2028_v41 }
 0xe5c   :  { %v2143_v24 = vpop.f32.mrf.mxu1 }
 0xe5d   :  { %3150 = vmatmul.msk.f32.vlgmr.msra.gmra.mxu2 %vm1165_vm7, %v2143_v24 }
 0xe64   :  { %v2146_v15 = vpop.f32.mrf.mxu1 }
 0xe65   :  { %3151 = vmatmul.msk.f32.gmra.mxu2 %vm1165_vm7, %v2146_v15 }
 0xe6c   :  { %v2149_v28 = vpop.f32.mrf.mxu1 }
 0xe6d   :  { %3152 = vmatmul.msk.f32.gmra.mxu2 %vm1165_vm7, %v2149_v28 }
 0xe74   :  { %v2152_v53 = vpop.f32.mrf.mxu1 }
 0xe75   :  { %3153 = vmatmul.msk.f32.gmra.mxu2 %vm1165_vm7, %v2152_v53 }
 0xee0   :  { %v2190_v2 = vpop.f32.mrf.mxu2 }
 0xee1   :  { %v2191_v51 = vadd.f32 %v3250_v58, %v2190_v2 }
 0xee3   :  { %v2202_v63 = vmax.f32 %v2191_v51, 0.0 }
 0xee8   :  { %v2193_v52 = vpop.f32.mrf.mxu2 }
 0xee9   :  { %v2194_v62 = vadd.f32 %v3250_v58, %v2193_v52 }
 0xeeb   :  { %v2203_v59 = vmax.f32 %v2194_v62, 0.0  ;;  %v2333_v62 = vld [vmem:[%s2923_s1 + $0x8] sm:$0xff] }
 0xef0   :  { %v2196_v33 = vpop.f32.mrf.mxu2 }
 0xef1   :  { %v2197_v61 = vadd.f32 %v3250_v58, %v2196_v33 }
 0xef3   :  { %v2204_v54 = vmax.f32 %v2197_v61, 0.0 }
 0xef8   :  { %v2199_v27 = vpop.f32.mrf.mxu2 }
 0xef9   :  { %v2200_v1 = vadd.f32 %v3250_v58, %v2199_v27 }
 0xefb   :  { %v2205_v49 = vmax.f32 %v2200_v1, 0.0  ;;  %v2332_v1 = vld [vmem:[%s2923_s1] sm:$0xff]  ;;  %s2958_s1 = sld [smem:[%s4510_s0 + %s3378_s28]]  }
 0xefd   :  { %2234 = vmatpush.msra.mxu3 %v2205_v49 }
 0xeff   :  { %2235 = vmatpush.msra.mxu3 %v2204_v54 }
 0xf01   :  { %2236 = vmatpush.msra.mxu3 %v2203_v59 }
 0xf03   :  { %2237 = vmatpush.msra.mxu3 %v2202_v63 }
 0xf04   :  { %3154 = vmatmul.msk.f32.vlgmr.msra.gmra.mxu3 %vm2031_vm4, %v2206_v3 }
 0xf0c   :  { %3155 = vmatmul.msk.f32.gmra.mxu3 %vm2031_vm4, %v2207_v4 }
 0xf14   :  { %3156 = vmatmul.msk.f32.gmra.mxu3 %vm2031_vm4, %v2208_v5 }
 0xf1c   :  { %3157 = vmatmul.msk.f32.gmra.mxu3 %vm2031_vm4, %v2209_v6 }
 0xf87   :  { %v2239_v7 = vpop.f32.mrf.mxu3 }
 0xf88   :  { %v4368_v43 = vsub.f32 %v2202_v63, %v2239_v7  ;;  %v2367_v63 = vld [vmem:[%s2947_s13] sm:$0x3f] }
 0xf89   :  { %3166 = vmatpush.msk.msrb.mxu3 %vm1196_vm6, %v2367_v63  ;;  %v3251_v7 = vld [vmem:[%s2948_s9] ss:$0 sm:$0xff]  ;;  %vm2465_vm6 = vcmask 97280  }
 0xf8a   :  { %v2255_v47 = vmul.f32 %v4368_v43, %v4368_v43 }
 0xf8f   :  { %v2242_v14 = vpop.f32.mrf.mxu3 }
 0xf90   :  { %v4364_v34 = vsub.f32 %v2203_v59, %v2242_v14  ;;  %v4402_v59 = vld [vmem:[%s2924_s5 + $0x8] sm:$0xff] }
 0xf92   :  { %v2256_v36 = vmul.f32 %v4364_v34, %v4364_v34 }
 0xf97   :  { %v2245_v39 = vpop.f32.mrf.mxu3 }
 0xf98   :  { %v4360_v9 = vsub.f32 %v2204_v54, %v2245_v39  ;;  %v4398_v54 = vld [vmem:[%s2924_s5] sm:$0xff]  ;;  %s2959_s5 = sld [smem:[%s4510_s0 + %s3379_s2]]  }
 0xf9a   :  { %v2257_v12 = vmul.f32 %v4360_v9, %v4360_v9 }
 0xf9f   :  { %v2248_v23 = vpop.f32.mrf.mxu3 }
 0xfa0   :  { %v4362_v35 = vsub.f32 %v2205_v49, %v2248_v23 }
 0xfa2   :  { %v2258_v8 = vmul.f32 %v4362_v35, %v4362_v35 }
 0xfa4   :  { %2271 = vmatpush.msra.mxu0 %v2258_v8 }
 0xfa6   :  { %2272 = vmatpush.msra.mxu0 %v2257_v12 }
 0xfa8   :  { %2273 = vmatpush.msra.mxu0 %v2256_v36  ;;  %v3252_v36 = vld [vmem:[%s2950_s21] ss:$0 sm:$0xff] }
 0xfaa   :  { %2274 = vmatpush.msra.mxu0 %v2255_v47 }
 0xfab   :  { %3158 = vmatmul.msk.f32.vlgmr.msra.gmra.mxu0 %vm2031_vm4, %v2206_v3 }
 0xfb3   :  { %3159 = vmatmul.msk.f32.gmra.mxu0 %vm2031_vm4, %v2207_v4 }
 0xfbb   :  { %3160 = vmatmul.msk.f32.gmra.mxu0 %vm2031_vm4, %v2208_v5  ;;  %v2437_v5 = vld [vmem:[%s2949_s17 + $0x8] sm:$0xf] }
 0xfc3   :  { %3161 = vmatmul.msk.f32.gmra.mxu0 %vm2031_vm4, %v2209_v6 }
0x1028   :  { %v2276_v16 = vpop.f32.mrf.mxu0 }
0x1029   :  { %v2277_v37 = vadd.f32 1e-05, %v2276_v16 }
0x102b   :  { %vm2294_vm15 = vweird.f32 %v2277_v37 }
0x1030   :  { %v2279_v13 = vpop.f32.mrf.mxu0 }
0x1031   :  { %v2280_v56 = vadd.f32 1e-05, %v2279_v13 }
0x1033   :  { %3317 = vrsqrt.f32 %v2280_v56  ;;  %vm2304_vm1 = vweird.f32 %v2280_v56 }
0x1034   :  { %3319 = vrsqrt.f32 %v2277_v37 }
0x1038   :  { %v2282_v19 = vpop.f32.mrf.mxu0 }
0x1039   :  { %v2283_v25 = vadd.f32 1e-05, %v2282_v19  ;;  %v3318_v10 = vpop.eup %3317  ;;  %v4431_v19 = vld [vmem:[%s2930_s25] sm:$0xff] }
0x103a   :  { %v3320_v17 = vpop.eup %3319  ;;  %v2299_v41 = vmul.f32 %v3318_v10, %v2280_v56  ;;  %vm2305_vm9 = vweird.f32 %v3318_v10 }
0x103b   :  { %3321 = vrsqrt.f32 %v2283_v25  ;;  %v2289_v60 = vmul.f32 %v3320_v17, %v2277_v37  ;;  %vm2314_vm8 = vweird.f32 %v2283_v25  ;;  %vm2295_vm12 = vweird.f32 %v3320_v17  ;;  %vm2306_vm14 = vmor %vm2304_vm1, %vm2305_vm9 }
0x103c   :  { %v2300_v40 = vmul.f32 %v3318_v10, %v2299_v41  ;;  %vm2296_vm2 = vmor %vm2294_vm15, %vm2295_vm12 }
0x103d   :  { %v2290_v32 = vmul.f32 %v3320_v17, %v2289_v60 }
0x103e   :  { %v2301_v11 = vmul.f32 0.5, %v2300_v40 }
0x103f   :  { %v2291_v31 = vmul.f32 0.5, %v2290_v32 }
0x1040   :  { %v2285_v29 = vpop.f32.mrf.mxu0  ;;  %v2302_v26 = vsub.f32 1.5, %v2301_v11 }
0x1041   :  { %v3322_v30 = vpop.eup %3321  ;;  %v2286_v45 = vadd.f32 1e-05, %v2285_v29  ;;  %v2292_v0 = vsub.f32 1.5, %v2291_v31 }
0x1042   :  { %v2309_v55 = vmul.f32 %v3322_v30, %v2283_v25  ;;  %vm2315_vm0 = vweird.f32 %v3322_v30  ;;  %v2303_v24 = vmul.f32 %v3318_v10, %v2302_v26  ;;  %v4435_v25 = vld [vmem:[%s2930_s25 + $0x8] sm:$0xff] }
0x1043   :  { %3323 = vrsqrt.f32 %v2286_v45  ;;  %vm4380_vm10 = vmor %vm2314_vm8, %vm2315_vm0  ;;  %vm2324_vm11 = vweird.f32 %v2286_v45  ;;  %v2293_v53 = vmul.f32 %v3320_v17, %v2292_v0 }
0x1044   :  { %v2310_v38 = vmul.f32 %v3322_v30, %v2309_v55  ;;  %v2307_v52 = vsel %vm2306_vm14, %v3318_v10, %v2303_v24 }
0x1045   :  { %v2297_v58 = vsel %vm2296_vm2, %v3320_v17, %v2293_v53  ;;  %v2329_v27 = vmul.f32 %v2307_v52, %v4364_v34  ;;  %v2436_v34 = vld [vmem:[%s2949_s17] sm:$0xff]  ;;  %v2643_v52 = vld [vmem:[%s2953_s7 + $0x8] sm:$0xf] }
0x1046   :  { %v2311_v46 = vmul.f32 0.5, %v2310_v38  ;;  %v2328_v61 = vmul.f32 %v2297_v58, %v4368_v43  ;;  %v3253_v58 = vld [vmem:[%s2952_s3] ss:$0 sm:$0xff] }
0x1048   :  { %v2312_v42 = vsub.f32 1.5, %v2311_v46 }
0x1049   :  { %v3324_v57 = vpop.eup %3323 }
0x104a   :  { %v2319_v22 = vmul.f32 %v3324_v57, %v2286_v45  ;;  %vm2325_vm5 = vweird.f32 %v3324_v57  ;;  %v2313_v20 = vmul.f32 %v3322_v30, %v2312_v42 }
0x104b   :  { %vm2326_vm13 = vmor %vm2324_vm11, %vm2325_vm5 }
0x104c   :  { %v2320_v18 = vmul.f32 %v3324_v57, %v2319_v22  ;;  %v2317_v28 = vsel %vm4380_vm10, %v3322_v30, %v2313_v20 }
0x104d   :  { %v2330_v33 = vmul.f32 %v2317_v28, %v4360_v9  ;;  %v2579_v28 = vld [vmem:[%s4446_s29] sm:$0xff] }
0x104e   :  { %v2321_v44 = vmul.f32 0.5, %v2320_v18 }
0x1050   :  { %v2322_v48 = vsub.f32 1.5, %v2321_v44 }
0x1052   :  { %v2323_v50 = vmul.f32 %v3324_v57, %v2322_v48 }
0x1054   :  { %v2327_v15 = vsel %vm2326_vm13, %v3324_v57, %v2323_v50  ;;  %v2580_v57 = vld [vmem:[%s4446_s29 + $0x8] sm:$0xf] }
0x1055   :  { %v2331_v2 = vmul.f32 %v2327_v15, %v4362_v35 }
0x1057   :  { %2352 = vmatpush.msrb.mxu1 %v2331_v2 }
0x1059   :  { %2353 = vmatpush.msrb.mxu1 %v2330_v33 }
0x105b   :  { %2354 = vmatpush.msrb.mxu1 %v2329_v27 }
0x105d   :  { %2355 = vmatpush.msrb.mxu1 %v2328_v61 }
0x105e   :  { %3162 = vmatmul.msk.f32.vlgmr.msrb.gmra.mxu1 %vm2031_vm4, %v2332_v1 }
0x1066   :  { %3163 = vmatmul.msk.f32.gmra.mxu1 %vm2031_vm4, %v2333_v62  ;;  %vm2472_vm4 = vcmask 1043456  }
0x1067   :  { %3171 = vmatpush.msk.msra.mxu1 %vm2472_vm4, %v2437_v5  ;;  %v3254_v5 = vld [vmem:[%s2954_s11] ss:$0 sm:$0xff] }
0x1069   :  { %2491 = vmatpush.msra.mxu1 %v2436_v34 }
0x106b   :  { %3180 = vmatpush.msk.msrb.mxu1 %vm2472_vm4, %v2580_v57 }
0x106d   :  { %2632 = vmatpush.msrb.mxu1 %v2579_v28 }
0x10db   :  { %v2357_v49 = vpop.f32.mrf.mxu1 }
0x10e3   :  { %v2360_v51 = vpop.f32.mrf.mxu1 }
0x10e4   :  { %2390 = vmatpush.msrb.mxu2 %v2360_v51  ;;  %v2642_v51 = vld [vmem:[%s2953_s7] sm:$0xff] }
0x10e6   :  { %2391 = vmatpush.msrb.mxu2 %v2357_v49 }
0x10e7   :  { %3164 = vmatmul.msk.f32.vlgmr.msrb.gmra.mxu2 %vm2369_vm3, %v4398_v54 }
0x10ef   :  { %3165 = vmatmul.msk.f32.gmra.mxu2 %vm2369_vm3, %v4402_v59 }
0x116a   :  { %v2393_v3 = vpop.f32.mrf.mxu2 }
0x116b   :  { %3167 = vmatmul.msk.f32.vlgmr.msrb.gmra.mxu3 %vm1165_vm7, %v2393_v3 }
0x1172   :  { %v2396_v4 = vpop.f32.mrf.mxu2 }
0x1173   :  { %3168 = vmatmul.msk.f32.gmra.mxu3 %vm1165_vm7, %v2396_v4 }
0x11ee   :  { %v2428_v6 = vpop.f32.mrf.mxu3 }
0x11ef   :  { %v2429_v39 = vadd.f32 %v3251_v7, %v2428_v6 }
0x11f1   :  { %v2434_v35 = vmax.f32 %v2429_v39, 0.0 }
0x11f6   :  { %v2431_v14 = vpop.f32.mrf.mxu3 }
0x11f7   :  { %v2432_v23 = vadd.f32 %v3251_v7, %v2431_v14 }
0x11f9   :  { %v2435_v9 = vmax.f32 %v2432_v23, 0.0 }
0x11fb   :  { %2453 = vmatpush.msrb.mxu0 %v2435_v9 }
0x11fd   :  { %2454 = vmatpush.msrb.mxu0 %v2434_v35 }
0x11fe   :  { %3169 = vmatmul.msk.f32.vlgmr.msrb.gmra.mxu0 %vm2369_vm3, %v4398_v54 }
0x1206   :  { %3170 = vmatmul.msk.f32.gmra.mxu0 %vm2369_vm3, %v4402_v59 }
0x127b   :  { %v2456_v8 = vpop.f32.mrf.mxu0 }
0x127c   :  { %3172 = vmatmul.msk.f32.vlgmr.msra.gmra.mxu1 %vm2465_vm6, %v2456_v8 }
0x1283   :  { %v2459_v43 = vpop.f32.mrf.mxu0 }
0x1284   :  { %3173 = vmatmul.msk.f32.gmra.mxu1 %vm2465_vm6, %v2459_v43 }
0x12f9   :  { %v2493_v12 = vpop.f32.mrf.mxu1 }
0x12fa   :  { %v2494_v16 = vadd.f32 %v3252_v36, %v2493_v12 }
0x12fc   :  { %v2499_v37 = vmax.f32 %v2494_v16, 0.0 }
0x1301   :  { %v2496_v47 = vpop.f32.mrf.mxu1 }
0x1302   :  { %v2497_v13 = vadd.f32 %v3252_v36, %v2496_v47 }
0x1304   :  { %v2500_v56 = vmax.f32 %v2497_v13, 0.0 }
0x1306   :  { %2521 = vmatpush.msra.mxu2 %v2500_v56 }
0x1308   :  { %2522 = vmatpush.msra.mxu2 %v2499_v37 }
0x1309   :  { %3174 = vmatmul.msk.f32.vlgmr.msra.gmra.mxu2 %vm2369_vm3, %v4431_v19 }
0x1311   :  { %3175 = vmatmul.msk.f32.gmra.mxu2 %vm2369_vm3, %v4435_v25 }
0x138c   :  { %v2524_v10 = vpop.f32.mrf.mxu2 }
0x138d   :  { %v2530_v29 = vsub.f32 %v2499_v37, %v2524_v10 }
0x138f   :  { %v2532_v41 = vmul.f32 %v2530_v29, %v2530_v29 }
0x1394   :  { %v2527_v17 = vpop.f32.mrf.mxu2 }
0x1395   :  { %v2531_v30 = vsub.f32 %v2500_v56, %v2527_v17 }
0x1397   :  { %v2533_v45 = vmul.f32 %v2531_v30, %v2531_v30 }
0x1399   :  { %2548 = vmatpush.msra.mxu3 %v2533_v45 }
0x139b   :  { %2549 = vmatpush.msra.mxu3 %v2532_v41 }
0x139c   :  { %3176 = vmatmul.msk.f32.vlgmr.msra.gmra.mxu3 %vm2369_vm3, %v4431_v19 }
0x139d   :  { %3185 = vmatpush.msk.msrb.mxu3 %vm2472_vm4, %v2643_v52 }
0x139f   :  { %2695 = vmatpush.msrb.mxu3 %v2642_v51 }
0x13a4   :  { %3177 = vmatmul.msk.f32.gmra.mxu3 %vm2369_vm3, %v4435_v25 }
0x141f   :  { %v2551_v55 = vpop.f32.mrf.mxu3 }
0x1420   :  { %v2552_v60 = vadd.f32 1e-05, %v2551_v55 }
0x1422   :  { %3325 = vrsqrt.f32 %v2552_v60  ;;  %vm2563_vm5 = vweird.f32 %v2552_v60 }
0x1427   :  { %v2554_v38 = vpop.f32.mrf.mxu3 }
0x1428   :  { %v3326_v40 = vpop.eup %3325  ;;  %v2555_v32 = vadd.f32 1e-05, %v2554_v38 }
0x1429   :  { %v2558_v46 = vmul.f32 %v3326_v40, %v2552_v60  ;;  %vm2564_vm7 = vweird.f32 %v3326_v40 }
0x142a   :  { %3327 = vrsqrt.f32 %v2555_v32  ;;  %vm2565_vm8 = vmor %vm2563_vm5, %vm2564_vm7  ;;  %vm2573_vm9 = vweird.f32 %v2555_v32 }
0x142b   :  { %v2559_v11 = vmul.f32 %v3326_v40, %v2558_v46 }
0x142d   :  { %v2560_v22 = vmul.f32 0.5, %v2559_v11 }
0x142f   :  { %v2561_v18 = vsub.f32 1.5, %v2560_v22 }
0x1430   :  { %v3328_v31 = vpop.eup %3327 }
0x1431   :  { %v2568_v42 = vmul.f32 %v3328_v31, %v2555_v32  ;;  %vm2574_vm0 = vweird.f32 %v3328_v31  ;;  %v2562_v48 = vmul.f32 %v3326_v40, %v2561_v18 }
0x1432   :  { %vm2575_vm10 = vmor %vm2573_vm9, %vm2574_vm0 }
0x1433   :  { %v2569_v26 = vmul.f32 %v3328_v31, %v2568_v42  ;;  %v2566_v50 = vsel %vm2565_vm8, %v3326_v40, %v2562_v48 }
0x1434   :  { %v2577_v15 = vmul.f32 %v2566_v50, %v2530_v29 }
0x1435   :  { %v2570_v44 = vmul.f32 0.5, %v2569_v26  ;;  %v2802_v26 = vld [vmem:[%s2931_s15] sm:$0x3] }
0x1437   :  { %v2571_v0 = vsub.f32 1.5, %v2570_v44  ;;  %v2877_v44 = vld [vmem:[%s2957_s27 + $0x20] sm:$0xf] }
0x1439   :  { %v2572_v20 = vmul.f32 %v3328_v31, %v2571_v0  ;;  %v2876_v0 = vld [vmem:[%s2957_s27 + $0x18] sm:$0xff] }
0x143b   :  { %v2576_v21 = vsel %vm2575_vm10, %v3328_v31, %v2572_v20 }
0x143c   :  { %v2578_v24 = vmul.f32 %v2576_v21, %v2531_v30 }
0x143e   :  { %2596 = vmatpush.msra.mxu0 %v2578_v24 }
0x1440   :  { %2597 = vmatpush.msra.mxu0 %v2577_v15 }
0x1441   :  { %3178 = vmatmul.msk.f32.vlgmr.msra.gmra.mxu0 %vm2369_vm3, %v4398_v54 }
0x1449   :  { %3179 = vmatmul.msk.f32.gmra.mxu0 %vm2369_vm3, %v4402_v59 }
0x14be   :  { %v2599_v53 = vpop.f32.mrf.mxu0 }
0x14bf   :  { %3181 = vmatmul.msk.f32.vlgmr.msrb.gmra.mxu1 %vm2465_vm6, %v2599_v53 }
0x14c6   :  { %v2602_v2 = vpop.f32.mrf.mxu0 }
0x14c7   :  { %3182 = vmatmul.msk.f32.gmra.mxu1 %vm2465_vm6, %v2602_v2 }
0x153c   :  { %v2634_v33 = vpop.f32.mrf.mxu1 }
0x153d   :  { %v2635_v61 = vadd.f32 %v3253_v58, %v2634_v33 }
0x153f   :  { %v2640_v49 = vmax.f32 %v2635_v61, 0.0  ;;  %v2873_v61 = vld [vmem:[%s2957_s27] sm:$0xff] }
0x1544   :  { %v2637_v27 = vpop.f32.mrf.mxu1 }
0x1545   :  { %v2638_v1 = vadd.f32 %v3253_v58, %v2637_v27  ;;  %v2875_v58 = vld [vmem:[%s2957_s27 + $0x10] sm:$0xff]  ;;  %v2874_v27 = vld [vmem:[%s2957_s27 + $0x8] sm:$0xff] }
0x1547   :  { %v2641_v62 = vmax.f32 %v2638_v1, 0.0  ;;  %v96_v1 = vstv %s2958_s1 }
0x1548   :  { %97 = vst [vmem:[#allocation2] sm:$0x1] %v96_v1 }
0x1549   :  { %2659 = vmatpush.msrb.mxu2 %v2641_v62  ;;  %v3255_v62 = vld [vmem:[%s4492_s19] ss:$0 sm:$0xff] }
0x154b   :  { %2660 = vmatpush.msrb.mxu2 %v2640_v49 }
0x154c   :  { %3183 = vmatmul.msk.f32.vlgmr.msrb.gmra.mxu2 %vm2369_vm3, %v4398_v54 }
0x1554   :  { %3184 = vmatmul.msk.f32.gmra.mxu2 %vm2369_vm3, %v4402_v59 }
0x15cf   :  { %v2662_v63 = vpop.f32.mrf.mxu2 }
0x15d0   :  { %3186 = vmatmul.msk.f32.vlgmr.msrb.gmra.mxu3 %vm2465_vm6, %v2662_v63 }
0x15d7   :  { %v2665_v3 = vpop.f32.mrf.mxu2 }
0x15d8   :  { %3187 = vmatmul.msk.f32.gmra.mxu3 %vm2465_vm6, %v2665_v3  ;;  %v3256_v3 = vld [vmem:[#allocation2] ss:$0 sm:$0xff] }
0x1653   :  { %v2697_v4 = vpop.f32.mrf.mxu3 }
0x1654   :  { %v2698_v54 = vadd.f32 %v3254_v5, %v2697_v4 }
0x1656   :  { %v2703_v59 = vmax.f32 %v2698_v54, 0.0 }
0x165b   :  { %v2700_v6 = vpop.f32.mrf.mxu3 }
0x165c   :  { %v2701_v7 = vadd.f32 %v3254_v5, %v2700_v6 }
0x165e   :  { %v2704_v14 = vmax.f32 %v2701_v7, 0.0 }
0x1660   :  { %2719 = vmatpush.msrb.mxu0 %v2704_v14 }
0x1662   :  { %2720 = vmatpush.msrb.mxu0 %v2703_v59 }
0x1663   :  { %3188 = vmatmul.msk.f32.vlgmr.msrb.gmra.mxu0 %vm2369_vm3, %v4431_v19 }
0x1664   :  { %3197 = vmatpush.msk.msra.mxu0 %vm2472_vm4, %v2877_v44 }
0x1666   :  { %2901 = vmatpush.msra.mxu0 %v2876_v0 }
0x1668   :  { %2902 = vmatpush.msra.mxu0 %v2875_v58 }
0x166a   :  { %2903 = vmatpush.msra.mxu0 %v2874_v27 }
0x166b   :  { %3189 = vmatmul.msk.f32.gmra.mxu0 %vm2369_vm3, %v4435_v25 }
0x166c   :  { %2904 = vmatpush.msra.mxu0 %v2873_v61 }
0x16e0   :  { %v2722_v39 = vpop.f32.mrf.mxu0 }
0x16e1   :  { %v2728_v9 = vsub.f32 %v2703_v59, %v2722_v39 }
0x16e3   :  { %v2730_v8 = vmul.f32 %v2728_v9, %v2728_v9 }
0x16e8   :  { %v2725_v23 = vpop.f32.mrf.mxu0 }
0x16e9   :  { %v2729_v35 = vsub.f32 %v2704_v14, %v2725_v23 }
0x16eb   :  { %v2731_v34 = vmul.f32 %v2729_v35, %v2729_v35 }
0x16ed   :  { %2746 = vmatpush.msra.mxu1 %v2731_v34 }
0x16ef   :  { %2747 = vmatpush.msra.mxu1 %v2730_v8 }
0x16f0   :  { %3190 = vmatmul.msk.f32.vlgmr.msra.gmra.mxu1 %vm2369_vm3, %v4431_v19 }
0x16f8   :  { %3191 = vmatmul.msk.f32.gmra.mxu1 %vm2369_vm3, %v4435_v25 }
0x176d   :  { %v2749_v43 = vpop.f32.mrf.mxu1 }
0x176e   :  { %v2750_v12 = vadd.f32 1e-05, %v2749_v43 }
0x1770   :  { %3329 = vrsqrt.f32 %v2750_v12  ;;  %vm2761_vm13 = vweird.f32 %v2750_v12 }
0x1775   :  { %v2752_v36 = vpop.f32.mrf.mxu1 }
0x1776   :  { %v3330_v47 = vpop.eup %3329  ;;  %v2753_v16 = vadd.f32 1e-05, %v2752_v36 }
0x1777   :  { %v2756_v13 = vmul.f32 %v3330_v47, %v2750_v12  ;;  %vm2762_vm11 = vweird.f32 %v3330_v47 }
0x1778   :  { %3331 = vrsqrt.f32 %v2753_v16  ;;  %vm2763_vm1 = vmor %vm2761_vm13, %vm2762_vm11  ;;  %vm2771_vm14 = vweird.f32 %v2753_v16 }
0x1779   :  { %v2757_v56 = vmul.f32 %v3330_v47, %v2756_v13 }
0x177b   :  { %v2758_v37 = vmul.f32 0.5, %v2757_v56 }
0x177d   :  { %v2759_v29 = vsub.f32 1.5, %v2758_v37 }
0x177e   :  { %v3332_v10 = vpop.eup %3331 }
0x177f   :  { %v2766_v17 = vmul.f32 %v3332_v10, %v2753_v16  ;;  %vm2772_vm12 = vweird.f32 %v3332_v10  ;;  %v2760_v55 = vmul.f32 %v3330_v47, %v2759_v29 }
0x1780   :  { %vm2773_vm15 = vmor %vm2771_vm14, %vm2772_vm12 }
0x1781   :  { %v2767_v30 = vmul.f32 %v3332_v10, %v2766_v17  ;;  %v2764_v40 = vsel %vm2763_vm1, %v3330_v47, %v2760_v55 }
0x1782   :  { %v2775_v46 = vmul.f32 %v2764_v40, %v2728_v9 }
0x1783   :  { %v2768_v45 = vmul.f32 0.5, %v2767_v30 }
0x1785   :  { %v2769_v41 = vsub.f32 1.5, %v2768_v45 }
0x1787   :  { %v2770_v60 = vmul.f32 %v3332_v10, %v2769_v41 }
0x1789   :  { %v2774_v38 = vsel %vm2773_vm15, %v3332_v10, %v2770_v60 }
0x178a   :  { %v2776_v32 = vmul.f32 %v2774_v38, %v2729_v35 }
0x178c   :  { %2791 = vmatpush.msra.mxu2 %v2776_v32 }
0x178e   :  { %2792 = vmatpush.msra.mxu2 %v2775_v46 }
0x178f   :  { %3192 = vmatmul.msk.f32.vlgmr.msra.gmra.mxu2 %vm2369_vm3, %v4431_v19  ;;  %v2841_v19 = vld [vmem:[%s2955_s23 + $0x8] sm:$0xf] }
0x1797   :  { %3193 = vmatmul.msk.f32.gmra.mxu2 %vm2369_vm3, %v4435_v25  ;;  %v2840_v25 = vld [vmem:[%s2955_s23] sm:$0xff] }
0x1812   :  { %v2794_v57 = vpop.f32.mrf.mxu2 }
0x1813   :  { %v2800_v22 = vsub.f32 %v2775_v46, %v2794_v57 }
0x1815   :  { %v2803_v18 = vmul.f32 %v2800_v22, %v2800_v22 }
0x181a   :  { %v2797_v11 = vpop.f32.mrf.mxu2 }
0x181b   :  { %v2801_v31 = vsub.f32 %v2776_v32, %v2797_v11 }
0x181d   :  { %v2804_v42 = vmul.f32 %v2801_v31, %v2801_v31 }
0x181f   :  { %2822 = vmatpush.msra.mxu3 %v2804_v42 }
0x1821   :  { %2823 = vmatpush.msra.mxu3 %v2803_v18 }
0x1822   :  { %3194 = vmatmul.msk.f32.vlgmr.msra.gmra.mxu3 %vm2369_vm3, %v2802_v26 }
0x1823   :  { %3195 = vmatpush.msk.msrb.mxu3 %vm2472_vm4, %v2841_v19  ;;  %vm2882_vm4 = vcmask 293888  }
0x1825   :  { %2867 = vmatpush.msrb.mxu3 %v2840_v25 }
0x18a5   :  { %v2825_v48 = vpop.f32.mrf.mxu3 }
0x18a6   :  { %3333 = vrsqrt.f32 %v2825_v48  ;;  %vm2835_vm2 = vcmp.eq.f32.partialorder %v2825_v48, inf  ;;  %v2838_v2 = vand.u32 2147483648, %v2825_v48  ;;  %vm2837_vm3 = vcmp.eq.f32.partialorder %v2825_v48, 0.0 }
0x18ac   :  { %v3334_v20 = vpop.eup %3333 }
0x18ad   :  { %v2829_v21 = vmul.f32 %v3334_v20, %v2825_v48 }
0x18af   :  { %v2830_v50 = vmul.f32 %v3334_v20, %v2829_v21 }
0x18b1   :  { %v2831_v24 = vmul.f32 0.5, %v2830_v50 }
0x18b3   :  { %v2832_v15 = vsub.f32 1.5, %v2831_v24 }
0x18b5   :  { %v2833_v28 = vmul.f32 %v3334_v20, %v2832_v15 }
0x18b7   :  { %v2834_v53 = vmul.f32 %v2833_v28, %v2825_v48 }
0x18b9   :  { %v2836_v52 = vsel %vm2835_vm2, %v2825_v48, %v2834_v53 }
0x18ba   :  { %v2839_v33 = vsel %vm2837_vm3, %v2838_v2, %v2836_v52 }
0x18bb   :  { %3196 = vmatmul.msk.f32.vlgmr.msrb.gmra.mxu3 %vm2465_vm6, %v2839_v33  ;;  %vm2909_vm6 = vcmask 1024  }
0x193e   :  { %v2869_v49 = vpop.f32.mrf.mxu3 }
0x193f   :  { %v2870_v51 = vadd.f32 %v3255_v62, %v2869_v49 }
0x1941   :  { %v2872_v63 = vmax.f32 %v2870_v51, 0.0 }
0x1943   :  { %3198 = vmatmul.msk.f32.vlgmr.msra.gmra.mxu0 %vm2882_vm4, %v2872_v63 }
0x19c0   :  { %v2906_v4 = vpop.f32.mrf.mxu0 }
0x19c1   :  { %v2907_v5 = vadd.f32 %v3256_v3, %v2906_v4 }
0x19c3   :  { %2910 = vst.msk [vmem:[%s2959_s5] sm:$0x3] %vm2909_vm6, %v2907_v5 }

</bundles_post_ra>
